<compile_context>
chip_gen: v7x
topology: tpu7x:2x2x1
jax: 0.10.0
libtpu: 0.0.40
codegen_flags: <defaults>
</compile_context>

<pallas_src>
import functools

import jax
import jax.numpy as jnp
import numpy as np
from jax.experimental import pallas as pl
from jax.experimental.pallas import tpu as pltpu

GATE_PAD = 128   # each GRU gate padded to a full 128-lane vreg


def decoder_kernel(idx_ref, g_ref, h0_ref, x0_ref,
                   wbig_ref, cbig_ref, wx_ref, wout_ref, bout_ref,
                   preds_ref, *, forecast_len, hid_dim):
    """Whole forecast recurrence in one kernel invocation.

    idx_ref  : (T*N, 1)  int32 embedding indices (time-major)
    g_ref    : (NE, 3*HP) folded table  G = emb_table @ W_e + b_ih (gate-padded)
    h0_ref   : (N, H)    initial hidden state
    x0_ref   : (N, 1)    initial prediction (xn)
    wbig_ref : (HP, 4*HP) [whh_r+fold_r | whh_z+fold_z | whh_n | fold_n]
    cbig_ref : (1, 4*HP)  [bhh_r+bo*wx_r | bhh_z+bo*wx_z | bhh_n | bo*wx_n]
    wx_ref   : (1, 3*HP)  previous-pred input column (gate-padded)
    wout_ref : (1, HP)    fc_out weight row (padded)
    bout_ref : (1, 1)     fc_out bias
    preds_ref: (T*N, 1)   predictions, written once
    """
    T = forecast_len
    H = hid_dim
    HP = GATE_PAD
    N = h0_ref.shape[0]
    NE = g_ref.shape[0]

    # ---- batched embedding lookup: one-hot MXU matmul (off the recurrence) --
    idx = idx_ref[...]                                              # (T*N, 1)
    ids = jax.lax.broadcasted_iota(jnp.int32, (T * N, NE), 1)       # (T*N, NE)
    onehot = (idx == ids).astype(jnp.float32)                       # (T*N, NE)
    gi_all = jnp.dot(onehot, g_ref[...],
                     preferred_element_type=jnp.float32)            # (T*N, 3HP)

    # ---- loop-invariant hoists (JAX does not CSE broadcast_in_dim) ----------
    w_big = wbig_ref[...]                                           # (HP, 4HP)
    c_big = jnp.broadcast_to(cbig_ref[...], (N, 4 * HP))            # (N, 4HP)
    wout = wout_ref[...]                                            # (1, HP)
    bout = bout_ref[...]                                            # (1, 1)
    wx = wx_ref[...]                                                # (1, 3HP)

    # Hidden state in a 128-lane padded buffer; pad lanes start at 0 and the
    # padded gate columns keep them exactly 0 for every step.
    h = jnp.concatenate(
        [h0_ref[...], jnp.zeros((N, HP - H), jnp.float32)], axis=1)  # (N, HP)

    # Step-0 correction: the fold assumes x_t = fc_out(h_t); at t=0 the real
    # input is the supplied xn, so add (xn - fc_out(h0)) * wx once.
    delta0 = x0_ref[...] - (jnp.sum(h * wout, axis=-1, keepdims=True) + bout)
    corr0 = delta0 * wx                                             # (N, 3HP)

    hs = []
    # Short fixed trip count -> unrolled Python loop.
    # TODO(synk): for large T switch to lax.fori_loop + VMEM scratch to bound
    #             vreg live ranges (fine at T=8, N=32).
    for t in range(T):
        # Single recurrent matmul carries whh AND the folded fc_out feedback.
        m = jnp.dot(h, w_big, preferred_element_type=jnp.float32) + c_big
        gi = gi_all[t * N:(t + 1) * N, :]                           # (N, 3HP)
        if t == 0:
            gi = gi + corr0

        pre_r = gi[:, 0:HP] + m[:, 0:HP]                 # 128-aligned slices
        pre_z = gi[:, HP:2 * HP] + m[:, HP:2 * HP]
        gh_n = m[:, 2 * HP:3 * HP]
        gi_n = gi[:, 2 * HP:3 * HP] + m[:, 3 * HP:4 * HP]

        r = jax.nn.sigmoid(pre_r)
        z = jax.nn.sigmoid(pre_z)
        n = jnp.tanh(gi_n + r * gh_n)
        h = (1.0 - z) * n + z * h                                   # (N, HP)
        hs.append(h)

    # fc_out for every step in ONE batched reduce (off the serial chain).
    hs_cat = jnp.concatenate(hs, axis=0)                            # (T*N, HP)
    preds_ref[...] = jnp.sum(hs_cat * wout, axis=-1, keepdims=True) + bout


def pack_decoder_params(params, hid_dim):
    """One-time parameter prep (outside the hot path): fold W_e/b_ih into the
    embedding table, 128-lane-align each gate, and fold the fc_out feedback
    into the recurrent weight matrix."""
    H = hid_dim
    HP = GATE_PAD
    assert H <= HP

    W_ih = jnp.asarray(params["W_ih"], jnp.float32)      # (3H, E+1)
    W_hh = jnp.asarray(params["W_hh"], jnp.float32)      # (3H, H)
    b_ih = jnp.asarray(params["b_ih"], jnp.float32)      # (3H,)
    b_hh = jnp.asarray(params["b_hh"], jnp.float32)      # (3H,)
    W_out = jnp.asarray(params["W_out"], jnp.float32)    # (1, H)
    b_out = jnp.asarray(params["b_out"], jnp.float32)    # (1,)
    emb = jnp.asarray(params["emb_table"], jnp.float32)  # (NE, E)

    def pad_gate_cols(w_3h):  # (..., 3H) -> (..., 3*HP), gate-aligned, zero pad
        parts = []
        for g in range(3):
            blk = w_3h[..., g * H:(g + 1) * H]
            widths = [(0, 0)] * (w_3h.ndim - 1) + [(0, HP - H)]
            parts.append(jnp.pad(blk, widths))
        return jnp.concatenate(parts, axis=-1)

    we = W_ih[:, 1:].T                                   # (E, 3H)  emb columns
    wx = W_ih[:, 0:1].T                                  # (1, 3H)  prev-pred col
    whh = W_hh.T                                         # (H, 3H)

    # Folded, gate-aligned embedding table: G = emb @ W_e + b_ih.
    g_tab = pad_gate_cols(emb @ we + b_ih[None, :])      # (NE, 3HP)

    wx_p = pad_gate_cols(wx)                             # (1, 3HP)
    bhh_p = pad_gate_cols(b_hh[None, :])                 # (1, 3HP)
    whh_p = jnp.pad(pad_gate_cols(whh), ((0, HP - H), (0, 0)))   # (HP, 3HP)
    wout_p = jnp.pad(W_out, ((0, 0), (0, HP - H)))       # (1, HP)

    # Rank-1 fc_out feedback fold:  x*wx = h @ (wout^T wx) + b_out*wx.
    fold = wout_p.T @ wx_p                               # (HP, 3HP)
    bo = b_out[0]
    w_big = jnp.concatenate([
        whh_p[:, 0:HP] + fold[:, 0:HP],                  # r
        whh_p[:, HP:2 * HP] + fold[:, HP:2 * HP],        # z
        whh_p[:, 2 * HP:3 * HP],                         # n (hidden part)
        fold[:, 2 * HP:3 * HP],                          # n (x part, no r-mul)
    ], axis=1)                                           # (HP, 4HP)
    c_big = jnp.concatenate([
        bhh_p[:, 0:HP] + bo * wx_p[:, 0:HP],
        bhh_p[:, HP:2 * HP] + bo * wx_p[:, HP:2 * HP],
        bhh_p[:, 2 * HP:3 * HP],
        bo * wx_p[:, 2 * HP:3 * HP],
    ], axis=1)                                           # (1, 4HP)

    return {
        "g_tab": g_tab,
        "w_big": w_big,
        "c_big": c_big,
        "wx": wx_p,
        "wout": wout_p,
        "bout": b_out.reshape(1, 1),
    }


@functools.partial(jax.jit, static_argnames=(
    "forecast_len", "batch_size", "city_num", "hid_dim"))
def decoder_forward(X, hn, xn, packed, *, forecast_len, batch_size, city_num,
                    hid_dim):
    """X: [B, hist+forecast, C, F] (last feature = int index),
       hn: [B, C, H], xn: [B, C, 1]  ->  preds: [B, forecast, C, 1]."""
    B, C, H, T = batch_size, city_num, hid_dim, forecast_len
    N = B * C
    HP = GATE_PAD
    NE = packed["g_tab"].shape[0]

    # Only wrapper work: pull out the int indices, time-major.
    idx = X[:, :T, :, -1].astype(jnp.int32)                        # (B, T, C)
    idx = jnp.transpose(idx, (1, 0, 2)).reshape(T * N, 1)          # (T*N, 1)

    h0 = hn.reshape(N, H).astype(jnp.float32)
    x0 = xn.reshape(N, 1).astype(jnp.float32)

    grid_spec = pltpu.PrefetchScalarGridSpec(
        num_scalar_prefetch=0,
        grid=(1,),                                     # single invocation
        in_specs=[
            pl.BlockSpec((T * N, 1), lambda i: (0, 0)),       # indices
            pl.BlockSpec((NE, 3 * HP), lambda i: (0, 0)),     # folded emb table
            pl.BlockSpec((N, H), lambda i: (0, 0)),           # h0
            pl.BlockSpec((N, 1), lambda i: (0, 0)),           # x0
            pl.BlockSpec((HP, 4 * HP), lambda i: (0, 0)),     # W_big
            pl.BlockSpec((1, 4 * HP), lambda i: (0, 0)),      # c_big
            pl.BlockSpec((1, 3 * HP), lambda i: (0, 0)),      # wx
            pl.BlockSpec((1, HP), lambda i: (0, 0)),          # w_out
            pl.BlockSpec((1, 1), lambda i: (0, 0)),           # b_out
        ],
        out_specs=pl.BlockSpec((T * N, 1), lambda i: (0, 0)),  # one writeback
    )

    preds_flat = pl.pallas_call(
        functools.partial(decoder_kernel, forecast_len=T, hid_dim=H),
        out_shape=jax.ShapeDtypeStruct((T * N, 1), jnp.float32),
        grid_spec=grid_spec,
        compiler_params=pltpu.CompilerParams(
            dimension_semantics=("arbitrary",)),
    )(idx, packed["g_tab"], h0, x0, packed["w_big"], packed["c_big"],
      packed["wx"], packed["wout"], packed["bout"])

    # (T*N, 1) -> (T, B, C) -> (B, T, C, 1)  (PyTorch layout)
    return preds_flat.reshape(T, B, C).transpose(1, 0, 2)[..., None]


def decoder_reference(X, hn, xn, params, *, forecast_len):
    """Pure-JAX reference mirroring the PyTorch forward exactly."""
    B, C, H = hn.shape
    W_ih, W_hh = params["W_ih"], params["W_hh"]
    b_ih, b_hh = params["b_ih"], params["b_hh"]
    W_out, b_out = params["W_out"], params["b_out"]
    emb_table = params["emb_table"]

    h = hn.reshape(B * C, H)
    x = xn.reshape(B * C, 1)
    preds = []
    for i in range(forecast_len):
        idx = X[:, i, :, -1].astype(jnp.int32)                 # (B, C)
        emb = emb_table[idx].reshape(B * C, -1)                # (B*C, E)
        inp = jnp.concatenate([x, emb], axis=-1)               # (B*C, E+1)
        gi = inp @ W_ih.T + b_ih
        gh = h @ W_hh.T + b_hh
        r = jax.nn.sigmoid(gi[:, :H] + gh[:, :H])
        z = jax.nn.sigmoid(gi[:, H:2 * H] + gh[:, H:2 * H])
        n = jnp.tanh(gi[:, 2 * H:] + r * gh[:, 2 * H:])
        h = (1.0 - z) * n + z * h
        x = h @ W_out.T + b_out
        preds.append(x.reshape(B, C, 1))
    return jnp.stack(preds, axis=1)


if __name__ == "__main__":
    # Small, module-consistent shapes.
    in_dim = 4           # num_features (last feature = embedding index)
    emb_dim = 8
    hid_dim = 32
    city_num = 16
    num_embeddings = 16
    hist_len = 8
    forecast_len = 8
    batch_size = 2
    out_dim = 1

    key = jax.random.PRNGKey(0)
    keys = jax.random.split(key, 12)

    # Inputs.
    X = jax.random.normal(
        keys[0], (batch_size, hist_len + forecast_len, city_num, in_dim),
        dtype=jnp.float32)
    idx_feat = jax.random.randint(
        keys[1], (batch_size, hist_len + forecast_len, city_num),
        0, num_embeddings)
    X = X.at[..., -1].set(idx_feat.astype(jnp.float32))
    hn = jax.random.normal(keys[2], (batch_size, city_num, hid_dim), jnp.float32)
    xn = jax.random.normal(keys[3], (batch_size, city_num, out_dim), jnp.float32)

    # Deterministic parameter init (shapes from the module's __init__).
    in_sz = emb_dim + out_dim
    params = {
        "emb_table": 0.1 * jax.random.normal(keys[4], (num_embeddings, emb_dim), jnp.float32),
        "W_ih": 0.1 * jax.random.normal(keys[5], (3 * hid_dim, in_sz), jnp.float32),
        "W_hh": 0.1 * jax.random.normal(keys[6], (3 * hid_dim, hid_dim), jnp.float32),
        "b_ih": 0.1 * jax.random.normal(keys[7], (3 * hid_dim,), jnp.float32),
        "b_hh": 0.1 * jax.random.normal(keys[8], (3 * hid_dim,), jnp.float32),
        "W_out": 0.1 * jax.random.normal(keys[9], (out_dim, hid_dim), jnp.float32),
        "b_out": 0.1 * jax.random.normal(keys[10], (out_dim,), jnp.float32),
    }

    # One-time weight packing (hoisted out of the forward hot path).
    packed = jax.tree_util.tree_map(jax.block_until_ready,
                                    pack_decoder_params(params, hid_dim))

    preds = decoder_forward(
        X, hn, xn, packed,
        forecast_len=forecast_len, batch_size=batch_size, city_num=city_num,
        hid_dim=hid_dim)
    preds = jax.block_until_ready(preds)

    ref = decoder_reference(X, hn, xn, params, forecast_len=forecast_len)
    np.testing.assert_allclose(np.asarray(preds), np.asarray(ref),
                               rtol=1e-4, atol=1e-5)
    assert preds.shape == (batch_size, forecast_len, city_num, 1)

    print("KERNEL_OK")
</pallas_src>

<mosaic_0001>
module attributes {stable_mosaic.version = 11 : i64} {
  func.func @decoder_kernel(%arg0: i32, %arg1: memref<256x1xi32, #tpu.memory_space<vmem>>, %arg2: memref<16x384xf32, #tpu.memory_space<vmem>>, %arg3: memref<32x32xf32, #tpu.memory_space<vmem>>, %arg4: memref<32x1xf32, #tpu.memory_space<vmem>>, %arg5: memref<128x512xf32, #tpu.memory_space<vmem>>, %arg6: memref<1x512xf32, #tpu.memory_space<vmem>>, %arg7: memref<1x384xf32, #tpu.memory_space<vmem>>, %arg8: memref<1x128xf32, #tpu.memory_space<vmem>>, %arg9: memref<1x1xf32, #tpu.memory_space<vmem>>, %arg10: memref<256x1xf32, #tpu.memory_space<vmem>>) attributes {dimension_semantics = [#tpu.dimension_semantics<arbitrary>], iteration_bounds = array<i64: 1>, scalar_prefetch = 0 : i64, scratch_operands = 0 : i64, tpu.core_type = #tpu.core_type<tc>, window_params = [{pipeline_mode = #tpu.pipeline_mode<synchronous>, transform_indices = @transform_0, window_bounds = array<i64: 256, 1>}, {pipeline_mode = #tpu.pipeline_mode<synchronous>, transform_indices = @transform_1, window_bounds = array<i64: 16, 384>}, {pipeline_mode = #tpu.pipeline_mode<synchronous>, transform_indices = @transform_2, window_bounds = array<i64: 32, 32>}, {pipeline_mode = #tpu.pipeline_mode<synchronous>, transform_indices = @transform_3, window_bounds = array<i64: 32, 1>}, {pipeline_mode = #tpu.pipeline_mode<synchronous>, transform_indices = @transform_4, window_bounds = array<i64: 128, 512>}, {pipeline_mode = #tpu.pipeline_mode<synchronous>, transform_indices = @transform_5, window_bounds = array<i64: 1, 512>}, {pipeline_mode = #tpu.pipeline_mode<synchronous>, transform_indices = @transform_6, window_bounds = array<i64: 1, 384>}, {pipeline_mode = #tpu.pipeline_mode<synchronous>, transform_indices = @transform_7, window_bounds = array<i64: 1, 128>}, {pipeline_mode = #tpu.pipeline_mode<synchronous>, transform_indices = @transform_8, window_bounds = array<i64: 1, 1>}, {pipeline_mode = #tpu.pipeline_mode<synchronous>, transform_indices = @transform_9, window_bounds = array<i64: 256, 1>}]} {
    %c0 = arith.constant 0 : index
    %c0_0 = arith.constant 0 : index
    %0 = vector.load %arg1[%c0, %c0_0] : memref<256x1xi32, #tpu.memory_space<vmem>>, vector<256x1xi32>
    %1 = tpu.iota {dimensions = array<i32: 1>} : vector<256x16xi32>
    %2 = vector.broadcast %0 : vector<256x1xi32> to vector<256x16xi32>
    %3 = arith.cmpi eq, %2, %1 : vector<256x16xi32>
    %4 = arith.extui %3 : vector<256x16xi1> to vector<256x16xi32>
    %5 = arith.sitofp %4 : vector<256x16xi32> to vector<256x16xf32>
    %c0_1 = arith.constant 0 : index
    %c0_2 = arith.constant 0 : index
    %6 = vector.load %arg2[%c0_1, %c0_2] : memref<16x384xf32, #tpu.memory_space<vmem>>, vector<16x384xf32>
    %cst = arith.constant dense<0.000000e+00> : vector<256x384xf32>
    %7 = tpu.matmul %5, %6, %cst {dimension_numbers = #tpu.dot_dimension_numbers<[1], [0], [0], [1], [0, 0, 1, 1], [], []>} : vector<256x16xf32>, vector<16x384xf32>, vector<256x384xf32> -> vector<256x384xf32>
    %c0_3 = arith.constant 0 : index
    %c0_4 = arith.constant 0 : index
    %8 = vector.load %arg5[%c0_3, %c0_4] : memref<128x512xf32, #tpu.memory_space<vmem>>, vector<128x512xf32>
    %c0_5 = arith.constant 0 : index
    %c0_6 = arith.constant 0 : index
    %9 = vector.load %arg6[%c0_5, %c0_6] : memref<1x512xf32, #tpu.memory_space<vmem>>, vector<1x512xf32>
    %10 = vector.shape_cast %9 : vector<1x512xf32> to vector<1x512xf32>
    %11 = vector.broadcast %10 : vector<1x512xf32> to vector<32x512xf32>
    %c0_7 = arith.constant 0 : index
    %c0_8 = arith.constant 0 : index
    %12 = vector.load %arg8[%c0_7, %c0_8] : memref<1x128xf32, #tpu.memory_space<vmem>>, vector<1x128xf32>
    %c0_9 = arith.constant 0 : index
    %c0_10 = arith.constant 0 : index
    %13 = vector.load %arg9[%c0_9, %c0_10] : memref<1x1xf32, #tpu.memory_space<vmem>>, vector<1x1xf32>
    %c0_11 = arith.constant 0 : index
    %c0_12 = arith.constant 0 : index
    %14 = vector.load %arg7[%c0_11, %c0_12] : memref<1x384xf32, #tpu.memory_space<vmem>>, vector<1x384xf32>
    %c0_13 = arith.constant 0 : index
    %c0_14 = arith.constant 0 : index
    %15 = vector.load %arg3[%c0_13, %c0_14] : memref<32x32xf32, #tpu.memory_space<vmem>>, vector<32x32xf32>
    %cst_15 = arith.constant 0.000000e+00 : f32
    %16 = vector.broadcast %cst_15 : f32 to vector<32x96xf32>
    %17 = tpu.concatenate %15, %16 in 1 : vector<32x32xf32>, vector<32x96xf32> -> vector<32x128xf32>
    %c0_16 = arith.constant 0 : index
    %c0_17 = arith.constant 0 : index
    %18 = vector.load %arg4[%c0_16, %c0_17] : memref<32x1xf32, #tpu.memory_space<vmem>>, vector<32x1xf32>
    %19 = vector.broadcast %12 : vector<1x128xf32> to vector<32x128xf32>
    %20 = arith.mulf %17, %19 : vector<32x128xf32>
    %cst_18 = arith.constant dense<0.000000e+00> : vector<32xf32>
    %21 = vector.multi_reduction <add>, %20, %cst_18 [1] : vector<32x128xf32> to vector<32xf32>
    %22 = vector.shape_cast %21 : vector<32xf32> to vector<32x1xf32>
    %23 = vector.broadcast %13 : vector<1x1xf32> to vector<32x1xf32>
    %24 = arith.addf %22, %23 : vector<32x1xf32>
    %25 = arith.subf %18, %24 : vector<32x1xf32>
    %26 = vector.broadcast %25 : vector<32x1xf32> to vector<32x384xf32>
    %27 = vector.broadcast %14 : vector<1x384xf32> to vector<32x384xf32>
    %28 = arith.mulf %26, %27 : vector<32x384xf32>
    %cst_19 = arith.constant dense<0.000000e+00> : vector<32x512xf32>
    %29 = tpu.matmul %17, %8, %cst_19 {dimension_numbers = #tpu.dot_dimension_numbers<[1], [0], [0], [1], [0, 0, 1, 1], [], []>} : vector<32x128xf32>, vector<128x512xf32>, vector<32x512xf32> -> vector<32x512xf32>
    %30 = arith.addf %29, %11 : vector<32x512xf32>
    %31 = vector.extract_strided_slice %7 {offsets = [0, 0], sizes = [32, 384], strides = [1, 1]} : vector<256x384xf32> to vector<32x384xf32>
    %32 = arith.addf %31, %28 : vector<32x384xf32>
    %33 = vector.extract_strided_slice %32 {offsets = [0, 0], sizes = [32, 128], strides = [1, 1]} : vector<32x384xf32> to vector<32x128xf32>
    %34 = vector.extract_strided_slice %30 {offsets = [0, 0], sizes = [32, 128], strides = [1, 1]} : vector<32x512xf32> to vector<32x128xf32>
    %35 = arith.addf %33, %34 : vector<32x128xf32>
    %36 = vector.extract_strided_slice %32 {offsets = [0, 128], sizes = [32, 128], strides = [1, 1]} : vector<32x384xf32> to vector<32x128xf32>
    %37 = vector.extract_strided_slice %30 {offsets = [0, 128], sizes = [32, 128], strides = [1, 1]} : vector<32x512xf32> to vector<32x128xf32>
    %38 = arith.addf %36, %37 : vector<32x128xf32>
    %39 = vector.extract_strided_slice %30 {offsets = [0, 256], sizes = [32, 128], strides = [1, 1]} : vector<32x512xf32> to vector<32x128xf32>
    %40 = vector.extract_strided_slice %32 {offsets = [0, 256], sizes = [32, 128], strides = [1, 1]} : vector<32x384xf32> to vector<32x128xf32>
    %41 = vector.extract_strided_slice %30 {offsets = [0, 384], sizes = [32, 128], strides = [1, 1]} : vector<32x512xf32> to vector<32x128xf32>
    %42 = arith.addf %40, %41 : vector<32x128xf32>
    %43 = arith.negf %35 : vector<32x128xf32>
    %44 = math.exp %43 : vector<32x128xf32>
    %cst_20 = arith.constant 1.000000e+00 : f32
    %45 = vector.broadcast %cst_20 : f32 to vector<32x128xf32>
    %46 = arith.addf %45, %44 : vector<32x128xf32>
    %47 = arith.divf %45, %46 : vector<32x128xf32>
    %48 = arith.negf %38 : vector<32x128xf32>
    %49 = math.exp %48 : vector<32x128xf32>
    %cst_21 = arith.constant 1.000000e+00 : f32
    %50 = vector.broadcast %cst_21 : f32 to vector<32x128xf32>
    %51 = arith.addf %50, %49 : vector<32x128xf32>
    %52 = arith.divf %50, %51 : vector<32x128xf32>
    %53 = arith.mulf %47, %39 : vector<32x128xf32>
    %54 = arith.addf %42, %53 : vector<32x128xf32>
    %55 = math.tanh %54 : vector<32x128xf32>
    %cst_22 = arith.constant 1.000000e+00 : f32
    %56 = vector.broadcast %cst_22 : f32 to vector<32x128xf32>
    %57 = arith.subf %56, %52 : vector<32x128xf32>
    %58 = arith.mulf %57, %55 : vector<32x128xf32>
    %59 = arith.mulf %52, %17 : vector<32x128xf32>
    %60 = arith.addf %58, %59 : vector<32x128xf32>
    %cst_23 = arith.constant dense<0.000000e+00> : vector<32x512xf32>
    %61 = tpu.matmul %60, %8, %cst_23 {dimension_numbers = #tpu.dot_dimension_numbers<[1], [0], [0], [1], [0, 0, 1, 1], [], []>} : vector<32x128xf32>, vector<128x512xf32>, vector<32x512xf32> -> vector<32x512xf32>
    %62 = arith.addf %61, %11 : vector<32x512xf32>
    %63 = vector.extract_strided_slice %7 {offsets = [32, 0], sizes = [32, 384], strides = [1, 1]} : vector<256x384xf32> to vector<32x384xf32>
    %64 = vector.extract_strided_slice %63 {offsets = [0, 0], sizes = [32, 128], strides = [1, 1]} : vector<32x384xf32> to vector<32x128xf32>
    %65 = vector.extract_strided_slice %62 {offsets = [0, 0], sizes = [32, 128], strides = [1, 1]} : vector<32x512xf32> to vector<32x128xf32>
    %66 = arith.addf %64, %65 : vector<32x128xf32>
    %67 = vector.extract_strided_slice %63 {offsets = [0, 128], sizes = [32, 128], strides = [1, 1]} : vector<32x384xf32> to vector<32x128xf32>
    %68 = vector.extract_strided_slice %62 {offsets = [0, 128], sizes = [32, 128], strides = [1, 1]} : vector<32x512xf32> to vector<32x128xf32>
    %69 = arith.addf %67, %68 : vector<32x128xf32>
    %70 = vector.extract_strided_slice %62 {offsets = [0, 256], sizes = [32, 128], strides = [1, 1]} : vector<32x512xf32> to vector<32x128xf32>
    %71 = vector.extract_strided_slice %63 {offsets = [0, 256], sizes = [32, 128], strides = [1, 1]} : vector<32x384xf32> to vector<32x128xf32>
    %72 = vector.extract_strided_slice %62 {offsets = [0, 384], sizes = [32, 128], strides = [1, 1]} : vector<32x512xf32> to vector<32x128xf32>
    %73 = arith.addf %71, %72 : vector<32x128xf32>
    %74 = arith.negf %66 : vector<32x128xf32>
    %75 = math.exp %74 : vector<32x128xf32>
    %cst_24 = arith.constant 1.000000e+00 : f32
    %76 = vector.broadcast %cst_24 : f32 to vector<32x128xf32>
    %77 = arith.addf %76, %75 : vector<32x128xf32>
    %78 = arith.divf %76, %77 : vector<32x128xf32>
    %79 = arith.negf %69 : vector<32x128xf32>
    %80 = math.exp %79 : vector<32x128xf32>
    %cst_25 = arith.constant 1.000000e+00 : f32
    %81 = vector.broadcast %cst_25 : f32 to vector<32x128xf32>
    %82 = arith.addf %81, %80 : vector<32x128xf32>
    %83 = arith.divf %81, %82 : vector<32x128xf32>
    %84 = arith.mulf %78, %70 : vector<32x128xf32>
    %85 = arith.addf %73, %84 : vector<32x128xf32>
    %86 = math.tanh %85 : vector<32x128xf32>
    %cst_26 = arith.constant 1.000000e+00 : f32
    %87 = vector.broadcast %cst_26 : f32 to vector<32x128xf32>
    %88 = arith.subf %87, %83 : vector<32x128xf32>
    %89 = arith.mulf %88, %86 : vector<32x128xf32>
    %90 = arith.mulf %83, %60 : vector<32x128xf32>
    %91 = arith.addf %89, %90 : vector<32x128xf32>
    %cst_27 = arith.constant dense<0.000000e+00> : vector<32x512xf32>
    %92 = tpu.matmul %91, %8, %cst_27 {dimension_numbers = #tpu.dot_dimension_numbers<[1], [0], [0], [1], [0, 0, 1, 1], [], []>} : vector<32x128xf32>, vector<128x512xf32>, vector<32x512xf32> -> vector<32x512xf32>
    %93 = arith.addf %92, %11 : vector<32x512xf32>
    %94 = vector.extract_strided_slice %7 {offsets = [64, 0], sizes = [32, 384], strides = [1, 1]} : vector<256x384xf32> to vector<32x384xf32>
    %95 = vector.extract_strided_slice %94 {offsets = [0, 0], sizes = [32, 128], strides = [1, 1]} : vector<32x384xf32> to vector<32x128xf32>
    %96 = vector.extract_strided_slice %93 {offsets = [0, 0], sizes = [32, 128], strides = [1, 1]} : vector<32x512xf32> to vector<32x128xf32>
    %97 = arith.addf %95, %96 : vector<32x128xf32>
    %98 = vector.extract_strided_slice %94 {offsets = [0, 128], sizes = [32, 128], strides = [1, 1]} : vector<32x384xf32> to vector<32x128xf32>
    %99 = vector.extract_strided_slice %93 {offsets = [0, 128], sizes = [32, 128], strides = [1, 1]} : vector<32x512xf32> to vector<32x128xf32>
    %100 = arith.addf %98, %99 : vector<32x128xf32>
    %101 = vector.extract_strided_slice %93 {offsets = [0, 256], sizes = [32, 128], strides = [1, 1]} : vector<32x512xf32> to vector<32x128xf32>
    %102 = vector.extract_strided_slice %94 {offsets = [0, 256], sizes = [32, 128], strides = [1, 1]} : vector<32x384xf32> to vector<32x128xf32>
    %103 = vector.extract_strided_slice %93 {offsets = [0, 384], sizes = [32, 128], strides = [1, 1]} : vector<32x512xf32> to vector<32x128xf32>
    %104 = arith.addf %102, %103 : vector<32x128xf32>
    %105 = arith.negf %97 : vector<32x128xf32>
    %106 = math.exp %105 : vector<32x128xf32>
    %cst_28 = arith.constant 1.000000e+00 : f32
    %107 = vector.broadcast %cst_28 : f32 to vector<32x128xf32>
    %108 = arith.addf %107, %106 : vector<32x128xf32>
    %109 = arith.divf %107, %108 : vector<32x128xf32>
    %110 = arith.negf %100 : vector<32x128xf32>
    %111 = math.exp %110 : vector<32x128xf32>
    %cst_29 = arith.constant 1.000000e+00 : f32
    %112 = vector.broadcast %cst_29 : f32 to vector<32x128xf32>
    %113 = arith.addf %112, %111 : vector<32x128xf32>
    %114 = arith.divf %112, %113 : vector<32x128xf32>
    %115 = arith.mulf %109, %101 : vector<32x128xf32>
    %116 = arith.addf %104, %115 : vector<32x128xf32>
    %117 = math.tanh %116 : vector<32x128xf32>
    %cst_30 = arith.constant 1.000000e+00 : f32
    %118 = vector.broadcast %cst_30 : f32 to vector<32x128xf32>
    %119 = arith.subf %118, %114 : vector<32x128xf32>
    %120 = arith.mulf %119, %117 : vector<32x128xf32>
    %121 = arith.mulf %114, %91 : vector<32x128xf32>
    %122 = arith.addf %120, %121 : vector<32x128xf32>
    %cst_31 = arith.constant dense<0.000000e+00> : vector<32x512xf32>
    %123 = tpu.matmul %122, %8, %cst_31 {dimension_numbers = #tpu.dot_dimension_numbers<[1], [0], [0], [1], [0, 0, 1, 1], [], []>} : vector<32x128xf32>, vector<128x512xf32>, vector<32x512xf32> -> vector<32x512xf32>
    %124 = arith.addf %123, %11 : vector<32x512xf32>
    %125 = vector.extract_strided_slice %7 {offsets = [96, 0], sizes = [32, 384], strides = [1, 1]} : vector<256x384xf32> to vector<32x384xf32>
    %126 = vector.extract_strided_slice %125 {offsets = [0, 0], sizes = [32, 128], strides = [1, 1]} : vector<32x384xf32> to vector<32x128xf32>
    %127 = vector.extract_strided_slice %124 {offsets = [0, 0], sizes = [32, 128], strides = [1, 1]} : vector<32x512xf32> to vector<32x128xf32>
    %128 = arith.addf %126, %127 : vector<32x128xf32>
    %129 = vector.extract_strided_slice %125 {offsets = [0, 128], sizes = [32, 128], strides = [1, 1]} : vector<32x384xf32> to vector<32x128xf32>
    %130 = vector.extract_strided_slice %124 {offsets = [0, 128], sizes = [32, 128], strides = [1, 1]} : vector<32x512xf32> to vector<32x128xf32>
    %131 = arith.addf %129, %130 : vector<32x128xf32>
    %132 = vector.extract_strided_slice %124 {offsets = [0, 256], sizes = [32, 128], strides = [1, 1]} : vector<32x512xf32> to vector<32x128xf32>
    %133 = vector.extract_strided_slice %125 {offsets = [0, 256], sizes = [32, 128], strides = [1, 1]} : vector<32x384xf32> to vector<32x128xf32>
    %134 = vector.extract_strided_slice %124 {offsets = [0, 384], sizes = [32, 128], strides = [1, 1]} : vector<32x512xf32> to vector<32x128xf32>
    %135 = arith.addf %133, %134 : vector<32x128xf32>
    %136 = arith.negf %128 : vector<32x128xf32>
    %137 = math.exp %136 : vector<32x128xf32>
    %cst_32 = arith.constant 1.000000e+00 : f32
    %138 = vector.broadcast %cst_32 : f32 to vector<32x128xf32>
    %139 = arith.addf %138, %137 : vector<32x128xf32>
    %140 = arith.divf %138, %139 : vector<32x128xf32>
    %141 = arith.negf %131 : vector<32x128xf32>
    %142 = math.exp %141 : vector<32x128xf32>
    %cst_33 = arith.constant 1.000000e+00 : f32
    %143 = vector.broadcast %cst_33 : f32 to vector<32x128xf32>
    %144 = arith.addf %143, %142 : vector<32x128xf32>
    %145 = arith.divf %143, %144 : vector<32x128xf32>
    %146 = arith.mulf %140, %132 : vector<32x128xf32>
    %147 = arith.addf %135, %146 : vector<32x128xf32>
    %148 = math.tanh %147 : vector<32x128xf32>
    %cst_34 = arith.constant 1.000000e+00 : f32
    %149 = vector.broadcast %cst_34 : f32 to vector<32x128xf32>
    %150 = arith.subf %149, %145 : vector<32x128xf32>
    %151 = arith.mulf %150, %148 : vector<32x128xf32>
    %152 = arith.mulf %145, %122 : vector<32x128xf32>
    %153 = arith.addf %151, %152 : vector<32x128xf32>
    %cst_35 = arith.constant dense<0.000000e+00> : vector<32x512xf32>
    %154 = tpu.matmul %153, %8, %cst_35 {dimension_numbers = #tpu.dot_dimension_numbers<[1], [0], [0], [1], [0, 0, 1, 1], [], []>} : vector<32x128xf32>, vector<128x512xf32>, vector<32x512xf32> -> vector<32x512xf32>
    %155 = arith.addf %154, %11 : vector<32x512xf32>
    %156 = vector.extract_strided_slice %7 {offsets = [128, 0], sizes = [32, 384], strides = [1, 1]} : vector<256x384xf32> to vector<32x384xf32>
    %157 = vector.extract_strided_slice %156 {offsets = [0, 0], sizes = [32, 128], strides = [1, 1]} : vector<32x384xf32> to vector<32x128xf32>
    %158 = vector.extract_strided_slice %155 {offsets = [0, 0], sizes = [32, 128], strides = [1, 1]} : vector<32x512xf32> to vector<32x128xf32>
    %159 = arith.addf %157, %158 : vector<32x128xf32>
    %160 = vector.extract_strided_slice %156 {offsets = [0, 128], sizes = [32, 128], strides = [1, 1]} : vector<32x384xf32> to vector<32x128xf32>
    %161 = vector.extract_strided_slice %155 {offsets = [0, 128], sizes = [32, 128], strides = [1, 1]} : vector<32x512xf32> to vector<32x128xf32>
    %162 = arith.addf %160, %161 : vector<32x128xf32>
    %163 = vector.extract_strided_slice %155 {offsets = [0, 256], sizes = [32, 128], strides = [1, 1]} : vector<32x512xf32> to vector<32x128xf32>
    %164 = vector.extract_strided_slice %156 {offsets = [0, 256], sizes = [32, 128], strides = [1, 1]} : vector<32x384xf32> to vector<32x128xf32>
    %165 = vector.extract_strided_slice %155 {offsets = [0, 384], sizes = [32, 128], strides = [1, 1]} : vector<32x512xf32> to vector<32x128xf32>
    %166 = arith.addf %164, %165 : vector<32x128xf32>
    %167 = arith.negf %159 : vector<32x128xf32>
    %168 = math.exp %167 : vector<32x128xf32>
    %cst_36 = arith.constant 1.000000e+00 : f32
    %169 = vector.broadcast %cst_36 : f32 to vector<32x128xf32>
    %170 = arith.addf %169, %168 : vector<32x128xf32>
    %171 = arith.divf %169, %170 : vector<32x128xf32>
    %172 = arith.negf %162 : vector<32x128xf32>
    %173 = math.exp %172 : vector<32x128xf32>
    %cst_37 = arith.constant 1.000000e+00 : f32
    %174 = vector.broadcast %cst_37 : f32 to vector<32x128xf32>
    %175 = arith.addf %174, %173 : vector<32x128xf32>
    %176 = arith.divf %174, %175 : vector<32x128xf32>
    %177 = arith.mulf %171, %163 : vector<32x128xf32>
    %178 = arith.addf %166, %177 : vector<32x128xf32>
    %179 = math.tanh %178 : vector<32x128xf32>
    %cst_38 = arith.constant 1.000000e+00 : f32
    %180 = vector.broadcast %cst_38 : f32 to vector<32x128xf32>
    %181 = arith.subf %180, %176 : vector<32x128xf32>
    %182 = arith.mulf %181, %179 : vector<32x128xf32>
    %183 = arith.mulf %176, %153 : vector<32x128xf32>
    %184 = arith.addf %182, %183 : vector<32x128xf32>
    %cst_39 = arith.constant dense<0.000000e+00> : vector<32x512xf32>
    %185 = tpu.matmul %184, %8, %cst_39 {dimension_numbers = #tpu.dot_dimension_numbers<[1], [0], [0], [1], [0, 0, 1, 1], [], []>} : vector<32x128xf32>, vector<128x512xf32>, vector<32x512xf32> -> vector<32x512xf32>
    %186 = arith.addf %185, %11 : vector<32x512xf32>
    %187 = vector.extract_strided_slice %7 {offsets = [160, 0], sizes = [32, 384], strides = [1, 1]} : vector<256x384xf32> to vector<32x384xf32>
    %188 = vector.extract_strided_slice %187 {offsets = [0, 0], sizes = [32, 128], strides = [1, 1]} : vector<32x384xf32> to vector<32x128xf32>
    %189 = vector.extract_strided_slice %186 {offsets = [0, 0], sizes = [32, 128], strides = [1, 1]} : vector<32x512xf32> to vector<32x128xf32>
    %190 = arith.addf %188, %189 : vector<32x128xf32>
    %191 = vector.extract_strided_slice %187 {offsets = [0, 128], sizes = [32, 128], strides = [1, 1]} : vector<32x384xf32> to vector<32x128xf32>
    %192 = vector.extract_strided_slice %186 {offsets = [0, 128], sizes = [32, 128], strides = [1, 1]} : vector<32x512xf32> to vector<32x128xf32>
    %193 = arith.addf %191, %192 : vector<32x128xf32>
    %194 = vector.extract_strided_slice %186 {offsets = [0, 256], sizes = [32, 128], strides = [1, 1]} : vector<32x512xf32> to vector<32x128xf32>
    %195 = vector.extract_strided_slice %187 {offsets = [0, 256], sizes = [32, 128], strides = [1, 1]} : vector<32x384xf32> to vector<32x128xf32>
    %196 = vector.extract_strided_slice %186 {offsets = [0, 384], sizes = [32, 128], strides = [1, 1]} : vector<32x512xf32> to vector<32x128xf32>
    %197 = arith.addf %195, %196 : vector<32x128xf32>
    %198 = arith.negf %190 : vector<32x128xf32>
    %199 = math.exp %198 : vector<32x128xf32>
    %cst_40 = arith.constant 1.000000e+00 : f32
    %200 = vector.broadcast %cst_40 : f32 to vector<32x128xf32>
    %201 = arith.addf %200, %199 : vector<32x128xf32>
    %202 = arith.divf %200, %201 : vector<32x128xf32>
    %203 = arith.negf %193 : vector<32x128xf32>
    %204 = math.exp %203 : vector<32x128xf32>
    %cst_41 = arith.constant 1.000000e+00 : f32
    %205 = vector.broadcast %cst_41 : f32 to vector<32x128xf32>
    %206 = arith.addf %205, %204 : vector<32x128xf32>
    %207 = arith.divf %205, %206 : vector<32x128xf32>
    %208 = arith.mulf %202, %194 : vector<32x128xf32>
    %209 = arith.addf %197, %208 : vector<32x128xf32>
    %210 = math.tanh %209 : vector<32x128xf32>
    %cst_42 = arith.constant 1.000000e+00 : f32
    %211 = vector.broadcast %cst_42 : f32 to vector<32x128xf32>
    %212 = arith.subf %211, %207 : vector<32x128xf32>
    %213 = arith.mulf %212, %210 : vector<32x128xf32>
    %214 = arith.mulf %207, %184 : vector<32x128xf32>
    %215 = arith.addf %213, %214 : vector<32x128xf32>
    %cst_43 = arith.constant dense<0.000000e+00> : vector<32x512xf32>
    %216 = tpu.matmul %215, %8, %cst_43 {dimension_numbers = #tpu.dot_dimension_numbers<[1], [0], [0], [1], [0, 0, 1, 1], [], []>} : vector<32x128xf32>, vector<128x512xf32>, vector<32x512xf32> -> vector<32x512xf32>
    %217 = arith.addf %216, %11 : vector<32x512xf32>
    %218 = vector.extract_strided_slice %7 {offsets = [192, 0], sizes = [32, 384], strides = [1, 1]} : vector<256x384xf32> to vector<32x384xf32>
    %219 = vector.extract_strided_slice %218 {offsets = [0, 0], sizes = [32, 128], strides = [1, 1]} : vector<32x384xf32> to vector<32x128xf32>
    %220 = vector.extract_strided_slice %217 {offsets = [0, 0], sizes = [32, 128], strides = [1, 1]} : vector<32x512xf32> to vector<32x128xf32>
    %221 = arith.addf %219, %220 : vector<32x128xf32>
    %222 = vector.extract_strided_slice %218 {offsets = [0, 128], sizes = [32, 128], strides = [1, 1]} : vector<32x384xf32> to vector<32x128xf32>
    %223 = vector.extract_strided_slice %217 {offsets = [0, 128], sizes = [32, 128], strides = [1, 1]} : vector<32x512xf32> to vector<32x128xf32>
    %224 = arith.addf %222, %223 : vector<32x128xf32>
    %225 = vector.extract_strided_slice %217 {offsets = [0, 256], sizes = [32, 128], strides = [1, 1]} : vector<32x512xf32> to vector<32x128xf32>
    %226 = vector.extract_strided_slice %218 {offsets = [0, 256], sizes = [32, 128], strides = [1, 1]} : vector<32x384xf32> to vector<32x128xf32>
    %227 = vector.extract_strided_slice %217 {offsets = [0, 384], sizes = [32, 128], strides = [1, 1]} : vector<32x512xf32> to vector<32x128xf32>
    %228 = arith.addf %226, %227 : vector<32x128xf32>
    %229 = arith.negf %221 : vector<32x128xf32>
    %230 = math.exp %229 : vector<32x128xf32>
    %cst_44 = arith.constant 1.000000e+00 : f32
    %231 = vector.broadcast %cst_44 : f32 to vector<32x128xf32>
    %232 = arith.addf %231, %230 : vector<32x128xf32>
    %233 = arith.divf %231, %232 : vector<32x128xf32>
    %234 = arith.negf %224 : vector<32x128xf32>
    %235 = math.exp %234 : vector<32x128xf32>
    %cst_45 = arith.constant 1.000000e+00 : f32
    %236 = vector.broadcast %cst_45 : f32 to vector<32x128xf32>
    %237 = arith.addf %236, %235 : vector<32x128xf32>
    %238 = arith.divf %236, %237 : vector<32x128xf32>
    %239 = arith.mulf %233, %225 : vector<32x128xf32>
    %240 = arith.addf %228, %239 : vector<32x128xf32>
    %241 = math.tanh %240 : vector<32x128xf32>
    %cst_46 = arith.constant 1.000000e+00 : f32
    %242 = vector.broadcast %cst_46 : f32 to vector<32x128xf32>
    %243 = arith.subf %242, %238 : vector<32x128xf32>
    %244 = arith.mulf %243, %241 : vector<32x128xf32>
    %245 = arith.mulf %238, %215 : vector<32x128xf32>
    %246 = arith.addf %244, %245 : vector<32x128xf32>
    %cst_47 = arith.constant dense<0.000000e+00> : vector<32x512xf32>
    %247 = tpu.matmul %246, %8, %cst_47 {dimension_numbers = #tpu.dot_dimension_numbers<[1], [0], [0], [1], [0, 0, 1, 1], [], []>} : vector<32x128xf32>, vector<128x512xf32>, vector<32x512xf32> -> vector<32x512xf32>
    %248 = arith.addf %247, %11 : vector<32x512xf32>
    %249 = vector.extract_strided_slice %7 {offsets = [224, 0], sizes = [32, 384], strides = [1, 1]} : vector<256x384xf32> to vector<32x384xf32>
    %250 = vector.extract_strided_slice %249 {offsets = [0, 0], sizes = [32, 128], strides = [1, 1]} : vector<32x384xf32> to vector<32x128xf32>
    %251 = vector.extract_strided_slice %248 {offsets = [0, 0], sizes = [32, 128], strides = [1, 1]} : vector<32x512xf32> to vector<32x128xf32>
    %252 = arith.addf %250, %251 : vector<32x128xf32>
    %253 = vector.extract_strided_slice %249 {offsets = [0, 128], sizes = [32, 128], strides = [1, 1]} : vector<32x384xf32> to vector<32x128xf32>
    %254 = vector.extract_strided_slice %248 {offsets = [0, 128], sizes = [32, 128], strides = [1, 1]} : vector<32x512xf32> to vector<32x128xf32>
    %255 = arith.addf %253, %254 : vector<32x128xf32>
    %256 = vector.extract_strided_slice %248 {offsets = [0, 256], sizes = [32, 128], strides = [1, 1]} : vector<32x512xf32> to vector<32x128xf32>
    %257 = vector.extract_strided_slice %249 {offsets = [0, 256], sizes = [32, 128], strides = [1, 1]} : vector<32x384xf32> to vector<32x128xf32>
    %258 = vector.extract_strided_slice %248 {offsets = [0, 384], sizes = [32, 128], strides = [1, 1]} : vector<32x512xf32> to vector<32x128xf32>
    %259 = arith.addf %257, %258 : vector<32x128xf32>
    %260 = arith.negf %252 : vector<32x128xf32>
    %261 = math.exp %260 : vector<32x128xf32>
    %cst_48 = arith.constant 1.000000e+00 : f32
    %262 = vector.broadcast %cst_48 : f32 to vector<32x128xf32>
    %263 = arith.addf %262, %261 : vector<32x128xf32>
    %264 = arith.divf %262, %263 : vector<32x128xf32>
    %265 = arith.negf %255 : vector<32x128xf32>
    %266 = math.exp %265 : vector<32x128xf32>
    %cst_49 = arith.constant 1.000000e+00 : f32
    %267 = vector.broadcast %cst_49 : f32 to vector<32x128xf32>
    %268 = arith.addf %267, %266 : vector<32x128xf32>
    %269 = arith.divf %267, %268 : vector<32x128xf32>
    %270 = arith.mulf %264, %256 : vector<32x128xf32>
    %271 = arith.addf %259, %270 : vector<32x128xf32>
    %272 = math.tanh %271 : vector<32x128xf32>
    %cst_50 = arith.constant 1.000000e+00 : f32
    %273 = vector.broadcast %cst_50 : f32 to vector<32x128xf32>
    %274 = arith.subf %273, %269 : vector<32x128xf32>
    %275 = arith.mulf %274, %272 : vector<32x128xf32>
    %276 = arith.mulf %269, %246 : vector<32x128xf32>
    %277 = arith.addf %275, %276 : vector<32x128xf32>
    %278 = tpu.concatenate %60, %91, %122, %153, %184, %215, %246, %277 in 0 : vector<32x128xf32>, vector<32x128xf32>, vector<32x128xf32>, vector<32x128xf32>, vector<32x128xf32>, vector<32x128xf32>, vector<32x128xf32>, vector<32x128xf32> -> vector<256x128xf32>
    %279 = vector.broadcast %12 : vector<1x128xf32> to vector<256x128xf32>
    %280 = arith.mulf %278, %279 : vector<256x128xf32>
    %cst_51 = arith.constant dense<0.000000e+00> : vector<256xf32>
    %281 = vector.multi_reduction <add>, %280, %cst_51 [1] : vector<256x128xf32> to vector<256xf32>
    %282 = vector.shape_cast %281 : vector<256xf32> to vector<256x1xf32>
    %283 = vector.broadcast %13 : vector<1x1xf32> to vector<256x1xf32>
    %284 = arith.addf %282, %283 : vector<256x1xf32>
    %c0_52 = arith.constant 0 : index
    %c0_53 = arith.constant 0 : index
    %285 = vector.load %arg10[%c0_52, %c0_53] : memref<256x1xf32, #tpu.memory_space<vmem>>, vector<256x1xf32>
    tpu.vector_store %arg10[%c0_52, %c0_53], %284 {strides = array<i32>} : memref<256x1xf32, #tpu.memory_space<vmem>>, vector<256x1xf32>,
    return
  }
  func.func @transform_0(%arg0: i32) -> (i32, i32) {
    %c0_i32 = arith.constant 0 : i32
    %c0_i32_0 = arith.constant 0 : i32
    %c0_i32_1 = arith.constant 0 : i32
    return %c0_i32, %c0_i32_0 : i32, i32
  }
  func.func @transform_1(%arg0: i32) -> (i32, i32) {
    %c0_i32 = arith.constant 0 : i32
    %c0_i32_0 = arith.constant 0 : i32
    %c0_i32_1 = arith.constant 0 : i32
    return %c0_i32, %c0_i32_0 : i32, i32
  }
  func.func @transform_2(%arg0: i32) -> (i32, i32) {
    %c0_i32 = arith.constant 0 : i32
    %c0_i32_0 = arith.constant 0 : i32
    %c0_i32_1 = arith.constant 0 : i32
    return %c0_i32, %c0_i32_0 : i32, i32
  }
  func.func @transform_3(%arg0: i32) -> (i32, i32) {
    %c0_i32 = arith.constant 0 : i32
    %c0_i32_0 = arith.constant 0 : i32
    %c0_i32_1 = arith.constant 0 : i32
    return %c0_i32, %c0_i32_0 : i32, i32
  }
  func.func @transform_4(%arg0: i32) -> (i32, i32) {
    %c0_i32 = arith.constant 0 : i32
    %c0_i32_0 = arith.constant 0 : i32
    %c0_i32_1 = arith.constant 0 : i32
    return %c0_i32, %c0_i32_0 : i32, i32
  }
  func.func @transform_5(%arg0: i32) -> (i32, i32) {
    %c0_i32 = arith.constant 0 : i32
    %c0_i32_0 = arith.constant 0 : i32
    %c0_i32_1 = arith.constant 0 : i32
    return %c0_i32, %c0_i32_0 : i32, i32
  }
  func.func @transform_6(%arg0: i32) -> (i32, i32) {
    %c0_i32 = arith.constant 0 : i32
    %c0_i32_0 = arith.constant 0 : i32
    %c0_i32_1 = arith.constant 0 : i32
    return %c0_i32, %c0_i32_0 : i32, i32
  }
  func.func @transform_7(%arg0: i32) -> (i32, i32) {
    %c0_i32 = arith.constant 0 : i32
    %c0_i32_0 = arith.constant 0 : i32
    %c0_i32_1 = arith.constant 0 : i32
    return %c0_i32, %c0_i32_0 : i32, i32
  }
  func.func @transform_8(%arg0: i32) -> (i32, i32) {
    %c0_i32 = arith.constant 0 : i32
    %c0_i32_0 = arith.constant 0 : i32
    %c0_i32_1 = arith.constant 0 : i32
    return %c0_i32, %c0_i32_0 : i32, i32
  }
  func.func @transform_9(%arg0: i32) -> (i32, i32) {
    %c0_i32 = arith.constant 0 : i32
    %c0_i32_0 = arith.constant 0 : i32
    %c0_i32_1 = arith.constant 0 : i32
    return %c0_i32, %c0_i32_0 : i32, i32
  }
}

</mosaic_0001>

<bundles_post_ra>
// kernel: decoder_forward.1
= control target key start
LH: loop header
LB: loop body
LE: loop exit
PB: predicated region body
PF: predicated region fallthrough
CT: control target
= control target key end

     0   :  { %s6235_s0 = inlined_call_operand.vmem [shape: s32[256,1], index: 0, kind: input, shape index: {}]   ;;  %s6236_s1 = inlined_call_operand.vmem [shape: f32[16,384], index: 1, kind: input, shape index: {}]   ;;  %s6237_s2 = inlined_call_operand.vmem [shape: f32[32,32], index: 2, kind: input, shape index: {}]   ;;  %s6238_s3 = inlined_call_operand.vmem [shape: f32[32,1], index: 3, kind: input, shape index: {}]   ;;  %s6239_s4 = inlined_call_operand.hbm [shape: f32[128,512], index: 4, kind: input, shape index: {}]   ;;  %s6240_s5 = inlined_call_operand.vmem [shape: f32[1,512], index: 5, kind: input, shape index: {}]   ;;  %s6241_s6 = inlined_call_operand.vmem [shape: f32[1,384], index: 6, kind: input, shape index: {}]   ;;  %s6242_s7 = inlined_call_operand.vmem [shape: f32[1,128], index: 7, kind: input, shape index: {}]   ;;  %s6243_s8 = inlined_call_operand.<no memory space> [shape: f32[1,1], index: 8, kind: input, shape index: {}]   ;;  %s6244_s9 = inlined_call_operand.vmem [shape: f32[256,1], index: 9, kind: output, shape index: {}]  }
   0x1   :  { %v14_v0 = vstv %s6243_s8 }
   0x2   :  { %15 = vst [vmem:[#allocation2] sm:$0x1] %v14_v0 }
   0x3   :  { %16 = vsyncpa [#allocation4], 0  ;;  %s4617_s11 = smov [#allocation3]   ;;  %s4593_s15 = scalar_lea.hbm %s6239_s4, 8192 }
   0x4   :  { %s30_s12 = sshll.u32 %s4617_s11, 4  ;;  %p4594_p0 = scmp.ne.s32.totalorder %s6239_s4, %s4593_s15  ;;  %s31_s12 = int_to_ptr.vmem [resolvable:$true] %s30_s12 }
   0x5   :  { %p4597_p1 = scmp.lt.u32.totalorder %s4593_s15, %s6239_s4 }
   0x7   :  { %p4599_p2 = pnand %p4597_p1, %p4594_p0 }
   0x9   :  { %4602 = shalt.err (!%p4599_p2)
}
   0xa   :  { %s4603_s8 = scalar_lea.vmem %s31_s12, 8192  ;;  %p4608_p4 = scmp.lt.s32.totalorder %s31_s12, %s31_s12 }
   0xb   :  { %p4604_p3 = scmp.ne.s32.totalorder %s31_s12, %s4603_s8  ;;  %p4609_p5 = scmp.lt.s32.totalorder %s4603_s8, %s4603_s8 }
   0xd   :  { %p4610_p6 = por %p4609_p5, %p4608_p4 }
   0xf   :  { %p4611_p7 = pnand %p4610_p6, %p4604_p3 }
  0x11   :  { %4614 = shalt.err (!%p4611_p7)
}
  0x12   :  { %s4618_s20 = smov 512   ;;  %s4619_s21 = smov 32  }
  0x13   :  { %36 = dma.hbm_to_vmem [thread:$0]  %s6239_s4, 8192, %s31_s12, [#allocation4], %s4618_s20, %s4618_s20, %s4619_s21  }
  0x14   :  { %4615 = dma.done.wait [#allocation4], 8192  }
  0x15   :  { %4616 = vsyncadd [#allocation4], 4294959104  ;;  %v4620_v1 = vmov 0   ;;  %v6245_v2 = vmov 0.0   ;;  %v50_v3 = vld [vmem:[%s6235_s0 + $0x10] sm:$0xff]  ;;  %v48_v4 = vld [vmem:[%s6235_s0] sm:$0xff]  ;;  %v6247_v60 = vlaneseq }
  0x16   :  { %4267 = vset.pattern.permute.xlu1 %v4620_v1  ;;  %4266 = vset.pattern.permute.xlu0 %v4620_v1  ;;  %v51_v5 = vld [vmem:[%s6235_s0 + $0x18] sm:$0xff]  ;;  %v49_v6 = vld [vmem:[%s6235_s0 + $0x8] sm:$0xff]  ;;  %v52_v8 = vld [vmem:[%s6235_s0 + $0x20] sm:$0xff]  ;;  %vm952_vm0 = vcmask 261120   ;;  %vm280_vm1 = vcmask 130048  }
  0x17   :  { %441 = vmatprep.mubr.f32.mxu0 %v6245_v2  ;;  %585 = vmatprep.mubr.f32.mxu1 %v6245_v2  ;;  %v53_v7 = vld [vmem:[%s6235_s0 + $0x28] sm:$0xff]  ;;  %v72_v9 = vld [vmem:[%s6235_s0 + $0xc0] sm:$0xff]  ;;  %v54_v10 = vld [vmem:[%s6235_s0 + $0x30] sm:$0xff]  ;;  %v4853_v61 = vand.u32 127, %v6247_v60 }
  0x18   :  { %89 = vperm.xlu1 %4267, %v50_v3   ;;  %83 = vperm.xlu0 %4266, %v48_v4   ;;  %v275_v11 = vld [vmem:[%s6236_s1 + $0x8] sm:$0xff]  ;;  %v278_v12 = vld [vmem:[%s6236_s1 + $0x20] sm:$0xff]  ;;  %v277_v14 = vld [vmem:[%s6236_s1 + $0x18] sm:$0xff] }
  0x19   :  { %v274_v13 = vld [vmem:[%s6236_s1] sm:$0xff]  ;;  %v860_v15 = vld [vmem:[#allocation3 + $0x8] sm:$0xff]  ;;  %v55_v17 = vld [vmem:[%s6235_s0 + $0x38] sm:$0xff]  ;;  %v3603_v18 = vpack.c.bf16 %v278_v12, %v275_v11 }
  0x1a   :  { %v73_v16 = vld [vmem:[%s6235_s0 + $0xc8] sm:$0xff]  ;;  %v3605_v19 = vpack.c.bf16 %v277_v14, %v274_v13  ;;  %v74_v22 = vld [vmem:[%s6235_s0 + $0xd0] sm:$0xff]  ;;  %v56_v23 = vld [vmem:[%s6235_s0 + $0x40] sm:$0xff] }
  0x1b   :  { %v864_v20 = vld [vmem:[#allocation3 + $0x28] sm:$0xff]  ;;  %3604 = vmatprep.subr.bf16.mxu0 %v3603_v18  ;;  %4123 = vmatprep.subr.bf16.mxu1 %v3603_v18  ;;  %v75_v24 = vld [vmem:[%s6235_s0 + $0xd8] sm:$0xff]  ;;  %v76_v26 = vld [vmem:[%s6235_s0 + $0xe0] sm:$0xff] }
  0x1c   :  { %92 = vperm.xlu1 %4267, %v51_v5   ;;  %86 = vperm.xlu0 %4266, %v49_v6   ;;  %v4731_v21 = vpack.c.bf16 %v864_v20, %v860_v15  ;;  %v57_v25 = vld [vmem:[%s6235_s0 + $0x48] sm:$0xff]  ;;  %v58_v27 = vld [vmem:[%s6235_s0 + $0x50] sm:$0xff]  ;;  %v59_v32 = vld [vmem:[%s6235_s0 + $0x58] sm:$0xff] }
  0x1d   :  { %3606 = vmatpush1.bf16.msra.mxu0 %v3605_v19  ;;  %4124 = vmatpush1.bf16.msra.mxu1 %v3605_v19  ;;  %v276_v28 = vld [vmem:[%s6236_s1 + $0x10] sm:$0xff]  ;;  %v279_v29 = vld [vmem:[%s6236_s1 + $0x28] sm:$0xff]  ;;  %v60_v34 = vld [vmem:[%s6235_s0 + $0x60] sm:$0xff] }
  0x1e   :  { %6284 = vst [vmem:[#allocation6_spill] sm:$0xff] %v4731_v21  ;;  %3612 = vmatprep.subr.bf16.mxu0 %v4731_v21  ;;  %v4758_v30 = vpack.c.bf16 %v279_v29, %v276_v28  ;;  %v77_v31 = vld [vmem:[%s6235_s0 + $0xe8] sm:$0xff]  ;;  %v78_v33 = vld [vmem:[%s6235_s0 + $0xf0] sm:$0xff]  ;;  %v79_v35 = vld [vmem:[%s6235_s0 + $0xf8] sm:$0xff] }
  0x1f   :  { %v61_v36 = vld [vmem:[%s6235_s0 + $0x68] sm:$0xff]  ;;  %v63_v37 = vld [vmem:[%s6235_s0 + $0x78] sm:$0xff]  ;;  %v62_v38 = vld [vmem:[%s6235_s0 + $0x70] sm:$0xff] }
  0x20   :  { %98 = vperm.xlu1 %4267, %v53_v7   ;;  %95 = vperm.xlu0 %4266, %v52_v8   ;;  %v65_v39 = vld [vmem:[%s6235_s0 + $0x88] sm:$0xff]  ;;  %v64_v40 = vld [vmem:[%s6235_s0 + $0x80] sm:$0xff]  ;;  %v67_v41 = vld [vmem:[%s6235_s0 + $0x98] sm:$0xff] }
  0x21   :  { %3608 = vmatprep.subr.bf16.mxu1 %v4758_v30  ;;  %v66_v42 = vld [vmem:[%s6235_s0 + $0x90] sm:$0xff]  ;;  %v69_v43 = vld [vmem:[%s6235_s0 + $0xa8] sm:$0xff]  ;;  %v68_v44 = vld [vmem:[%s6235_s0 + $0xa0] sm:$0xff] }
  0x22   :  { %v71_v45 = vld [vmem:[%s6235_s0 + $0xb8] sm:$0xff]  ;;  %v70_v46 = vld [vmem:[%s6235_s0 + $0xb0] sm:$0xff]  ;;  %v4812_v47 = vld [vmem:[%s6237_s2] sm:$0xff] }
  0x23   :  { %v3443_v48 = vld [vmem:[%s6242_s7] ss:$0 sm:$0xff]  ;;  %v4819_v49 = vsel %vm952_vm0, %v4812_v47, 0.0  ;;  %v4824_v50 = vld [vmem:[%s6237_s2 + $0x10] sm:$0xff]  ;;  %v4829_v51 = vld [vmem:[%s6237_s2 + $0x8] sm:$0xff] }
  0x24   :  { %155 = vperm.xlu1 %4267, %v72_v9   ;;  %101 = vperm.xlu0 %4266, %v54_v10   ;;  %v967_v52 = vmul.f32 %v3443_v48, %v4819_v49  ;;  %v4834_v53 = vsel %vm952_vm0, %v4824_v50, 0.0  ;;  %v4838_v54 = vsel %vm952_vm0, %v4829_v51, 0.0  ;;  %v4843_v55 = vld [vmem:[%s6237_s2 + $0x18] sm:$0xff]  ;;  %v859_v62 = vld [vmem:[#allocation3] sm:$0xff]  ;;  %v868_v0 = vld [vmem:[#allocation3 + $0x48] sm:$0xff] }
  0x25   :  { %v969_v56 = vmul.f32 %v3443_v48, %v4834_v53  ;;  %v968_v57 = vmul.f32 %v3443_v48, %v4838_v54  ;;  %v4849_v58 = vsel %vm952_vm0, %v4843_v55, 0.0  ;;  %v863_v63 = vld [vmem:[#allocation3 + $0x20] sm:$0xff]  ;;  %v872_v1 = vld [vmem:[#allocation3 + $0x68] sm:$0xff] }
  0x26   :  { %v970_v59 = vmul.f32 %v3443_v48, %v4849_v58  ;;  %v4855_v5 = vpack.c.bf16 %v863_v63, %v859_v62  ;;  %v4858_v6 = vpack.c.bf16 %v872_v1, %v868_v0  ;;  %v867_v7 = vld [vmem:[#allocation3 + $0x40] sm:$0xff]  ;;  %v876_v10 = vld [vmem:[#allocation3 + $0x88] sm:$0xff] }
  0x27   :  { %v871_v8 = vld [vmem:[#allocation3 + $0x60] sm:$0xff]  ;;  %v880_v11 = vld [vmem:[#allocation3 + $0xa8] sm:$0xff] }
  0x28   :  { %158 = vperm.xlu1 %4267, %v73_v16   ;;  %104 = vperm.xlu0 %4266, %v55_v17   ;;  %v4867_v14 = vpack.c.bf16 %v871_v8, %v867_v7  ;;  %v4872_v15 = vpack.c.bf16 %v880_v11, %v876_v10  ;;  %v875_v16 = vld [vmem:[#allocation3 + $0x80] sm:$0xff]  ;;  %v884_v19 = vld [vmem:[#allocation3 + $0xc8] sm:$0xff] }
  0x29   :  { %v879_v17 = vld [vmem:[#allocation3 + $0xa0] sm:$0xff]  ;;  %v888_v20 = vld [vmem:[#allocation3 + $0xe8] sm:$0xff] }
  0x2a   :  { %v887_v28 = vld [vmem:[#allocation3 + $0xe0] sm:$0xff]  ;;  %v892_v29 = vld [vmem:[#allocation3 + $0x108] sm:$0xff] }
  0x2b   :  { %v903_v62 = vld [vmem:[#allocation3 + $0x160] sm:$0xff]  ;;  %v912_v63 = vld [vmem:[#allocation3 + $0x1a8] sm:$0xff] }
  0x2c   :  { %161 = vperm.xlu1 %4267, %v74_v22   ;;  %107 = vperm.xlu0 %4266, %v56_v23   ;;  %v907_v10 = vld [vmem:[#allocation3 + $0x180] sm:$0xff] }
  0x2d   :  { %v911_v11 = vld [vmem:[#allocation3 + $0x1a0] sm:$0xff] }
  0x30   :  { %164 = vperm.xlu1 %4267, %v75_v24   ;;  %110 = vperm.xlu0 %4266, %v57_v25   ;;  %v4884_v25 = vpack.c.bf16 %v879_v17, %v875_v16 }
  0x34   :  { %167 = vperm.xlu1 %4267, %v76_v26   ;;  %113 = vperm.xlu0 %4266, %v58_v27   ;;  %v4887_v26 = vpack.c.bf16 %v888_v20, %v884_v19  ;;  %v883_v27 = vld [vmem:[#allocation3 + $0xc0] sm:$0xff]  ;;  %v4962_v19 = vpack.c.bf16 %v911_v11, %v907_v10  ;;  %v870_v10 = vld [vmem:[#allocation3 + $0x58] sm:$0xff] }
  0x35   :  { %v874_v11 = vld [vmem:[#allocation3 + $0x78] sm:$0xff] }
  0x36   :  { %6286 = vst [vmem:[#allocation8_spill] sm:$0xff] %v4962_v19 }
  0x38   :  { %170 = vperm.xlu1 %4267, %v77_v31   ;;  %116 = vperm.xlu0 %4266, %v59_v32   ;;  %v896_v31 = vld [vmem:[#allocation3 + $0x128] sm:$0xff]  ;;  %v862_v32 = vld [vmem:[#allocation3 + $0x18] sm:$0xff] }
  0x3c   :  { %173 = vperm.xlu1 %4267, %v78_v33   ;;  %119 = vperm.xlu0 %4266, %v60_v34   ;;  %v866_v33 = vld [vmem:[#allocation3 + $0x38] sm:$0xff] }
  0x40   :  { %176 = vperm.xlu1 %4267, %v79_v35   ;;  %122 = vperm.xlu0 %4266, %v61_v36   ;;  %v4898_v36 = vpack.c.bf16 %v887_v28, %v883_v27  ;;  %v915_v27 = vld [vmem:[#allocation3 + $0x1c0] sm:$0xff] }
  0x41   :  { %v919_v28 = vld [vmem:[#allocation3 + $0x1e0] sm:$0xff] }
  0x44   :  { %128 = vperm.xlu1 %4267, %v63_v37   ;;  %125 = vperm.xlu0 %4266, %v62_v38  }
  0x48   :  { %134 = vperm.xlu1 %4267, %v65_v39   ;;  %131 = vperm.xlu0 %4266, %v64_v40   ;;  %v4906_v39 = vpack.c.bf16 %v896_v31, %v892_v29  ;;  %v891_v40 = vld [vmem:[#allocation3 + $0x100] sm:$0xff] }
  0x4c   :  { %140 = vperm.xlu1 %4267, %v67_v41   ;;  %137 = vperm.xlu0 %4266, %v66_v42   ;;  %v895_v41 = vld [vmem:[#allocation3 + $0x120] sm:$0xff]  ;;  %v4908_v42 = vpack.c.bf16 %v866_v33, %v862_v32  ;;  %v4982_v32 = vpack.c.bf16 %v919_v28, %v915_v27  ;;  %v869_v27 = vld [vmem:[#allocation3 + $0x50] sm:$0xff] }
  0x4d   :  { %v4920_v48 = vpack.c.bf16 %v895_v41, %v891_v40  ;;  %v873_v28 = vld [vmem:[#allocation3 + $0x70] sm:$0xff] }
  0x4e   :  { %6285 = vst [vmem:[#allocation7_spill] sm:$0xff] %v4908_v42  ;;  %6288 = vst [vmem:[#allocation10_spill] sm:$0xff] %v4982_v32 }
  0x50   :  { %146 = vperm.xlu1 %4267, %v69_v43   ;;  %143 = vperm.xlu0 %4266, %v68_v44   ;;  %v900_v43 = vld [vmem:[#allocation3 + $0x148] sm:$0xff] }
  0x51   :  { %v904_v44 = vld [vmem:[#allocation3 + $0x168] sm:$0xff] }
  0x54   :  { %152 = vperm.xlu1 %4267, %v71_v45   ;;  %149 = vperm.xlu0 %4266, %v70_v46  }
  0x73   :  { %971 = vadd.xlane.f32.xlu0 %v967_v52 }
  0x77   :  { %975 = vadd.xlane.f32.xlu0 %v969_v56 }
  0x78   :  { %973 = vadd.xlane.f32.xlu1 %v968_v57  ;;  %v4930_v57 = vpack.c.bf16 %v904_v44, %v900_v43 }
  0x7b   :  { %977 = vadd.xlane.f32.xlu0 %v970_v59  ;;  %v899_v59 = vld [vmem:[#allocation3 + $0x140] sm:$0xff] }
  0x97   :  { %v90_v3 = vpop.permute.xlu1 %89  ;;  %v84_v4 = vpop.permute.xlu0 %83 }
  0x98   :  { %vm178_vm2 = vcmp.eq.s32.totalorder %v84_v4, %v4853_v61  ;;  %vm180_vm3 = vcmp.eq.s32.totalorder %v90_v3, %v4853_v61  ;;  %v4941_v3 = vpack.c.bf16 %v903_v62, %v899_v59 }
  0x99   :  { %v4861_v9 = vsel %vm178_vm2, 1.0, %v6245_v2  ;;  %v4880_v22 = vsel %vm180_vm3, 1.0, %v6245_v2 }
  0x9a   :  { %3379 = vmatmul.mubr.msk.f32.vlgmr.msra.gmra.mrb[0].mxu0 %vm280_vm1, %v4861_v9 }
  0x9b   :  { %3614 = vmatpush1.bf16.msra.mxu0 %v4855_v5  ;;  %v93_v12 = vpop.permute.xlu1 %92  ;;  %v87_v13 = vpop.permute.xlu0 %86  ;;  %447 = vmatprep.mubr.f32.mxu0 %v6245_v2 }
  0x9c   :  { %vm179_vm4 = vcmp.eq.s32.totalorder %v87_v13, %v4853_v61  ;;  %3616 = vmatprep.subr.bf16.mxu0 %v4858_v6  ;;  %vm181_vm5 = vcmp.eq.s32.totalorder %v93_v12, %v4853_v61  ;;  %v916_v12 = vld [vmem:[#allocation3 + $0x1c8] sm:$0xff] }
  0x9d   :  { %v4875_v18 = vsel %vm179_vm4, 1.0, %v6245_v2  ;;  %v4901_v37 = vsel %vm181_vm5, 1.0, %v6245_v2  ;;  %v920_v13 = vld [vmem:[#allocation3 + $0x1e8] sm:$0xff] }
  0x9e   :  { %3380 = vmatmul.mubr.msk.f32.gmra.mrb[2].mxu0 %vm280_vm1, %v4875_v18 }
  0x9f   :  { %v99_v23 = vpop.permute.xlu1 %98  ;;  %v96_v24 = vpop.permute.xlu0 %95  ;;  %453 = vmatprep.mubr.f32.mxu0 %v6245_v2  ;;  %3618 = vmatpush1.bf16.msra.mxu0 %v4867_v14 }
  0xa0   :  { %3620 = vmatprep.subr.bf16.mxu0 %v4872_v15  ;;  %vm182_vm7 = vcmp.eq.s32.totalorder %v96_v24, %v4853_v61  ;;  %vm183_vm9 = vcmp.eq.s32.totalorder %v99_v23, %v4853_v61  ;;  %v4971_v24 = vpack.c.bf16 %v920_v13, %v916_v12 }
  0xa1   :  { %v4923_v52 = vsel %vm182_vm7, 1.0, %v6245_v2  ;;  %v4944_v4 = vsel %vm183_vm9, 1.0, %v6245_v2 }
  0xa2   :  { %3381 = vmatmul.mubr.msk.f32.gmra.mrb[4].mxu0 %vm280_vm1, %v4880_v22  ;;  %6287 = vst [vmem:[#allocation9_spill] sm:$0xff] %v4971_v24 }
  0xa3   :  { %v156_v34 = vpop.permute.xlu1 %155  ;;  %v4892_v35 = vpop.permute.xlu0 %101  ;;  %459 = vmatprep.mubr.f32.mxu0 %v6245_v2  ;;  %3622 = vmatpush1.bf16.msra.mxu0 %v4884_v25 }
  0xa4   :  { %vm202_vm6 = vcmp.eq.s32.totalorder %v156_v34, %v4853_v61  ;;  %3624 = vmatprep.subr.bf16.mxu0 %v4887_v26  ;;  %vm184_vm11 = vcmp.eq.s32.totalorder %v4892_v35, %v4853_v61 }
  0xa5   :  { %v4904_v38 = vsel %vm202_vm6, 1.0, %v6245_v2  ;;  %v4965_v20 = vsel %vm184_vm11, 1.0, %v6245_v2 }
  0xa6   :  { %3382 = vmatmul.mubr.msk.f32.gmra.mrb[6].mxu0 %vm280_vm1, %v4901_v37  ;;  %3403 = vmatmul.mubr.msk.f32.vlgmr.msra.gmra.mrb[0].mxu1 %vm280_vm1, %v4904_v38 }
  0xa7   :  { %v159_v45 = vpop.permute.xlu1 %158  ;;  %v105_v46 = vpop.permute.xlu0 %104  ;;  %465 = vmatprep.mubr.f32.mxu0 %v6245_v2  ;;  %591 = vmatprep.mubr.f32.mxu1 %v6245_v2 }
  0xa8   :  { %vm203_vm8 = vcmp.eq.s32.totalorder %v159_v45, %v4853_v61  ;;  %3610 = vmatpush3.bf16.msra.mxu1 %v4758_v30  ;;  %3626 = vmatpush1.bf16.msra.mxu0 %v4898_v36  ;;  %v908_v30 = vld [vmem:[#allocation3 + $0x188] sm:$0xff]  ;;  %vm185_vm13 = vcmp.eq.s32.totalorder %v105_v46, %v4853_v61 }
  0xa9   :  { %v4926_v56 = vsel %vm203_vm8, 1.0, %v6245_v2  ;;  %3628 = vmatprep.subr.bf16.mxu0 %v4906_v39  ;;  %3644 = vmatprep.subr.bf16.mxu1 %v4908_v42  ;;  %v4950_v8 = vpack.c.bf16 %v912_v63, %v908_v30  ;;  %v4985_v33 = vsel %vm185_vm13, 1.0, %v6245_v2 }
  0xaa   :  { %3383 = vmatmul.mubr.msk.f32.gmra.mrb[8].mxu0 %vm280_vm1, %v4923_v52  ;;  %3404 = vmatmul.mubr.msk.f32.gmra.mrb[2].mxu1 %vm280_vm1, %v4926_v56 }
  0xab   :  { %v162_v0 = vpop.permute.xlu1 %161  ;;  %v108_v1 = vpop.permute.xlu0 %107  ;;  %471 = vmatprep.mubr.f32.mxu0 %v6245_v2  ;;  %597 = vmatprep.mubr.f32.mxu1 %v6245_v2 }
  0xac   :  { %vm204_vm10 = vcmp.eq.s32.totalorder %v162_v0, %v4853_v61  ;;  %3630 = vmatpush1.bf16.msra.mxu0 %v4920_v48  ;;  %vm186_vm15 = vcmp.eq.s32.totalorder %v108_v1, %v4853_v61  ;;  %v861_v0 = vld [vmem:[#allocation3 + $0x10] sm:$0xff] }
  0xad   :  { %v4947_v7 = vsel %vm204_vm10, 1.0, %v6245_v2  ;;  %3632 = vmatprep.subr.bf16.mxu0 %v4930_v57  ;;  %v5001_v40 = vsel %vm186_vm15, 1.0, %v6245_v2  ;;  %v865_v1 = vld [vmem:[#allocation3 + $0x30] sm:$0xff] }
  0xae   :  { %3384 = vmatmul.mubr.msk.f32.gmra.mrb[10].mxu0 %vm280_vm1, %v4944_v4  ;;  %3405 = vmatmul.mubr.msk.f32.gmra.mrb[4].mxu1 %vm280_vm1, %v4947_v7  ;;  %v5043_v12 = vpack.c.bf16 %v865_v1, %v861_v0 }
  0xaf   :  { %v165_v16 = vpop.permute.xlu1 %164  ;;  %v111_v17 = vpop.permute.xlu0 %110  ;;  %477 = vmatprep.mubr.f32.mxu0 %v6245_v2  ;;  %603 = vmatprep.mubr.f32.mxu1 %v6245_v2 }
  0xb0   :  { %vm205_vm12 = vcmp.eq.s32.totalorder %v165_v16, %v4853_v61  ;;  %3634 = vmatpush1.bf16.msra.mxu0 %v4941_v3  ;;  %vm187_vm3 = vcmp.eq.s32.totalorder %v111_v17, %v4853_v61  ;;  %v5048_v17 = vpack.c.bf16 %v874_v11, %v870_v10  ;;  %v889_v11 = vld [vmem:[#allocation3 + $0xf0] sm:$0xff] }
  0xb1   :  { %v4968_v23 = vsel %vm205_vm12, 1.0, %v6245_v2  ;;  %3636 = vmatprep.subr.bf16.mxu0 %v4950_v8  ;;  %v5016_v45 = vsel %vm187_vm3, 1.0, %v6245_v2 }
  0xb2   :  { %3385 = vmatmul.mubr.msk.f32.gmra.mrb[12].mxu0 %vm280_vm1, %v4965_v20  ;;  %3406 = vmatmul.mubr.msk.f32.gmra.mrb[6].mxu1 %vm280_vm1, %v4968_v23 }
  0xb3   :  { %v168_v29 = vpop.permute.xlu1 %167  ;;  %v114_v31 = vpop.permute.xlu0 %113  ;;  %483 = vmatprep.mubr.f32.mxu0 %v6245_v2  ;;  %609 = vmatprep.mubr.f32.mxu1 %v6245_v2 }
  0xb4   :  { %vm206_vm14 = vcmp.eq.s32.totalorder %v168_v29, %v4853_v61  ;;  %3638 = vmatpush1.bf16.msra.mxu0 %v4962_v19  ;;  %vm188_vm5 = vcmp.eq.s32.totalorder %v114_v31, %v4853_v61  ;;  %v882_v29 = vld [vmem:[#allocation3 + $0xb8] sm:$0xff]  ;;  %v5059_v31 = vpack.c.bf16 %v873_v28, %v869_v27 }
  0xb5   :  { %v4988_v34 = vsel %vm206_vm14, 1.0, %v6245_v2  ;;  %3640 = vmatprep.subr.bf16.mxu0 %v4971_v24  ;;  %v5030_v30 = vsel %vm188_vm5, 1.0, %v6245_v2 }
  0xb6   :  { %3386 = vmatmul.mubr.msk.f32.gmra.mrb[14].mxu0 %vm280_vm1, %v4985_v33  ;;  %3407 = vmatmul.mubr.msk.f32.gmra.mrb[8].mxu1 %vm280_vm1, %v4988_v34 }
  0xb7   :  { %v171_v35 = vpop.permute.xlu1 %170  ;;  %489 = vmatprep.mubr.f32.mxu0 %v6245_v2  ;;  %615 = vmatprep.mubr.f32.mxu1 %v6245_v2  ;;  %v117_v43 = vpop.permute.xlu0 %116 }
  0xb8   :  { %vm207_vm2 = vcmp.eq.s32.totalorder %v171_v35, %v4853_v61  ;;  %3642 = vmatpush1.bf16.msra.mxu0 %v4982_v32  ;;  %vm189_vm7 = vcmp.eq.s32.totalorder %v117_v43, %v4853_v61 }
  0xb9   :  { %v5004_v41 = vsel %vm207_vm2, 1.0, %v6245_v2  ;;  %3676 = vmatprep.subr.bf16.mxu0 %v4731_v21  ;;  %v5046_v13 = vsel %vm189_vm7, 1.0, %v6245_v2 }
  0xba   :  { %3387 = vmatmul.mubr.msk.f32.gmra.mrb[16].mxu0 %vm280_vm1, %v5001_v40  ;;  %3408 = vmatmul.mubr.msk.f32.gmra.mrb[10].mxu1 %vm280_vm1, %v5004_v41 }
  0xbb   :  { %v174_v44 = vpop.permute.xlu1 %173  ;;  %495 = vmatprep.mubr.f32.mxu0 %v6245_v2  ;;  %621 = vmatprep.mubr.f32.mxu1 %v6245_v2  ;;  %v120_v59 = vpop.permute.xlu0 %119 }
  0xbc   :  { %vm208_vm4 = vcmp.eq.s32.totalorder %v174_v44, %v4853_v61  ;;  %vm190_vm8 = vcmp.eq.s32.totalorder %v120_v59, %v4853_v61  ;;  %v877_v44 = vld [vmem:[#allocation3 + $0x90] sm:$0xff]  ;;  %v890_v59 = vld [vmem:[#allocation3 + $0xf8] sm:$0xff] }
  0xbd   :  { %v5019_v46 = vsel %vm208_vm4, 1.0, %v6245_v2  ;;  %v5062_v35 = vsel %vm190_vm8, 1.0, %v6245_v2 }
  0xbe   :  { %3388 = vmatmul.mubr.msk.f32.gmra.mrb[18].mxu0 %vm280_vm1, %v5016_v45  ;;  %3409 = vmatmul.mubr.msk.f32.gmra.mrb[12].mxu1 %vm280_vm1, %v5019_v46 }
  0xbf   :  { %v177_v62 = vpop.permute.xlu1 %176  ;;  %501 = vmatprep.mubr.f32.mxu0 %v6245_v2  ;;  %627 = vmatprep.mubr.f32.mxu1 %v6245_v2  ;;  %v123_v16 = vpop.permute.xlu0 %122 }
  0xc0   :  { %vm209_vm6 = vcmp.eq.s32.totalorder %v177_v62, %v4853_v61  ;;  %vm191_vm9 = vcmp.eq.s32.totalorder %v123_v16, %v4853_v61  ;;  %v898_v16 = vld [vmem:[#allocation3 + $0x138] sm:$0xff] }
  0xc1   :  { %v5033_v63 = vsel %vm209_vm6, 1.0, %v6245_v2  ;;  %v5079_v1 = vsel %vm191_vm9, 1.0, %v6245_v2 }
  0xc2   :  { %3389 = vmatmul.mubr.msk.f32.gmra.mrb[20].mxu0 %vm280_vm1, %v5030_v30  ;;  %3410 = vmatmul.mubr.msk.f32.gmra.mrb[14].mxu1 %vm280_vm1, %v5033_v63 }
  0xc3   :  { %3555 = vmatprep.mubr.msk.f32.mxu1 %vm280_vm1, %v4861_v9  ;;  %507 = vmatprep.mubr.f32.mxu0 %v6245_v2  ;;  %v878_v9 = vld [vmem:[#allocation3 + $0x98] sm:$0xff]  ;;  %v126_v62 = vpop.permute.xlu0 %125  ;;  %v129_v27 = vpop.permute.xlu1 %128 }
  0xc4   :  { %v5065_v43 = vpack.c.bf16 %v882_v29, %v878_v9  ;;  %vm192_vm10 = vcmp.eq.s32.totalorder %v126_v62, %v4853_v61  ;;  %vm193_vm11 = vcmp.eq.s32.totalorder %v129_v27, %v4853_v61 }
  0xc5   :  { %v3361_v9 = vsel %vm192_vm10, 1.0, %v6245_v2  ;;  %v3362_v62 = vsel %vm193_vm11, 1.0, %v6245_v2 }
  0xc6   :  { %3390 = vmatmul.mubr.msk.f32.gmra.mrb[22].mxu0 %vm280_vm1, %v5046_v13  ;;  %3556 = vmatmul.mubr.msk.f32.vlgmr.msra.gmra.mrb[16].mxu1 %vm280_vm1, %v4875_v18  ;;  %v881_v18 = vld [vmem:[#allocation3 + $0xb0] sm:$0xff] }
  0xc7   :  { %3558 = vmatprep.mubr.msk.f32.mxu1 %vm280_vm1, %v4880_v22  ;;  %513 = vmatprep.mubr.f32.mxu0 %v6245_v2  ;;  %v886_v22 = vld [vmem:[#allocation3 + $0xd8] sm:$0xff]  ;;  %v5076_v0 = vpack.c.bf16 %v881_v18, %v877_v44  ;;  %v893_v44 = vld [vmem:[#allocation3 + $0x110] sm:$0xff] }
  0xc8   :  { %3646 = vmatpush1.bf16.msra.mxu1 %v5043_v12  ;;  %v5082_v10 = vpack.c.bf16 %v890_v59, %v886_v22  ;;  %v906_v18 = vld [vmem:[#allocation3 + $0x178] sm:$0xff]  ;;  %v132_v22 = vpop.permute.xlu0 %131 }
  0xc9   :  { %3648 = vmatprep.subr.bf16.mxu1 %v5048_v17  ;;  %vm194_vm12 = vcmp.eq.s32.totalorder %v132_v22, %v4853_v61 }
  0xca   :  { %3391 = vmatmul.mubr.msk.f32.gmra.mrb[24].mxu0 %vm280_vm1, %v5062_v35  ;;  %3559 = vmatmul.mubr.msk.f32.gmra.mrb[18].mxu1 %vm280_vm1, %v4901_v37  ;;  %v885_v37 = vld [vmem:[#allocation3 + $0xd0] sm:$0xff] }
  0xcb   :  { %3561 = vmatprep.mubr.msk.f32.mxu1 %vm280_vm1, %v4923_v52  ;;  %519 = vmatprep.mubr.f32.mxu0 %v6245_v2  ;;  %v894_v52 = vld [vmem:[#allocation3 + $0x118] sm:$0xff]  ;;  %v5093_v28 = vpack.c.bf16 %v889_v11, %v885_v37  ;;  %v901_v11 = vld [vmem:[#allocation3 + $0x150] sm:$0xff] }
  0xcc   :  { %3650 = vmatpush1.bf16.msra.mxu1 %v5059_v31  ;;  %v5097_v29 = vpack.c.bf16 %v898_v16, %v894_v52  ;;  %v914_v52 = vld [vmem:[#allocation3 + $0x1b8] sm:$0xff]  ;;  %v135_v16 = vpop.permute.xlu1 %134  ;;  %v138_v22 = vpop.permute.xlu0 %137 }
  0xcd   :  { %3652 = vmatprep.subr.bf16.mxu1 %v5065_v43  ;;  %vm195_vm13 = vcmp.eq.s32.totalorder %v135_v16, %v4853_v61  ;;  %vm196_vm14 = vcmp.eq.s32.totalorder %v138_v22, %v4853_v61 }
  0xce   :  { %3392 = vmatmul.mubr.msk.f32.gmra.mrb[26].mxu0 %vm280_vm1, %v5079_v1  ;;  %3562 = vmatmul.mubr.msk.f32.gmra.mrb[20].mxu1 %vm280_vm1, %v4944_v4  ;;  %v897_v4 = vld [vmem:[#allocation3 + $0x130] sm:$0xff] }
  0xcf   :  { %3564 = vmatprep.mubr.msk.f32.mxu1 %vm280_vm1, %v4965_v20  ;;  %525 = vmatprep.mubr.f32.mxu0 %v6245_v2  ;;  %v902_v20 = vld [vmem:[#allocation3 + $0x158] sm:$0xff]  ;;  %v5107_v59 = vpack.c.bf16 %v897_v4, %v893_v44  ;;  %v3363_v44 = vsel %vm194_vm12, 1.0, %v6245_v2 }
  0xd0   :  { %3654 = vmatpush1.bf16.msra.mxu1 %v5076_v0  ;;  %v5111_v37 = vpack.c.bf16 %v906_v18, %v902_v20  ;;  %v909_v20 = vld [vmem:[#allocation3 + $0x190] sm:$0xff]  ;;  %v922_v18 = vld [vmem:[#allocation3 + $0x1f8] sm:$0xff] }
  0xd1   :  { %3656 = vmatprep.subr.bf16.mxu1 %v5082_v10 }
  0xd2   :  { %3393 = vmatmul.mubr.msk.f32.gmra.mrb[28].mxu0 %vm280_vm1, %v3361_v9  ;;  %3565 = vmatmul.mubr.msk.f32.gmra.mrb[22].mxu1 %vm280_vm1, %v4985_v33  ;;  %v905_v33 = vld [vmem:[#allocation3 + $0x170] sm:$0xff] }
  0xd3   :  { %3567 = vmatprep.mubr.msk.f32.mxu1 %vm280_vm1, %v5001_v40  ;;  %531 = vmatprep.mubr.f32.mxu0 %v6245_v2  ;;  %v910_v40 = vld [vmem:[#allocation3 + $0x198] sm:$0xff]  ;;  %v5121_v27 = vpack.c.bf16 %v905_v33, %v901_v11  ;;  %v3364_v33 = vsel %vm195_vm13, 1.0, %v6245_v2 }
  0xd4   :  { %3658 = vmatpush1.bf16.msra.mxu1 %v5093_v28  ;;  %v5125_v4 = vpack.c.bf16 %v914_v52, %v910_v40  ;;  %v917_v52 = vld [vmem:[#allocation3 + $0x1d0] sm:$0xff] }
  0xd5   :  { %3660 = vmatprep.subr.bf16.mxu1 %v5097_v29 }
  0xd6   :  { %3394 = vmatmul.mubr.msk.f32.gmra.mrb[30].mxu0 %vm280_vm1, %v3362_v62  ;;  %3568 = vmatmul.mubr.msk.f32.gmra.mrb[24].mxu1 %vm280_vm1, %v5016_v45  ;;  %v913_v45 = vld [vmem:[#allocation3 + $0x1b0] sm:$0xff] }
  0xd7   :  { %3570 = vmatprep.mubr.msk.f32.mxu1 %vm280_vm1, %v5030_v30  ;;  %537 = vmatprep.mubr.f32.mxu0 %v6245_v2  ;;  %v918_v30 = vld [vmem:[#allocation3 + $0x1d8] sm:$0xff]  ;;  %v5135_v11 = vpack.c.bf16 %v913_v45, %v909_v20  ;;  %v3365_v20 = vsel %vm196_vm14, 1.0, %v6245_v2  ;;  %v144_v45 = vpop.permute.xlu0 %143 }
  0xd8   :  { %3662 = vmatpush1.bf16.msra.mxu1 %v5107_v59  ;;  %v5139_v40 = vpack.c.bf16 %v922_v18, %v918_v30  ;;  %vm198_vm2 = vcmp.eq.s32.totalorder %v144_v45, %v4853_v61  ;;  %v960_v45 = vld [vmem:[%s6238_s3 + $0x18] sm:$0xff] }
  0xd9   :  { %3664 = vmatprep.subr.bf16.mxu1 %v5111_v37  ;;  %6289 = vst [vmem:[#allocation11_spill] sm:$0xff] %v5135_v11 }
  0xda   :  { %3395 = vmatmul.mubr.msk.f32.gmra.mrb[32].mxu0 %vm280_vm1, %v3363_v44  ;;  %3571 = vmatmul.mubr.msk.f32.gmra.mrb[26].mxu1 %vm280_vm1, %v5046_v13  ;;  %6290 = vst [vmem:[#allocation12_spill] sm:$0xff] %v5139_v40  ;;  %v921_v13 = vld [vmem:[#allocation3 + $0x1f0] sm:$0xff] }
  0xdb   :  { %3573 = vmatprep.mubr.msk.f32.mxu1 %vm280_vm1, %v5062_v35  ;;  %543 = vmatprep.mubr.f32.mxu0 %v6245_v2  ;;  %v141_v35 = vpop.permute.xlu1 %140  ;;  %v5148_v16 = vpack.c.bf16 %v921_v13, %v917_v52 }
  0xdc   :  { %3666 = vmatpush1.bf16.msra.mxu1 %v5121_v27  ;;  %vm197_vm15 = vcmp.eq.s32.totalorder %v141_v35, %v4853_v61 }
  0xdd   :  { %3668 = vmatprep.subr.bf16.mxu1 %v5125_v4  ;;  %6291 = vst [vmem:[#allocation13_spill] sm:$0xff] %v5148_v16 }
  0xde   :  { %3396 = vmatmul.mubr.msk.f32.gmra.mrb[34].mxu0 %vm280_vm1, %v3364_v33  ;;  %3574 = vmatmul.mubr.msk.f32.gmra.mrb[28].mxu1 %vm280_vm1, %v5079_v1  ;;  %v3366_v1 = vsel %vm197_vm15, 1.0, %v6245_v2 }
  0xdf   :  { %3576 = vmatprep.mubr.msk.f32.mxu1 %vm280_vm1, %v3361_v9  ;;  %549 = vmatprep.mubr.f32.mxu0 %v6245_v2  ;;  %v147_v9 = vpop.permute.xlu1 %146 }
  0xe0   :  { %3670 = vmatpush1.bf16.msra.mxu1 %v5135_v11  ;;  %vm199_vm3 = vcmp.eq.s32.totalorder %v147_v9, %v4853_v61 }
  0xe1   :  { %3672 = vmatprep.subr.bf16.mxu1 %v5139_v40  ;;  %v3368_v18 = vsel %vm199_vm3, 1.0, %v6245_v2 }
  0xe2   :  { %3397 = vmatmul.mubr.msk.f32.gmra.mrb[36].mxu0 %vm280_vm1, %v3365_v20  ;;  %3577 = vmatmul.mubr.msk.f32.gmra.mrb[30].mxu1 %vm280_vm1, %v3362_v62  ;;  %v150_v62 = vpop.permute.xlu0 %149 }
  0xe3   :  { %3579 = vmatprep.mubr.msk.f32.mxu1 %vm280_vm1, %v3363_v44  ;;  %555 = vmatprep.mubr.f32.mxu0 %v6245_v2  ;;  %v3367_v44 = vsel %vm198_vm2, 1.0, %v6245_v2  ;;  %v153_v30 = vpop.permute.xlu1 %152  ;;  %vm200_vm4 = vcmp.eq.s32.totalorder %v150_v62, %v4853_v61 }
  0xe4   :  { %3674 = vmatpush1.bf16.msra.mxu1 %v5148_v16  ;;  %vm201_vm5 = vcmp.eq.s32.totalorder %v153_v30, %v4853_v61  ;;  %v3369_v22 = vsel %vm200_vm4, 1.0, %v6245_v2  ;;  %v5204_v61 = vld [vmem:[#allocation2] ss:$0 sm:$0xff] }
  0xe5   :  { %3708 = vmatprep.subr.bf16.mxu1 %v4908_v42  ;;  %6292 = vst [vmem:[#allocation14_spill] sm:$0xff] %v5204_v61 }
  0xe6   :  { %3398 = vmatmul.mubr.msk.f32.gmra.mrb[38].mxu0 %vm280_vm1, %v3366_v1  ;;  %3580 = vmatmul.mubr.msk.f32.gmra.mrb[32].mxu1 %vm280_vm1, %v3364_v33  ;;  %v3370_v33 = vsel %vm201_vm5, 1.0, %v6245_v2 }
  0xe7   :  { %3582 = vmatprep.mubr.msk.f32.mxu1 %vm280_vm1, %v3365_v20  ;;  %561 = vmatprep.mubr.f32.mxu0 %v6245_v2 }
  0xea   :  { %3399 = vmatmul.mubr.msk.f32.gmra.mrb[40].mxu0 %vm280_vm1, %v3367_v44  ;;  %3583 = vmatmul.mubr.msk.f32.gmra.mrb[34].mxu1 %vm280_vm1, %v3366_v1 }
  0xeb   :  { %3585 = vmatprep.mubr.msk.f32.mxu1 %vm280_vm1, %v3367_v44  ;;  %567 = vmatprep.mubr.f32.mxu0 %v6245_v2 }
  0xee   :  { %3400 = vmatmul.mubr.msk.f32.gmra.mrb[42].mxu0 %vm280_vm1, %v3368_v18  ;;  %3586 = vmatmul.mubr.msk.f32.gmra.mrb[36].mxu1 %vm280_vm1, %v3368_v18 }
  0xef   :  { %3588 = vmatprep.mubr.msk.f32.mxu1 %vm280_vm1, %v3369_v22  ;;  %573 = vmatprep.mubr.f32.mxu0 %v6245_v2 }
  0xf2   :  { %3401 = vmatmul.mubr.msk.f32.gmra.mrb[44].mxu0 %vm280_vm1, %v3369_v22  ;;  %3589 = vmatmul.mubr.msk.f32.gmra.mrb[38].mxu1 %vm280_vm1, %v3370_v33 }
  0xf3   :  { %3591 = vmatprep.mubr.msk.f32.mxu1 %vm280_vm1, %v4904_v38  ;;  %579 = vmatprep.mubr.f32.mxu0 %v6245_v2  ;;  %v957_v38 = vld [vmem:[%s6238_s3] sm:$0xff] }
  0xf6   :  { %3402 = vmatmul.mubr.msk.f32.gmra.mrb[46].mxu0 %vm280_vm1, %v3370_v33  ;;  %3592 = vmatmul.mubr.msk.f32.gmra.mrb[40].mxu1 %vm280_vm1, %v4926_v56 }
  0xf7   :  { %3594 = vmatprep.mubr.msk.f32.mxu1 %vm280_vm1, %v4947_v7  ;;  %1105 = vmatprep.mubr.f32.mxu0 %v6245_v2 }
  0xfa   :  { %3595 = vmatmul.mubr.msk.f32.gmra.mrb[42].mxu1 %vm280_vm1, %v4968_v23  ;;  %3445 = vmatmul.mubr.msk.f32.vlgmr.msra.gmra.mrb[0].mxu0 %vm952_vm0, %v4812_v47 }
  0xfb   :  { %3597 = vmatprep.mubr.msk.f32.mxu1 %vm280_vm1, %v4988_v34  ;;  %1111 = vmatprep.mubr.f32.mxu0 %v6245_v2  ;;  %v959_v34 = vld [vmem:[%s6238_s3 + $0x10] sm:$0xff] }
  0xfc   :  { %3678 = vmatpush1.bf16.msra.mxu0 %v4855_v5 }
  0xfd   :  { %3680 = vmatprep.subr.bf16.mxu0 %v4858_v6 }
  0xfe   :  { %3598 = vmatmul.mubr.msk.f32.gmra.mrb[44].mxu1 %vm280_vm1, %v5004_v41  ;;  %3446 = vmatmul.mubr.msk.f32.gmra.mrb[2].mxu0 %vm952_vm0, %v4829_v51 }
  0xff   :  { %3600 = vmatprep.mubr.msk.f32.mxu1 %vm280_vm1, %v5019_v46  ;;  %1117 = vmatprep.mubr.f32.mxu0 %v6245_v2 }
 0x100   :  { %v972_v56 = vpop.xlane.xlu0 %971  ;;  %3682 = vmatpush1.bf16.msra.mxu0 %v4867_v14 }
 0x101   :  { %v985_v7 = vadd.f32 %v5204_v61, %v972_v56  ;;  %3684 = vmatprep.subr.bf16.mxu0 %v4872_v15 }
 0x102   :  { %3601 = vmatmul.mubr.msk.f32.gmra.mrb[46].mxu1 %vm280_vm1, %v5033_v63  ;;  %3447 = vmatmul.mubr.msk.f32.gmra.mrb[4].mxu0 %vm952_vm0, %v4824_v50  ;;  %v958_v63 = vld [vmem:[%s6238_s3 + $0x8] sm:$0xff] }
 0x103   :  { %v989_v23 = vsub.f32 %v957_v38, %v985_v7  ;;  %1123 = vmatprep.mubr.f32.mxu0 %v6245_v2  ;;  %1194 = vmatprep.mubr.f32.mxu1 %v6245_v2 }
 0x104   :  { %v976_v41 = vpop.xlane.xlu0 %975  ;;  %3686 = vmatpush1.bf16.msra.mxu0 %v4884_v25 }
 0x105   :  { %v987_v46 = vadd.f32 %v5204_v61, %v976_v41  ;;  %v974_v52 = vpop.xlane.xlu1 %973  ;;  %995 = vperm.xlu1 %4267, %v989_v23   ;;  %3688 = vmatprep.subr.bf16.mxu0 %v4887_v26 }
 0x106   :  { %v986_v13 = vadd.f32 %v5204_v61, %v974_v52  ;;  %3448 = vmatmul.mubr.msk.f32.gmra.mrb[6].mxu0 %vm952_vm0, %v4843_v55  ;;  %3449 = vmatmul.mubr.msk.f32.vlgmr.msra.gmra.mrb[48].mxu1 %vm952_vm0, %v4812_v47 }
 0x107   :  { %v991_v35 = vsub.f32 %v959_v34, %v987_v46  ;;  %1200 = vmatprep.mubr.f32.mxu1 %v6245_v2  ;;  %3710 = vmatpush1.bf16.msra.mxu1 %v5043_v12 }
 0x108   :  { %v990_v20 = vsub.f32 %v958_v63, %v986_v13  ;;  %v978_v1 = vpop.xlane.xlu0 %977  ;;  %3712 = vmatprep.subr.bf16.mxu1 %v5048_v17  ;;  %3690 = vmatpush1.bf16.msra.mxu0 %v4898_v36 }
 0x109   :  { %v988_v9 = vadd.f32 %v5204_v61, %v978_v1  ;;  %1005 = vperm.xlu1 %4267, %v991_v35   ;;  %3692 = vmatprep.subr.bf16.mxu0 %v4906_v39 }
 0x10a   :  { %1000 = vperm.xlu0 %4266, %v990_v20   ;;  %3450 = vmatmul.mubr.msk.f32.gmra.mrb[50].mxu1 %vm952_vm0, %v4829_v51 }
 0x10b   :  { %v992_v47 = vsub.f32 %v960_v45, %v988_v9  ;;  %1206 = vmatprep.mubr.f32.mxu1 %v6245_v2  ;;  %3714 = vmatpush1.bf16.msra.mxu1 %v5059_v31 }
 0x10c   :  { %3716 = vmatprep.subr.bf16.mxu1 %v5065_v43  ;;  %3694 = vmatpush1.bf16.msra.mxu0 %v4920_v48 }
 0x10d   :  { %1010 = vperm.xlu1 %4267, %v992_v47   ;;  %3696 = vmatprep.subr.bf16.mxu0 %v4930_v57 }
 0x10e   :  { %3451 = vmatmul.mubr.msk.f32.gmra.mrb[52].mxu1 %vm952_vm0, %v4824_v50  ;;  %1383 = vmatprep.mubr.f32.mxu0 %v6245_v2 }
 0x10f   :  { %1212 = vmatprep.mubr.f32.mxu1 %v6245_v2  ;;  %3718 = vmatpush1.bf16.msra.mxu1 %v5076_v0 }
 0x110   :  { %3720 = vmatprep.subr.bf16.mxu1 %v5082_v10  ;;  %3698 = vmatpush1.bf16.msra.mxu0 %v4941_v3 }
 0x111   :  { %3700 = vmatprep.subr.bf16.mxu0 %v4950_v8 }
 0x112   :  { %3452 = vmatmul.mubr.msk.f32.gmra.mrb[54].mxu1 %vm952_vm0, %v4843_v55  ;;  %vm3309_vm0 = vcmask 7168  }
 0x113   :  { %3722 = vmatpush1.bf16.msra.mxu1 %v5093_v28  ;;  %1472 = vmatprep.mubr.f32.mxu1 %v6245_v2 }
 0x114   :  { %3724 = vmatprep.subr.bf16.mxu1 %v5097_v29  ;;  %3702 = vmatpush1.bf16.msra.mxu0 %v4962_v19 }
 0x115   :  { %3704 = vmatprep.subr.bf16.mxu0 %v4971_v24 }
 0x117   :  { %3726 = vmatpush1.bf16.msra.mxu1 %v5107_v59 }
 0x118   :  { %3728 = vmatprep.subr.bf16.mxu1 %v5111_v37  ;;  %3706 = vmatpush1.bf16.msra.mxu0 %v4982_v32 }
 0x119   :  { %3740 = vmatprep.subr.bf16.mxu0 %v4731_v21 }
 0x11b   :  { %3730 = vmatpush1.bf16.msra.mxu1 %v5121_v27 }
 0x11c   :  { %3732 = vmatprep.subr.bf16.mxu1 %v5125_v4 }
 0x11f   :  { %3734 = vmatpush1.bf16.msra.mxu1 %v5135_v11 }
 0x120   :  { %3736 = vmatprep.subr.bf16.mxu1 %v5139_v40 }
 0x123   :  { %3738 = vmatpush1.bf16.msra.mxu1 %v5148_v16 }
 0x124   :  { %3772 = vmatprep.subr.bf16.mxu1 %v4908_v42 }
 0x179   :  { %v5276_v50 = vpop.f32.mrb[0].mxu1 }
 0x17a   :  { %6293 = vst [vmem:[#allocation15_spill] sm:$0xff] %v5276_v50  ;;  %v5278_v51 = vpop.f32.mrb[1].mxu1 }
 0x17b   :  { %6294 = vst [vmem:[#allocation16_spill] sm:$0xff] %v5278_v51 }
 0x17d   :  { %v5280_v55 = vpop.f32.mrb[2].mxu1 }
 0x17e   :  { %6295 = vst [vmem:[#allocation17_spill] sm:$0xff] %v5280_v55  ;;  %v5282_v62 = vpop.f32.mrb[3].mxu1 }
 0x17f   :  { %6296 = vst [vmem:[#allocation18_spill] sm:$0xff] %v5282_v62 }
 0x181   :  { %v5284_v44 = vpop.f32.mrb[4].mxu1 }
 0x182   :  { %6297 = vst [vmem:[#allocation19_spill] sm:$0xff] %v5284_v44  ;;  %v5286_v30 = vpop.f32.mrb[5].mxu1  ;;  %v947_v44 = vld [vmem:[%s6241_s6] sm:$0x7] }
 0x183   :  { %6298 = vst [vmem:[#allocation20_spill] sm:$0xff] %v5286_v30 }
 0x185   :  { %v5288_v18 = vpop.f32.mrb[6].mxu1 }
 0x186   :  { %6299 = vst [vmem:[#allocation21_spill] sm:$0xff] %v5288_v18  ;;  %v5290_v22 = vpop.f32.mrb[7].mxu1 }
 0x187   :  { %6300 = vst [vmem:[#allocation22_spill] sm:$0xff] %v5290_v22  ;;  %v6324_v22 = vlaneseq }
 0x189   :  { %v5292_v33 = vpop.f32.mrb[8].mxu1  ;;  %v5347_v18 = vshrl.u32 %v6324_v22, 7 }
 0x18a   :  { %6301 = vst [vmem:[#allocation23_spill] sm:$0xff] %v5292_v33  ;;  %v5294_v38 = vpop.f32.mrb[9].mxu1 }
 0x18b   :  { %6302 = vst [vmem:[#allocation24_spill] sm:$0xff] %v5294_v38  ;;  %v927_v55 = vsub.s32 0, %v5347_v18  ;;  %v939_v32 = vsub.s32 3, %v5347_v18 }
 0x18d   :  { %v5296_v56 = vpop.f32.mrb[10].mxu1  ;;  %v1017_v50 = vrot.slane %v947_v44, %v927_v55 }
 0x18e   :  { %6303 = vst [vmem:[#allocation25_spill] sm:$0xff] %v5296_v56  ;;  %v5298_v7 = vpop.f32.mrb[11].mxu1 }
 0x18f   :  { %6304 = vst [vmem:[#allocation26_spill] sm:$0xff] %v5298_v7 }
 0x191   :  { %v5300_v23 = vpop.f32.mrb[12].mxu1 }
 0x192   :  { %6305 = vst [vmem:[#allocation27_spill] sm:$0xff] %v5300_v23  ;;  %v5302_v34 = vpop.f32.mrb[13].mxu1 }
 0x193   :  { %6306 = vst [vmem:[#allocation28_spill] sm:$0xff] %v5302_v34 }
 0x195   :  { %v5304_v41 = vpop.f32.mrb[14].mxu1 }
 0x196   :  { %6307 = vst [vmem:[#allocation29_spill] sm:$0xff] %v5304_v41  ;;  %v5306_v46 = vpop.f32.mrb[15].mxu1 }
 0x197   :  { %6308 = vst [vmem:[#allocation30_spill] sm:$0xff] %v5306_v46 }
 0x199   :  { %v5308_v63 = vpop.f32.mrb[16].mxu1 }
 0x19a   :  { %v5310_v52 = vpop.f32.mrb[17].mxu1 }
 0x19d   :  { %v5312_v13 = vpop.f32.mrb[18].mxu1 }
 0x19e   :  { %v5314_v35 = vpop.f32.mrb[19].mxu1 }
 0x1a1   :  { %v5316_v20 = vpop.f32.mrb[20].mxu1 }
 0x1a2   :  { %6309 = vst [vmem:[#allocation31_spill] sm:$0xff] %v5316_v20  ;;  %v5318_v45 = vpop.f32.mrb[21].mxu1 }
 0x1a3   :  { %6310 = vst [vmem:[#allocation32_spill] sm:$0xff] %v5318_v45 }
 0x1a5   :  { %v5320_v1 = vpop.f32.mrb[22].mxu1 }
 0x1a6   :  { %6311 = vst [vmem:[#allocation33_spill] sm:$0xff] %v5320_v1  ;;  %v5322_v9 = vpop.f32.mrb[23].mxu1 }
 0x1a7   :  { %6312 = vst [vmem:[#allocation34_spill] sm:$0xff] %v5322_v9 }
 0x1a9   :  { %v5324_v47 = vpop.f32.mrb[24].mxu1 }
 0x1aa   :  { %6313 = vst [vmem:[#allocation35_spill] sm:$0xff] %v5324_v47  ;;  %v5326_v2 = vpop.f32.mrb[25].mxu1 }
 0x1ab   :  { %6314 = vst [vmem:[#allocation36_spill] sm:$0xff] %v5326_v2 }
 0x1ad   :  { %v5328_v60 = vpop.f32.mrb[26].mxu1 }
 0x1ae   :  { %6315 = vst [vmem:[#allocation37_spill] sm:$0xff] %v5328_v60  ;;  %v5330_v46 = vpop.f32.mrb[27].mxu1 }
 0x1af   :  { %6316 = vst [vmem:[#allocation38_spill] sm:$0xff] %v5330_v46 }
 0x1b1   :  { %v5332_v41 = vpop.f32.mrb[28].mxu1 }
 0x1b2   :  { %6317 = vst [vmem:[#allocation39_spill] sm:$0xff] %v5332_v41  ;;  %v5334_v34 = vpop.f32.mrb[29].mxu1 }
 0x1b3   :  { %6318 = vst [vmem:[#allocation40_spill] sm:$0xff] %v5334_v34 }
 0x1b5   :  { %v5336_v23 = vpop.f32.mrb[30].mxu1 }
 0x1b6   :  { %6319 = vst [vmem:[#allocation41_spill] sm:$0xff] %v5336_v23  ;;  %v5338_v7 = vpop.f32.mrb[31].mxu1 }
 0x1b7   :  { %6320 = vst [vmem:[#allocation42_spill] sm:$0xff] %v5338_v7 }
 0x1b9   :  { %v5340_v56 = vpop.f32.mrb[32].mxu1 }
 0x1ba   :  { %6321 = vst [vmem:[#allocation43_spill] sm:$0xff] %v5340_v56  ;;  %v5342_v38 = vpop.f32.mrb[33].mxu1  ;;  %v996_v56 = vpop.permute.xlu1 %995 }
 0x1bb   :  { %6322 = vst [vmem:[#allocation44_spill] sm:$0xff] %v5342_v38  ;;  %v931_v38 = vsub.s32 1, %v5347_v18  ;;  %v1029_v7 = vmul.f32 %v1017_v50, %v996_v56 }
 0x1bd   :  { %v5344_v33 = vpop.f32.mrb[34].mxu1  ;;  %v1021_v23 = vrot.slane %v947_v44, %v931_v38 }
 0x1be   :  { %6323 = vst [vmem:[#allocation45_spill] sm:$0xff] %v5344_v33  ;;  %v5349_v30 = vpop.f32.mrb[35].mxu1  ;;  %v5376_v34 = vpop.permute.xlu1 %1005 }
 0x1bf   :  { %6325 = vst [vmem:[#allocation46_spill] sm:$0xff] %v5349_v30  ;;  %v5367_v30 = vld [vmem:[%s6240_s5] sm:$0xf] }
 0x1c0   :  { %v5383_v47 = vrot.slane %v5367_v30, %v931_v38  ;;  %v935_v38 = vsub.s32 2, %v5347_v18 }
 0x1c1   :  { %v5354_v62 = vpop.f32.mrb[36].mxu1 }
 0x1c2   :  { %6326 = vst [vmem:[#allocation47_spill] sm:$0xff] %v5354_v62  ;;  %v5357_v51 = vpop.f32.mrb[37].mxu1  ;;  %v5369_v62 = vpop.permute.xlu0 %1000 }
 0x1c3   :  { %6327 = vst [vmem:[#allocation48_spill] sm:$0xff] %v5357_v51  ;;  %v5374_v51 = vrot.slane %v5367_v30, %v927_v55  ;;  %v1033_v20 = vmul.f32 %v1021_v23, %v5369_v62  ;;  %v5392_v61 = vpop.permute.xlu1 %1010 }
 0x1c5   :  { %v5360_v33 = vpop.f32.mrb[38].mxu1  ;;  %6331 = vst [vmem:[#allocation52_spill] sm:$0xff] %v5374_v51  ;;  %v4125_v46 = vadd.f32 %v1029_v7, %v5374_v51  ;;  %v4131_v40 = vadd.f32 %v1033_v20, %v5383_v47 }
 0x1c6   :  { %6328 = vst [vmem:[#allocation49_spill] sm:$0xff] %v5360_v33  ;;  %v5362_v22 = vpop.f32.mrb[39].mxu1  ;;  %v1030_v33 = vmul.f32 %v1021_v23, %v996_v56 }
 0x1c7   :  { %6329 = vst [vmem:[#allocation50_spill] sm:$0xff] %v5362_v22  ;;  %v1032_v22 = vmul.f32 %v1017_v50, %v5369_v62 }
 0x1c8   :  { %v4127_v45 = vadd.f32 %v1030_v33, %v5383_v47 }
 0x1c9   :  { %v5371_v41 = vpop.f32.mrb[40].mxu1  ;;  %v4129_v7 = vadd.f32 %v1032_v22, %v5374_v51 }
 0x1ca   :  { %6330 = vst [vmem:[#allocation51_spill] sm:$0xff] %v5371_v41  ;;  %v5378_v60 = vpop.f32.mrb[41].mxu1 }
 0x1cb   :  { %6332 = vst [vmem:[#allocation53_spill] sm:$0xff] %v5378_v60  ;;  %v1035_v60 = vmul.f32 %v1017_v50, %v5376_v34 }
 0x1cd   :  { %v5385_v2 = vpop.f32.mrb[42].mxu1  ;;  %v1107_v1 = vpop.f32.mrb[0].mxu0  ;;  %v4133_v11 = vadd.f32 %v1035_v60, %v5374_v51 }
 0x1ce   :  { %6333 = vst [vmem:[#allocation54_spill] sm:$0xff] %v5385_v2  ;;  %v4126_v9 = vadd.f32 %v4125_v46, %v1107_v1  ;;  %v5387_v41 = vpop.f32.mrb[43].mxu1  ;;  %v1109_v55 = vpop.f32.mrb[1].mxu0  ;;  %v1036_v1 = vmul.f32 %v1021_v23, %v5376_v34 }
 0x1cf   :  { %6334 = vst [vmem:[#allocation55_spill] sm:$0xff] %v5387_v41  ;;  %v4128_v16 = vadd.f32 %v4127_v45, %v1109_v55  ;;  %v1025_v45 = vrot.slane %v947_v44, %v935_v38 }
 0x1d0   :  { %v3453_v42 = vmul.f32 -1.442695, %v4126_v9  ;;  %v1038_v9 = vmul.f32 %v1017_v50, %v5392_v61  ;;  %v4135_v20 = vadd.f32 %v1036_v1, %v5383_v47  ;;  %v5412_v50 = vrot.slane %v5367_v30, %v939_v32 }
 0x1d1   :  { %v5396_v2 = vpop.f32.mrb[44].mxu1  ;;  %v1113_v46 = vpop.f32.mrb[2].mxu0  ;;  %v3457_v55 = vmul.f32 -1.442695, %v4128_v16 }
 0x1d2   :  { %6335 = vst [vmem:[#allocation56_spill] sm:$0xff] %v5396_v2  ;;  %4268 = vpow2.f32 %v3453_v42  ;;  %v4130_v41 = vadd.f32 %v4129_v7, %v1113_v46  ;;  %v5399_v21 = vpop.f32.mrb[45].mxu1  ;;  %v1115_v33 = vpop.f32.mrb[3].mxu0  ;;  %v1039_v42 = vmul.f32 %v1021_v23, %v5392_v61  ;;  %6339 = vst [vmem:[#allocation60_spill] sm:$0xff] %v5412_v50  ;;  %v4137_v16 = vadd.f32 %v1038_v9, %v5374_v51 }
 0x1d3   :  { %6336 = vst [vmem:[#allocation57_spill] sm:$0xff] %v5399_v21  ;;  %v4132_v2 = vadd.f32 %v4131_v40, %v1115_v33  ;;  %v1031_v40 = vmul.f32 %v1025_v45, %v996_v56  ;;  %v1034_v56 = vmul.f32 %v1025_v45, %v5369_v62  ;;  %v5423_v62 = vrot.slane %v5367_v30, %v935_v38 }
 0x1d4   :  { %v3454_v22 = vmul.f32 -1.442695, %v4130_v41 }
 0x1d5   :  { %v5405_v24 = vpop.f32.mrb[46].mxu1  ;;  %v1119_v19 = vpop.f32.mrb[4].mxu0  ;;  %v3458_v44 = vmul.f32 -1.442695, %v4132_v2  ;;  %v1221_v1 = vadd.f32 %v1031_v40, %v5310_v52 }
 0x1d6   :  { %6337 = vst [vmem:[#allocation58_spill] sm:$0xff] %v5405_v24  ;;  %4270 = vpow2.f32 %v3454_v22  ;;  %v4134_v7 = vadd.f32 %v4133_v11, %v1119_v19  ;;  %v5408_v46 = vpop.f32.mrb[47].mxu1  ;;  %v1121_v18 = vpop.f32.mrb[5].mxu0  ;;  %v4139_v11 = vadd.f32 %v1039_v42, %v5383_v47 }
 0x1d7   :  { %6338 = vst [vmem:[#allocation59_spill] sm:$0xff] %v5408_v46  ;;  %v4136_v60 = vadd.f32 %v4135_v20, %v1121_v18  ;;  %4272 = vpow2.f32 %v3457_v55 }
 0x1d8   :  { %v3455_v41 = vmul.f32 -1.442695, %v4134_v7 }
 0x1d9   :  { %v1125_v33 = vpop.f32.mrb[6].mxu0  ;;  %v1196_v24 = vpop.f32.mrb[48].mxu1  ;;  %v3459_v7 = vmul.f32 -1.442695, %v4136_v60  ;;  %v1037_v60 = vmul.f32 %v1025_v45, %v5376_v34 }
 0x1da   :  { %4274 = vpow2.f32 %v3455_v41  ;;  %v4138_v23 = vadd.f32 %v4137_v16, %v1125_v33  ;;  %v1127_v19 = vpop.f32.mrb[7].mxu0  ;;  %v1198_v22 = vpop.f32.mrb[49].mxu1  ;;  %v1224_v16 = vadd.f32 %v5308_v63, %v1034_v56 }
 0x1db   :  { %v1199_v32 = vadd.f32 %v1198_v22, %v5412_v50  ;;  %v4140_v20 = vadd.f32 %v4139_v11, %v1127_v19  ;;  %4276 = vpow2.f32 %v3458_v44  ;;  %v1227_v11 = vadd.f32 %v1037_v60, %v5314_v35 }
 0x1dc   :  { %v4269_v46 = vpop.eup %4268  ;;  %v3456_v18 = vmul.f32 -1.442695, %v4138_v23 }
 0x1dd   :  { %v1255_v9 = vadd.f32 1.0, %v4269_v46  ;;  %v1239_v2 = vadd.f32 %v1221_v1, %v1199_v32  ;;  %v1202_v55 = vpop.f32.mrb[50].mxu1  ;;  %v3460_v40 = vmul.f32 -1.442695, %v4140_v20  ;;  %v1040_v1 = vmul.f32 %v1025_v45, %v5392_v61 }
 0x1de   :  { %4278 = vpow2.f32 %v3456_v18  ;;  %v1204_v41 = vpop.f32.mrb[51].mxu1  ;;  %v1197_v20 = vadd.f32 %v1196_v24, %v5423_v62 }
 0x1df   :  { %4280 = vrcp.f32 %v1255_v9  ;;  %v1205_v42 = vadd.f32 %v1204_v41, %v5412_v50  ;;  %v1230_v38 = vadd.f32 %v5312_v13, %v1040_v1 }
 0x1e0   :  { %v4271_v52 = vpop.eup %4270  ;;  %4282 = vpow2.f32 %v3459_v7 }
 0x1e1   :  { %v1256_v33 = vadd.f32 1.0, %v4271_v52  ;;  %v1240_v23 = vadd.f32 %v1224_v16, %v1205_v42  ;;  %v1208_v19 = vpop.f32.mrb[52].mxu1  ;;  %v4273_v44 = vpop.eup %4272 }
 0x1e2   :  { %v1210_v46 = vpop.f32.mrb[53].mxu1  ;;  %v1279_v18 = vadd.f32 1.0, %v4273_v44  ;;  %v1209_v44 = vadd.f32 %v1208_v19, %v5423_v62 }
 0x1e3   :  { %4284 = vrcp.f32 %v1256_v33  ;;  %v1211_v63 = vadd.f32 %v1210_v46, %v5412_v50 }
 0x1e4   :  { %v4275_v22 = vpop.eup %4274  ;;  %4286 = vpow2.f32 %v3460_v40  ;;  %v1203_v40 = vadd.f32 %v1202_v55, %v5423_v62 }
 0x1e5   :  { %v1257_v32 = vadd.f32 1.0, %v4275_v22  ;;  %v1241_v7 = vadd.f32 %v1227_v11, %v1211_v63  ;;  %v1214_v34 = vpop.f32.mrb[54].mxu1  ;;  %v4277_v30 = vpop.eup %4276 }
 0x1e6   :  { %v1216_v56 = vpop.f32.mrb[55].mxu1  ;;  %v1280_v61 = vadd.f32 1.0, %v4277_v30 }
 0x1e7   :  { %4288 = vrcp.f32 %v1257_v32  ;;  %v1217_v35 = vadd.f32 %v1216_v56, %v5412_v50  ;;  %v1215_v32 = vadd.f32 %v1214_v34, %v5423_v62 }
 0x1e8   :  { %v4279_v9 = vpop.eup %4278  ;;  %4290 = vrcp.f32 %v1279_v18 }
 0x1e9   :  { %v4281_v41 = vpop.eup %4280  ;;  %v1258_v16 = vadd.f32 1.0, %v4279_v9  ;;  %v1242_v42 = vadd.f32 %v1230_v38, %v1217_v35 }
 0x1ea   :  { %v4283_v52 = vpop.eup %4282  ;;  %v1291_v45 = vmul.f32 %v4281_v41, %v1197_v20 }
 0x1eb   :  { %4292 = vrcp.f32 %v1258_v16  ;;  %v1281_v33 = vadd.f32 1.0, %v4283_v52 }
 0x1ec   :  { %v1295_v60 = vadd.f32 %v1291_v45, %v1239_v2  ;;  %4294 = vrcp.f32 %v1280_v61  ;;  %v6340_v45 = vmov 0.0  }
 0x1ed   :  { %v4285_v24 = vpop.eup %4284 }
 0x1ee   :  { %v4287_v46 = vpop.eup %4286  ;;  %v1292_v13 = vmul.f32 %v4285_v24, %v1203_v40  ;;  %4296 = vtanh.f32 %v1295_v60 }
 0x1ef   :  { %4298 = vrcp.f32 %v1281_v33  ;;  %v1282_v22 = vadd.f32 1.0, %v4287_v46 }
 0x1f0   :  { %v1296_v11 = vadd.f32 %v1292_v13, %v1240_v23 }
 0x1f1   :  { %v4289_v63 = vpop.eup %4288 }
 0x1f2   :  { %4300 = vtanh.f32 %v1296_v11  ;;  %v1293_v1 = vmul.f32 %v4289_v63, %v1209_v44  ;;  %v4291_v18 = vpop.eup %4290 }
 0x1f3   :  { %4302 = vrcp.f32 %v1282_v22  ;;  %v1303_v30 = vsub.f32 1.0, %v4291_v18  ;;  %v1311_v23 = vmul.f32 %v4291_v18, %v4819_v49  ;;  %v6342_v18 = vld [vmem:[#allocation9_spill] sm:$0xff] }
 0x1f4   :  { %v1297_v55 = vadd.f32 %v1293_v1, %v1241_v7 }
 0x1f5   :  { %v4293_v20 = vpop.eup %4292 }
 0x1f6   :  { %4304 = vtanh.f32 %v1297_v55  ;;  %v1294_v2 = vmul.f32 %v4293_v20, %v1215_v32  ;;  %v4295_v56 = vpop.eup %4294  ;;  %v6341_v32 = vld [vmem:[#allocation8_spill] sm:$0xff]  ;;  %v6343_v55 = vld [vmem:[#allocation11_spill] sm:$0xff] }
 0x1f7   :  { %v1304_v41 = vsub.f32 1.0, %v4295_v56  ;;  %v1312_v7 = vmul.f32 %v4295_v56, %v4838_v54  ;;  %v6344_v20 = vld [vmem:[#allocation12_spill] sm:$0xff]  ;;  %v6346_v56 = vld [vmem:[#allocation6_spill] sm:$0xff] }
 0x1f8   :  { %v1298_v38 = vadd.f32 %v1294_v2, %v1242_v42  ;;  %v4297_v35 = vpop.eup %4296  ;;  %v5443_v42 = vld [vmem:[%s6242_s7] ss:$0 sm:$0xff]  ;;  %v6345_v2 = vld [vmem:[#allocation10_spill] sm:$0xff] }
 0x1f9   :  { %v1307_v19 = vmul.f32 %v4297_v35, %v1303_v30  ;;  %v4299_v9 = vpop.eup %4298  ;;  %v6347_v30 = vld [vmem:[#allocation13_spill] sm:$0xff] }
 0x1fa   :  { %4306 = vtanh.f32 %v1298_v38  ;;  %v1305_v54 = vsub.f32 1.0, %v4299_v9  ;;  %v1313_v46 = vmul.f32 %v4299_v9, %v4834_v53  ;;  %v6348_v38 = vld [vmem:[#allocation7_spill] sm:$0xff] }
 0x1fb   :  { %v5435_v52 = vadd.f32 %v1311_v23, %v1307_v19  ;;  %v6349_v19 = vld [vmem:[#allocation14_spill] sm:$0xff] }
 0x1fc   :  { %v4301_v16 = vpop.eup %4300 }
 0x1fd   :  { %v1308_v34 = vmul.f32 %v4301_v16, %v1304_v41  ;;  %1384 = vmatmul.mubr.f32.vlgmr.msra.gmra.mrb[8].mxu0 %v5435_v52  ;;  %1473 = vmatmul.mubr.f32.vlgmr.msra.gmra.mrb[56].mxu1 %v5435_v52  ;;  %v3181_v49 = vmul.f32 %v5443_v42, %v5435_v52  ;;  %v4303_v61 = vpop.eup %4302 }
 0x1fe   :  { %1389 = vmatprep.mubr.f32.mxu0 %v6340_v45  ;;  %1478 = vmatprep.mubr.f32.mxu1 %v6340_v45  ;;  %v1306_v44 = vsub.f32 1.0, %v4303_v61  ;;  %v1314_v22 = vmul.f32 %v4303_v61, %v4849_v58 }
 0x1ff   :  { %v5449_v40 = vadd.f32 %v1312_v7, %v1308_v34  ;;  %3213 = vadd.xlane.f32.xlu0 %v3181_v49  ;;  %3742 = vmatpush1.bf16.msra.mxu0 %v4855_v5 }
 0x200   :  { %v4305_v60 = vpop.eup %4304  ;;  %3774 = vmatpush1.bf16.msra.mxu1 %v5043_v12  ;;  %3744 = vmatprep.subr.bf16.mxu0 %v4858_v6 }
 0x201   :  { %v3182_v24 = vmul.f32 %v5443_v42, %v5449_v40  ;;  %v1309_v33 = vmul.f32 %v4305_v60, %v1305_v54  ;;  %1390 = vmatmul.mubr.f32.gmra.mrb[10].mxu0 %v5449_v40  ;;  %1479 = vmatmul.mubr.f32.gmra.mrb[58].mxu1 %v5449_v40 }
 0x202   :  { %1395 = vmatprep.mubr.f32.mxu0 %v6340_v45  ;;  %1484 = vmatprep.mubr.f32.mxu1 %v6340_v45 }
 0x203   :  { %3215 = vadd.xlane.f32.xlu1 %v3182_v24  ;;  %v5460_v13 = vadd.f32 %v1313_v46, %v1309_v33  ;;  %3776 = vmatprep.subr.bf16.mxu1 %v5048_v17 }
 0x204   :  { %v4307_v11 = vpop.eup %4306  ;;  %3746 = vmatpush1.bf16.msra.mxu0 %v4867_v14  ;;  %3778 = vmatpush1.bf16.msra.mxu1 %v5059_v31 }
 0x205   :  { %v3183_v53 = vmul.f32 %v5443_v42, %v5460_v13  ;;  %v1310_v63 = vmul.f32 %v4307_v11, %v1306_v44  ;;  %1396 = vmatmul.mubr.f32.gmra.mrb[12].mxu0 %v5460_v13  ;;  %1485 = vmatmul.mubr.f32.gmra.mrb[60].mxu1 %v5460_v13 }
 0x206   :  { %1401 = vmatprep.mubr.f32.mxu0 %v6340_v45  ;;  %1490 = vmatprep.mubr.f32.mxu1 %v6340_v45 }
 0x207   :  { %3217 = vadd.xlane.f32.xlu0 %v3183_v53  ;;  %v5472_v1 = vadd.f32 %v1314_v22, %v1310_v63  ;;  %3748 = vmatprep.subr.bf16.mxu0 %v4872_v15  ;;  %v6350_v53 = vld [vmem:[#allocation32_spill] sm:$0xff] }
 0x208   :  { %3780 = vmatprep.subr.bf16.mxu1 %v5065_v43  ;;  %3750 = vmatpush1.bf16.msra.mxu0 %v4884_v25 }
 0x209   :  { %v3184_v58 = vmul.f32 %v5443_v42, %v5472_v1  ;;  %1402 = vmatmul.mubr.f32.gmra.mrb[14].mxu0 %v5472_v1  ;;  %1491 = vmatmul.mubr.f32.gmra.mrb[62].mxu1 %v5472_v1 }
 0x20a   :  { %3782 = vmatpush1.bf16.msra.mxu1 %v5076_v0  ;;  %3752 = vmatprep.subr.bf16.mxu0 %v4887_v26 }
 0x20b   :  { %3219 = vadd.xlane.f32.xlu0 %v3184_v58  ;;  %3784 = vmatprep.subr.bf16.mxu1 %v5082_v10 }
 0x20c   :  { %3754 = vmatpush1.bf16.msra.mxu0 %v4898_v36  ;;  %1649 = vmatprep.mubr.f32.mxu0 %v6340_v45 }
 0x20d   :  { %3756 = vmatprep.subr.bf16.mxu0 %v4906_v39  ;;  %1738 = vmatprep.mubr.f32.mxu1 %v6340_v45 }
 0x20e   :  { %3786 = vmatpush1.bf16.msra.mxu1 %v5093_v28 }
 0x20f   :  { %3788 = vmatprep.subr.bf16.mxu1 %v5097_v29 }
 0x210   :  { %3758 = vmatpush1.bf16.msra.mxu0 %v4920_v48 }
 0x211   :  { %3760 = vmatprep.subr.bf16.mxu0 %v4930_v57 }
 0x212   :  { %3790 = vmatpush1.bf16.msra.mxu1 %v5107_v59 }
 0x213   :  { %3792 = vmatprep.subr.bf16.mxu1 %v5111_v37 }
 0x214   :  { %3762 = vmatpush1.bf16.msra.mxu0 %v4941_v3 }
 0x215   :  { %3764 = vmatprep.subr.bf16.mxu0 %v4950_v8 }
 0x216   :  { %3794 = vmatpush1.bf16.msra.mxu1 %v5121_v27 }
 0x217   :  { %3796 = vmatprep.subr.bf16.mxu1 %v5125_v4 }
 0x218   :  { %3766 = vmatpush1.bf16.msra.mxu0 %v6341_v32 }
 0x219   :  { %3768 = vmatprep.subr.bf16.mxu0 %v6342_v18 }
 0x21a   :  { %3798 = vmatpush1.bf16.msra.mxu1 %v6343_v55 }
 0x21b   :  { %3800 = vmatprep.subr.bf16.mxu1 %v6344_v20 }
 0x21c   :  { %3770 = vmatpush1.bf16.msra.mxu0 %v6345_v2 }
 0x21d   :  { %3804 = vmatprep.subr.bf16.mxu0 %v6346_v56 }
 0x21e   :  { %3802 = vmatpush1.bf16.msra.mxu1 %v6347_v30 }
 0x21f   :  { %3836 = vmatprep.subr.bf16.mxu1 %v6348_v38 }
 0x28c   :  { %v3214_v35 = vpop.xlane.xlu0 %3213 }
 0x28d   :  { %v3277_v23 = vadd.f32 %v6349_v19, %v3214_v35 }
 0x28f   :  { %3310 = vst.msk [vmem:[%s6244_s9] sm:$0xff] %vm3309_vm0, %v3277_v23 }
 0x290   :  { %v3216_v9 = vpop.xlane.xlu1 %3215 }
 0x291   :  { %v3278_v41 = vadd.f32 %v6349_v19, %v3216_v9 }
 0x293   :  { %3311 = vst.msk [vmem:[%s6244_s9 + $0x8] sm:$0xff] %vm3309_vm0, %v3278_v41 }
 0x294   :  { %v3218_v16 = vpop.xlane.xlu0 %3217 }
 0x295   :  { %v3279_v34 = vadd.f32 %v6349_v19, %v3218_v16 }
 0x297   :  { %3312 = vst.msk [vmem:[%s6244_s9 + $0x10] sm:$0xff] %vm3309_vm0, %v3279_v34 }
 0x298   :  { %v3220_v7 = vpop.xlane.xlu0 %3219 }
 0x299   :  { %v3280_v49 = vadd.f32 %v6349_v19, %v3220_v7  ;;  %v6351_v7 = vld [vmem:[#allocation31_spill] sm:$0xff] }
 0x29b   :  { %3313 = vst.msk [vmem:[%s6244_s9 + $0x18] sm:$0xff] %vm3309_vm0, %v3280_v49 }
 0x2d0   :  { %v1385_v61 = vpop.f32.mrb[8].mxu0  ;;  %v1474_v54 = vpop.f32.mrb[56].mxu1 }
 0x2d1   :  { %v1386_v60 = vadd.f32 %v1385_v61, %v5374_v51  ;;  %v1387_v24 = vpop.f32.mrb[9].mxu0  ;;  %v1476_v33 = vpop.f32.mrb[57].mxu1 }
 0x2d2   :  { %v1477_v46 = vadd.f32 %v1476_v33, %v5412_v50  ;;  %v1388_v11 = vadd.f32 %v1387_v24, %v5383_v47 }
 0x2d3   :  { %v3461_v44 = vmul.f32 -1.442695, %v1386_v60 }
 0x2d4   :  { %v1505_v63 = vadd.f32 %v1477_v46, %v6350_v53  ;;  %v1391_v22 = vpop.f32.mrb[10].mxu0  ;;  %v1480_v58 = vpop.f32.mrb[58].mxu1  ;;  %v3465_v34 = vmul.f32 -1.442695, %v1388_v11 }
 0x2d5   :  { %4308 = vpow2.f32 %v3461_v44  ;;  %v1392_v35 = vadd.f32 %v1391_v22, %v5374_v51  ;;  %v1393_v19 = vpop.f32.mrb[11].mxu0  ;;  %v1482_v23 = vpop.f32.mrb[59].mxu1 }
 0x2d6   :  { %v1483_v9 = vadd.f32 %v1482_v23, %v5412_v50  ;;  %v1394_v16 = vadd.f32 %v1393_v19, %v5383_v47 }
 0x2d7   :  { %v3462_v41 = vmul.f32 -1.442695, %v1392_v35  ;;  %v6352_v35 = vld [vmem:[#allocation34_spill] sm:$0xff] }
 0x2d8   :  { %v1506_v49 = vadd.f32 %v6351_v7, %v1483_v9  ;;  %v1397_v61 = vpop.f32.mrb[12].mxu0  ;;  %v1486_v60 = vpop.f32.mrb[60].mxu1  ;;  %v3466_v53 = vmul.f32 -1.442695, %v1394_v16 }
 0x2d9   :  { %4310 = vpow2.f32 %v3462_v41  ;;  %v1398_v24 = vadd.f32 %v1397_v61, %v5374_v51  ;;  %v1399_v33 = vpop.f32.mrb[13].mxu0  ;;  %v1488_v46 = vpop.f32.mrb[61].mxu1 }
 0x2da   :  { %v1489_v44 = vadd.f32 %v1488_v46, %v5412_v50  ;;  %v1400_v21 = vadd.f32 %v1399_v33, %v5383_v47  ;;  %4312 = vpow2.f32 %v3465_v34  ;;  %v6353_v33 = vld [vmem:[#allocation33_spill] sm:$0xff] }
 0x2db   :  { %v3463_v22 = vmul.f32 -1.442695, %v1398_v24 }
 0x2dc   :  { %v1507_v23 = vadd.f32 %v1489_v44, %v6352_v35  ;;  %v1403_v19 = vpop.f32.mrb[14].mxu0  ;;  %v1492_v11 = vpop.f32.mrb[62].mxu1  ;;  %v3467_v30 = vmul.f32 -1.442695, %v1400_v21 }
 0x2dd   :  { %4314 = vpow2.f32 %v3463_v22  ;;  %v1404_v9 = vadd.f32 %v1403_v19, %v5374_v51  ;;  %v1405_v7 = vpop.f32.mrb[15].mxu0  ;;  %v1494_v41 = vpop.f32.mrb[63].mxu1 }
 0x2de   :  { %v1495_v61 = vadd.f32 %v1494_v41, %v5412_v50  ;;  %4316 = vpow2.f32 %v3466_v53  ;;  %v1406_v16 = vadd.f32 %v1405_v7, %v5383_v47 }
 0x2df   :  { %v4309_v38 = vpop.eup %4308  ;;  %v3464_v46 = vmul.f32 -1.442695, %v1404_v9  ;;  %v1475_v9 = vadd.f32 %v1474_v54, %v5423_v62 }
 0x2e0   :  { %v1521_v24 = vadd.f32 1.0, %v4309_v38  ;;  %v1508_v34 = vadd.f32 %v6353_v33, %v1495_v61  ;;  %v3468_v22 = vmul.f32 -1.442695, %v1406_v16  ;;  %v1481_v16 = vadd.f32 %v1480_v58, %v5423_v62 }
 0x2e1   :  { %4318 = vpow2.f32 %v3464_v46 }
 0x2e2   :  { %4320 = vrcp.f32 %v1521_v24 }
 0x2e3   :  { %v4311_v44 = vpop.eup %4310  ;;  %4322 = vpow2.f32 %v3467_v30 }
 0x2e4   :  { %v1522_v35 = vadd.f32 1.0, %v4311_v44  ;;  %v4313_v19 = vpop.eup %4312 }
 0x2e5   :  { %v1545_v53 = vadd.f32 1.0, %v4313_v19  ;;  %v1487_v19 = vadd.f32 %v1486_v60, %v5423_v62 }
 0x2e6   :  { %4324 = vrcp.f32 %v1522_v35 }
 0x2e7   :  { %v4315_v51 = vpop.eup %4314  ;;  %4326 = vpow2.f32 %v3468_v22 }
 0x2e8   :  { %v1523_v41 = vadd.f32 1.0, %v4315_v51  ;;  %v4317_v50 = vpop.eup %4316 }
 0x2e9   :  { %v1546_v7 = vadd.f32 1.0, %v4317_v50 }
 0x2ea   :  { %4328 = vrcp.f32 %v1523_v41 }
 0x2eb   :  { %v4319_v21 = vpop.eup %4318  ;;  %4330 = vrcp.f32 %v1545_v53 }
 0x2ec   :  { %v4321_v38 = vpop.eup %4320  ;;  %v1524_v61 = vadd.f32 1.0, %v4319_v21 }
 0x2ed   :  { %v4323_v46 = vpop.eup %4322  ;;  %v1557_v24 = vmul.f32 %v4321_v38, %v1475_v9 }
 0x2ee   :  { %4332 = vrcp.f32 %v1524_v61  ;;  %v1547_v44 = vadd.f32 1.0, %v4323_v46 }
 0x2ef   :  { %v1561_v30 = vadd.f32 %v1557_v24, %v1505_v63  ;;  %4334 = vrcp.f32 %v1546_v7  ;;  %v1493_v63 = vadd.f32 %v1492_v11, %v5423_v62 }
 0x2f0   :  { %v4325_v33 = vpop.eup %4324 }
 0x2f1   :  { %v4327_v51 = vpop.eup %4326  ;;  %4336 = vtanh.f32 %v1561_v30  ;;  %v1558_v22 = vmul.f32 %v4325_v33, %v1481_v16 }
 0x2f2   :  { %4338 = vrcp.f32 %v1547_v44  ;;  %v1548_v50 = vadd.f32 1.0, %v4327_v51 }
 0x2f3   :  { %v1562_v35 = vadd.f32 %v1558_v22, %v1506_v49 }
 0x2f4   :  { %v4329_v54 = vpop.eup %4328 }
 0x2f5   :  { %4340 = vtanh.f32 %v1562_v35  ;;  %v1559_v41 = vmul.f32 %v4329_v54, %v1487_v19  ;;  %v4331_v21 = vpop.eup %4330 }
 0x2f6   :  { %4342 = vrcp.f32 %v1548_v50  ;;  %v1569_v7 = vsub.f32 1.0, %v4331_v21  ;;  %v1577_v60 = vmul.f32 %v4331_v21, %v5435_v52 }
 0x2f7   :  { %v1563_v53 = vadd.f32 %v1559_v41, %v1507_v23 }
 0x2f8   :  { %v4333_v9 = vpop.eup %4332 }
 0x2f9   :  { %4344 = vtanh.f32 %v1563_v53  ;;  %v1560_v58 = vmul.f32 %v4333_v9, %v1493_v63  ;;  %v4335_v38 = vpop.eup %4334  ;;  %v6354_v9 = vld [vmem:[#allocation13_spill] sm:$0xff] }
 0x2fa   :  { %v1570_v16 = vsub.f32 1.0, %v4335_v38  ;;  %v1578_v44 = vmul.f32 %v4335_v38, %v5449_v40 }
 0x2fb   :  { %v4337_v61 = vpop.eup %4336  ;;  %v1564_v46 = vadd.f32 %v1560_v58, %v1508_v34  ;;  %v6355_v58 = vld [vmem:[#allocation7_spill] sm:$0xff] }
 0x2fc   :  { %v1573_v49 = vmul.f32 %v4337_v61, %v1569_v7  ;;  %v4339_v24 = vpop.eup %4338  ;;  %v5615_v7 = vld [vmem:[#allocation2] ss:$0 sm:$0xff] }
 0x2fd   :  { %4346 = vtanh.f32 %v1564_v46  ;;  %v1571_v51 = vsub.f32 1.0, %v4339_v24  ;;  %v1579_v19 = vmul.f32 %v4339_v24, %v5460_v13  ;;  %6356 = vst [vmem:[#allocation8_spill] sm:$0xff] %v5615_v7 }
 0x2fe   :  { %v5548_v30 = vadd.f32 %v1577_v60, %v1573_v49 }
 0x2ff   :  { %v4341_v33 = vpop.eup %4340 }
 0x300   :  { %1650 = vmatmul.mubr.f32.vlgmr.msra.gmra.mrb[16].mxu0 %v5548_v30  ;;  %1739 = vmatmul.mubr.f32.vlgmr.msra.gmra.mrb[64].mxu1 %v5548_v30  ;;  %v3185_v23 = vmul.f32 %v5443_v42, %v5548_v30  ;;  %v1574_v11 = vmul.f32 %v4341_v33, %v1570_v16  ;;  %v4343_v52 = vpop.eup %4342 }
 0x301   :  { %1655 = vmatprep.mubr.f32.mxu0 %v6340_v45  ;;  %1744 = vmatprep.mubr.f32.mxu1 %v6340_v45  ;;  %v1572_v50 = vsub.f32 1.0, %v4343_v52  ;;  %v1580_v53 = vmul.f32 %v4343_v52, %v5472_v1 }
 0x302   :  { %3221 = vadd.xlane.f32.xlu1 %v3185_v23  ;;  %v5557_v34 = vadd.f32 %v1578_v44, %v1574_v11  ;;  %3806 = vmatpush1.bf16.msra.mxu0 %v4855_v5  ;;  %v6357_v44 = vld [vmem:[#allocation52_spill] sm:$0xff] }
 0x303   :  { %v4345_v22 = vpop.eup %4344  ;;  %3838 = vmatpush1.bf16.msra.mxu1 %v5043_v12  ;;  %3808 = vmatprep.subr.bf16.mxu0 %v4858_v6 }
 0x304   :  { %1656 = vmatmul.mubr.f32.gmra.mrb[18].mxu0 %v5557_v34  ;;  %1745 = vmatmul.mubr.f32.gmra.mrb[66].mxu1 %v5557_v34  ;;  %v3186_v40 = vmul.f32 %v5443_v42, %v5557_v34  ;;  %v1575_v35 = vmul.f32 %v4345_v22, %v1571_v51 }
 0x305   :  { %1661 = vmatprep.mubr.f32.mxu0 %v6340_v45  ;;  %1750 = vmatprep.mubr.f32.mxu1 %v6340_v45 }
 0x306   :  { %3223 = vadd.xlane.f32.xlu0 %v3186_v40  ;;  %v5569_v54 = vadd.f32 %v1579_v19, %v1575_v35  ;;  %3840 = vmatprep.subr.bf16.mxu1 %v5048_v17  ;;  %v6358_v40 = vld [vmem:[#allocation60_spill] sm:$0xff] }
 0x307   :  { %v4347_v41 = vpop.eup %4346  ;;  %3810 = vmatpush1.bf16.msra.mxu0 %v4867_v14  ;;  %3842 = vmatpush1.bf16.msra.mxu1 %v5059_v31 }
 0x308   :  { %1662 = vmatmul.mubr.f32.gmra.mrb[20].mxu0 %v5569_v54  ;;  %1751 = vmatmul.mubr.f32.gmra.mrb[68].mxu1 %v5569_v54  ;;  %v3187_v13 = vmul.f32 %v5443_v42, %v5569_v54  ;;  %v1576_v21 = vmul.f32 %v4347_v41, %v1572_v50  ;;  %v6359_v41 = vld [vmem:[#allocation36_spill] sm:$0xff] }
 0x309   :  { %1667 = vmatprep.mubr.f32.mxu0 %v6340_v45  ;;  %1756 = vmatprep.mubr.f32.mxu1 %v6340_v45 }
 0x30a   :  { %3225 = vadd.xlane.f32.xlu1 %v3187_v13  ;;  %v5581_v63 = vadd.f32 %v1580_v53, %v1576_v21  ;;  %3812 = vmatprep.subr.bf16.mxu0 %v4872_v15 }
 0x30b   :  { %3844 = vmatprep.subr.bf16.mxu1 %v5065_v43  ;;  %3814 = vmatpush1.bf16.msra.mxu0 %v4884_v25 }
 0x30c   :  { %1668 = vmatmul.mubr.f32.gmra.mrb[22].mxu0 %v5581_v63  ;;  %1757 = vmatmul.mubr.f32.gmra.mrb[70].mxu1 %v5581_v63  ;;  %v3188_v1 = vmul.f32 %v5443_v42, %v5581_v63 }
 0x30d   :  { %3846 = vmatpush1.bf16.msra.mxu1 %v5076_v0  ;;  %3816 = vmatprep.subr.bf16.mxu0 %v4887_v26 }
 0x30e   :  { %3227 = vadd.xlane.f32.xlu0 %v3188_v1  ;;  %3848 = vmatprep.subr.bf16.mxu1 %v5082_v10 }
 0x30f   :  { %3818 = vmatpush1.bf16.msra.mxu0 %v4898_v36  ;;  %1915 = vmatprep.mubr.f32.mxu0 %v6340_v45 }
 0x310   :  { %3820 = vmatprep.subr.bf16.mxu0 %v4906_v39  ;;  %2004 = vmatprep.mubr.f32.mxu1 %v6340_v45 }
 0x311   :  { %3850 = vmatpush1.bf16.msra.mxu1 %v5093_v28 }
 0x312   :  { %3852 = vmatprep.subr.bf16.mxu1 %v5097_v29 }
 0x313   :  { %3822 = vmatpush1.bf16.msra.mxu0 %v4920_v48 }
 0x314   :  { %3824 = vmatprep.subr.bf16.mxu0 %v4930_v57 }
 0x315   :  { %3854 = vmatpush1.bf16.msra.mxu1 %v5107_v59 }
 0x316   :  { %3856 = vmatprep.subr.bf16.mxu1 %v5111_v37 }
 0x317   :  { %3826 = vmatpush1.bf16.msra.mxu0 %v4941_v3 }
 0x318   :  { %3828 = vmatprep.subr.bf16.mxu0 %v4950_v8 }
 0x319   :  { %3858 = vmatpush1.bf16.msra.mxu1 %v5121_v27 }
 0x31a   :  { %3860 = vmatprep.subr.bf16.mxu1 %v5125_v4 }
 0x31b   :  { %3830 = vmatpush1.bf16.msra.mxu0 %v6341_v32 }
 0x31c   :  { %3832 = vmatprep.subr.bf16.mxu0 %v6342_v18 }
 0x31d   :  { %3862 = vmatpush1.bf16.msra.mxu1 %v6343_v55 }
 0x31e   :  { %3864 = vmatprep.subr.bf16.mxu1 %v6344_v20 }
 0x31f   :  { %3834 = vmatpush1.bf16.msra.mxu0 %v6345_v2 }
 0x320   :  { %3868 = vmatprep.subr.bf16.mxu0 %v6346_v56 }
 0x321   :  { %3866 = vmatpush1.bf16.msra.mxu1 %v6354_v9 }
 0x322   :  { %3900 = vmatprep.subr.bf16.mxu1 %v6355_v58 }
 0x38f   :  { %v3222_v38 = vpop.xlane.xlu1 %3221 }
 0x390   :  { %v3281_v61 = vadd.f32 %v5615_v7, %v3222_v38 }
 0x392   :  { %3314 = vst.msk [vmem:[%s6244_s9 + $0x20] sm:$0xff] %vm3309_vm0, %v3281_v61 }
 0x393   :  { %v3224_v46 = vpop.xlane.xlu0 %3223 }
 0x394   :  { %v3282_v49 = vadd.f32 %v5615_v7, %v3224_v46 }
 0x396   :  { %3315 = vst.msk [vmem:[%s6244_s9 + $0x28] sm:$0xff] %vm3309_vm0, %v3282_v49 }
 0x397   :  { %v3226_v60 = vpop.xlane.xlu1 %3225 }
 0x398   :  { %v3283_v24 = vadd.f32 %v5615_v7, %v3226_v60 }
 0x39a   :  { %3316 = vst.msk [vmem:[%s6244_s9 + $0x30] sm:$0xff] %vm3309_vm0, %v3283_v24 }
 0x39b   :  { %v3228_v16 = vpop.xlane.xlu0 %3227 }
 0x39c   :  { %v3284_v33 = vadd.f32 %v5615_v7, %v3228_v16  ;;  %v6360_v16 = vld [vmem:[#allocation35_spill] sm:$0xff] }
 0x39e   :  { %3317 = vst.msk [vmem:[%s6244_s9 + $0x38] sm:$0xff] %vm3309_vm0, %v3284_v33 }
 0x3d3   :  { %v1651_v23 = vpop.f32.mrb[16].mxu0  ;;  %v1740_v11 = vpop.f32.mrb[64].mxu1 }
 0x3d4   :  { %v1652_v52 = vadd.f32 %v1651_v23, %v6357_v44  ;;  %v1653_v51 = vpop.f32.mrb[17].mxu0  ;;  %v1742_v22 = vpop.f32.mrb[65].mxu1 }
 0x3d5   :  { %v1743_v35 = vadd.f32 %v1742_v22, %v6358_v40  ;;  %v1654_v50 = vadd.f32 %v1653_v51, %v5383_v47 }
 0x3d6   :  { %v3469_v19 = vmul.f32 -1.442695, %v1652_v52 }
 0x3d7   :  { %v1771_v13 = vadd.f32 %v1743_v35, %v6359_v41  ;;  %v1657_v21 = vpop.f32.mrb[18].mxu0  ;;  %v1746_v53 = vpop.f32.mrb[66].mxu1  ;;  %v3473_v24 = vmul.f32 -1.442695, %v1654_v50 }
 0x3d8   :  { %4348 = vpow2.f32 %v3469_v19  ;;  %v1658_v1 = vadd.f32 %v1657_v21, %v6357_v44  ;;  %v1659_v38 = vpop.f32.mrb[19].mxu0  ;;  %v1748_v61 = vpop.f32.mrb[67].mxu1 }
 0x3d9   :  { %v1749_v46 = vadd.f32 %v1748_v61, %v6358_v40  ;;  %v1660_v60 = vadd.f32 %v1659_v38, %v5383_v47 }
 0x3da   :  { %v3470_v49 = vmul.f32 -1.442695, %v1658_v1  ;;  %v6361_v1 = vld [vmem:[#allocation38_spill] sm:$0xff] }
 0x3db   :  { %v1772_v33 = vadd.f32 %v6360_v16, %v1749_v46  ;;  %v1663_v23 = vpop.f32.mrb[20].mxu0  ;;  %v1752_v52 = vpop.f32.mrb[68].mxu1  ;;  %v3474_v41 = vmul.f32 -1.442695, %v1660_v60 }
 0x3dc   :  { %4350 = vpow2.f32 %v3470_v49  ;;  %v1664_v51 = vadd.f32 %v1663_v23, %v6357_v44  ;;  %v1665_v22 = vpop.f32.mrb[21].mxu0  ;;  %v1754_v35 = vpop.f32.mrb[69].mxu1 }
 0x3dd   :  { %v1755_v19 = vadd.f32 %v1754_v35, %v6358_v40  ;;  %v1666_v7 = vadd.f32 %v1665_v22, %v5383_v47  ;;  %4352 = vpow2.f32 %v3473_v24  ;;  %v6362_v22 = vld [vmem:[#allocation37_spill] sm:$0xff] }
 0x3de   :  { %v3471_v21 = vmul.f32 -1.442695, %v1664_v51 }
 0x3df   :  { %v1773_v61 = vadd.f32 %v1755_v19, %v6361_v1  ;;  %v1669_v38 = vpop.f32.mrb[22].mxu0  ;;  %v1758_v50 = vpop.f32.mrb[70].mxu1  ;;  %v3475_v9 = vmul.f32 -1.442695, %v1666_v7 }
 0x3e0   :  { %4354 = vpow2.f32 %v3471_v21  ;;  %v1670_v46 = vadd.f32 %v1669_v38, %v6357_v44  ;;  %v1671_v16 = vpop.f32.mrb[23].mxu0  ;;  %v1760_v49 = vpop.f32.mrb[71].mxu1 }
 0x3e1   :  { %v1761_v23 = vadd.f32 %v1760_v49, %v6358_v40  ;;  %4356 = vpow2.f32 %v3474_v41  ;;  %v1672_v60 = vadd.f32 %v1671_v16, %v5383_v47 }
 0x3e2   :  { %v4349_v58 = vpop.eup %4348  ;;  %v3472_v35 = vmul.f32 -1.442695, %v1670_v46  ;;  %v1741_v46 = vadd.f32 %v1740_v11, %v5423_v62 }
 0x3e3   :  { %v1787_v51 = vadd.f32 1.0, %v4349_v58  ;;  %v1774_v24 = vadd.f32 %v6362_v22, %v1761_v23  ;;  %v3476_v21 = vmul.f32 -1.442695, %v1672_v60  ;;  %v1747_v60 = vadd.f32 %v1746_v53, %v5423_v62 }
 0x3e4   :  { %4358 = vpow2.f32 %v3472_v35 }
 0x3e5   :  { %4360 = vrcp.f32 %v1787_v51 }
 0x3e6   :  { %v4351_v19 = vpop.eup %4350  ;;  %4362 = vpow2.f32 %v3475_v9 }
 0x3e7   :  { %v1788_v1 = vadd.f32 1.0, %v4351_v19  ;;  %v4353_v38 = vpop.eup %4352 }
 0x3e8   :  { %v1811_v41 = vadd.f32 1.0, %v4353_v38  ;;  %v1753_v38 = vadd.f32 %v1752_v52, %v5423_v62 }
 0x3e9   :  { %4364 = vrcp.f32 %v1788_v1 }
 0x3ea   :  { %v4355_v44 = vpop.eup %4354  ;;  %4366 = vpow2.f32 %v3476_v21 }
 0x3eb   :  { %v1789_v49 = vadd.f32 1.0, %v4355_v44  ;;  %v4357_v40 = vpop.eup %4356 }
 0x3ec   :  { %v1812_v16 = vadd.f32 1.0, %v4357_v40 }
 0x3ed   :  { %4368 = vrcp.f32 %v1789_v49 }
 0x3ee   :  { %v4359_v7 = vpop.eup %4358  ;;  %4370 = vrcp.f32 %v1811_v41 }
 0x3ef   :  { %v4361_v58 = vpop.eup %4360  ;;  %v1790_v23 = vadd.f32 1.0, %v4359_v7 }
 0x3f0   :  { %v4363_v35 = vpop.eup %4362  ;;  %v1823_v51 = vmul.f32 %v4361_v58, %v1741_v46 }
 0x3f1   :  { %4372 = vrcp.f32 %v1790_v23  ;;  %v1813_v19 = vadd.f32 1.0, %v4363_v35 }
 0x3f2   :  { %v1827_v9 = vadd.f32 %v1823_v51, %v1771_v13  ;;  %4374 = vrcp.f32 %v1812_v16  ;;  %v1759_v13 = vadd.f32 %v1758_v50, %v5423_v62 }
 0x3f3   :  { %v4365_v22 = vpop.eup %4364 }
 0x3f4   :  { %v4367_v44 = vpop.eup %4366  ;;  %4376 = vtanh.f32 %v1827_v9  ;;  %v1824_v21 = vmul.f32 %v4365_v22, %v1747_v60 }
 0x3f5   :  { %4378 = vrcp.f32 %v1813_v19  ;;  %v1814_v40 = vadd.f32 1.0, %v4367_v44 }
 0x3f6   :  { %v1828_v1 = vadd.f32 %v1824_v21, %v1772_v33 }
 0x3f7   :  { %v4369_v11 = vpop.eup %4368 }
 0x3f8   :  { %4380 = vtanh.f32 %v1828_v1  ;;  %v1825_v49 = vmul.f32 %v4369_v11, %v1753_v38  ;;  %v4371_v7 = vpop.eup %4370 }
 0x3f9   :  { %4382 = vrcp.f32 %v1814_v40  ;;  %v1835_v16 = vsub.f32 1.0, %v4371_v7  ;;  %v1843_v52 = vmul.f32 %v4371_v7, %v5548_v30 }
 0x3fa   :  { %v1829_v41 = vadd.f32 %v1825_v49, %v1773_v61 }
 0x3fb   :  { %v4373_v46 = vpop.eup %4372 }
 0x3fc   :  { %4384 = vtanh.f32 %v1829_v41  ;;  %v1826_v53 = vmul.f32 %v4373_v46, %v1759_v13  ;;  %v4375_v58 = vpop.eup %4374  ;;  %v6364_v46 = vld [vmem:[#allocation7_spill] sm:$0xff] }
 0x3fd   :  { %v1836_v60 = vsub.f32 1.0, %v4375_v58  ;;  %v1844_v19 = vmul.f32 %v4375_v58, %v5557_v34  ;;  %v6365_v58 = vld [vmem:[#allocation8_spill] sm:$0xff] }
 0x3fe   :  { %v4377_v23 = vpop.eup %4376  ;;  %v1830_v35 = vadd.f32 %v1826_v53, %v1774_v24 }
 0x3ff   :  { %v1839_v33 = vmul.f32 %v4377_v23, %v1835_v16  ;;  %v4379_v51 = vpop.eup %4378 }
 0x400   :  { %4386 = vtanh.f32 %v1830_v35  ;;  %v1837_v44 = vsub.f32 1.0, %v4379_v51  ;;  %v1845_v38 = vmul.f32 %v4379_v51, %v5569_v54 }
 0x401   :  { %v5658_v9 = vadd.f32 %v1843_v52, %v1839_v33 }
 0x402   :  { %v4381_v22 = vpop.eup %4380 }
 0x403   :  { %1916 = vmatmul.mubr.f32.vlgmr.msra.gmra.mrb[24].mxu0 %v5658_v9  ;;  %2005 = vmatmul.mubr.f32.vlgmr.msra.gmra.mrb[72].mxu1 %v5658_v9  ;;  %v3189_v61 = vmul.f32 %v5443_v42, %v5658_v9  ;;  %v1840_v50 = vmul.f32 %v4381_v22, %v1836_v60  ;;  %v4383_v30 = vpop.eup %4382 }
 0x404   :  { %1921 = vmatprep.mubr.f32.mxu0 %v6340_v45  ;;  %2010 = vmatprep.mubr.f32.mxu1 %v6340_v45  ;;  %v1838_v40 = vsub.f32 1.0, %v4383_v30  ;;  %v1846_v41 = vmul.f32 %v4383_v30, %v5581_v63 }
 0x405   :  { %3229 = vadd.xlane.f32.xlu1 %v3189_v61  ;;  %v5667_v24 = vadd.f32 %v1844_v19, %v1840_v50  ;;  %3870 = vmatpush1.bf16.msra.mxu0 %v4855_v5  ;;  %v6366_v50 = vld [vmem:[#allocation52_spill] sm:$0xff] }
 0x406   :  { %v4385_v21 = vpop.eup %4384  ;;  %3902 = vmatpush1.bf16.msra.mxu1 %v5043_v12  ;;  %3872 = vmatprep.subr.bf16.mxu0 %v4858_v6 }
 0x407   :  { %1922 = vmatmul.mubr.f32.gmra.mrb[26].mxu0 %v5667_v24  ;;  %2011 = vmatmul.mubr.f32.gmra.mrb[74].mxu1 %v5667_v24  ;;  %v3190_v34 = vmul.f32 %v5443_v42, %v5667_v24  ;;  %v1841_v1 = vmul.f32 %v4385_v21, %v1837_v44  ;;  %v6367_v21 = vld [vmem:[#allocation60_spill] sm:$0xff] }
 0x408   :  { %1927 = vmatprep.mubr.f32.mxu0 %v6340_v45  ;;  %2016 = vmatprep.mubr.f32.mxu1 %v6340_v45 }
 0x409   :  { %3231 = vadd.xlane.f32.xlu0 %v3190_v34  ;;  %v5679_v11 = vadd.f32 %v1845_v38, %v1841_v1  ;;  %3904 = vmatprep.subr.bf16.mxu1 %v5048_v17 }
 0x40a   :  { %v4387_v49 = vpop.eup %4386  ;;  %3874 = vmatpush1.bf16.msra.mxu0 %v4867_v14  ;;  %3906 = vmatpush1.bf16.msra.mxu1 %v5059_v31 }
 0x40b   :  { %1928 = vmatmul.mubr.f32.gmra.mrb[28].mxu0 %v5679_v11  ;;  %2017 = vmatmul.mubr.f32.gmra.mrb[76].mxu1 %v5679_v11  ;;  %v3191_v54 = vmul.f32 %v5443_v42, %v5679_v11  ;;  %v1842_v7 = vmul.f32 %v4387_v49, %v1838_v40  ;;  %v6368_v40 = vld [vmem:[#allocation40_spill] sm:$0xff] }
 0x40c   :  { %1933 = vmatprep.mubr.f32.mxu0 %v6340_v45  ;;  %2022 = vmatprep.mubr.f32.mxu1 %v6340_v45 }
 0x40d   :  { %3233 = vadd.xlane.f32.xlu1 %v3191_v54  ;;  %v5691_v13 = vadd.f32 %v1846_v41, %v1842_v7  ;;  %3876 = vmatprep.subr.bf16.mxu0 %v4872_v15 }
 0x40e   :  { %3908 = vmatprep.subr.bf16.mxu1 %v5065_v43  ;;  %3878 = vmatpush1.bf16.msra.mxu0 %v4884_v25 }
 0x40f   :  { %1934 = vmatmul.mubr.f32.gmra.mrb[30].mxu0 %v5691_v13  ;;  %2023 = vmatmul.mubr.f32.gmra.mrb[78].mxu1 %v5691_v13  ;;  %v3192_v63 = vmul.f32 %v5443_v42, %v5691_v13  ;;  %v6363_v42 = vld [vmem:[#allocation13_spill] sm:$0xff] }
 0x410   :  { %3910 = vmatpush1.bf16.msra.mxu1 %v5076_v0  ;;  %3880 = vmatprep.subr.bf16.mxu0 %v4887_v26 }
 0x411   :  { %3235 = vadd.xlane.f32.xlu0 %v3192_v63  ;;  %3912 = vmatprep.subr.bf16.mxu1 %v5082_v10 }
 0x412   :  { %3882 = vmatpush1.bf16.msra.mxu0 %v4898_v36  ;;  %2181 = vmatprep.mubr.f32.mxu0 %v6340_v45 }
 0x413   :  { %3884 = vmatprep.subr.bf16.mxu0 %v4906_v39  ;;  %2270 = vmatprep.mubr.f32.mxu1 %v6340_v45 }
 0x414   :  { %3914 = vmatpush1.bf16.msra.mxu1 %v5093_v28 }
 0x415   :  { %3916 = vmatprep.subr.bf16.mxu1 %v5097_v29 }
 0x416   :  { %3886 = vmatpush1.bf16.msra.mxu0 %v4920_v48 }
 0x417   :  { %3888 = vmatprep.subr.bf16.mxu0 %v4930_v57 }
 0x418   :  { %3918 = vmatpush1.bf16.msra.mxu1 %v5107_v59 }
 0x419   :  { %3920 = vmatprep.subr.bf16.mxu1 %v5111_v37 }
 0x41a   :  { %3890 = vmatpush1.bf16.msra.mxu0 %v4941_v3 }
 0x41b   :  { %3892 = vmatprep.subr.bf16.mxu0 %v4950_v8 }
 0x41c   :  { %3922 = vmatpush1.bf16.msra.mxu1 %v5121_v27 }
 0x41d   :  { %3924 = vmatprep.subr.bf16.mxu1 %v5125_v4 }
 0x41e   :  { %3894 = vmatpush1.bf16.msra.mxu0 %v6341_v32 }
 0x41f   :  { %3896 = vmatprep.subr.bf16.mxu0 %v6342_v18 }
 0x420   :  { %3926 = vmatpush1.bf16.msra.mxu1 %v6343_v55 }
 0x421   :  { %3928 = vmatprep.subr.bf16.mxu1 %v6344_v20 }
 0x422   :  { %3898 = vmatpush1.bf16.msra.mxu0 %v6345_v2 }
 0x423   :  { %3932 = vmatprep.subr.bf16.mxu0 %v6346_v56 }
 0x424   :  { %3930 = vmatpush1.bf16.msra.mxu1 %v6363_v42 }
 0x425   :  { %3964 = vmatprep.subr.bf16.mxu1 %v6364_v46 }
 0x492   :  { %v3230_v53 = vpop.xlane.xlu1 %3229 }
 0x493   :  { %v3285_v16 = vadd.f32 %v6365_v58, %v3230_v53 }
 0x495   :  { %3318 = vst.msk [vmem:[%s6244_s9 + $0x40] sm:$0xff] %vm3309_vm0, %v3285_v16 }
 0x496   :  { %v3232_v23 = vpop.xlane.xlu0 %3231 }
 0x497   :  { %v3286_v35 = vadd.f32 %v6365_v58, %v3232_v23 }
 0x499   :  { %3319 = vst.msk [vmem:[%s6244_s9 + $0x48] sm:$0xff] %vm3309_vm0, %v3286_v35 }
 0x49a   :  { %v3234_v33 = vpop.xlane.xlu1 %3233 }
 0x49b   :  { %v3287_v52 = vadd.f32 %v6365_v58, %v3234_v33 }
 0x49d   :  { %3320 = vst.msk [vmem:[%s6244_s9 + $0x50] sm:$0xff] %vm3309_vm0, %v3287_v52  ;;  %v6369_v52 = vld [vmem:[#allocation39_spill] sm:$0xff] }
 0x49e   :  { %v3236_v51 = vpop.xlane.xlu0 %3235 }
 0x49f   :  { %v3288_v60 = vadd.f32 %v6365_v58, %v3236_v51 }
 0x4a1   :  { %3321 = vst.msk [vmem:[%s6244_s9 + $0x58] sm:$0xff] %vm3309_vm0, %v3288_v60 }
 0x4d6   :  { %v1917_v22 = vpop.f32.mrb[24].mxu0  ;;  %v2006_v61 = vpop.f32.mrb[72].mxu1 }
 0x4d7   :  { %v1918_v19 = vadd.f32 %v1917_v22, %v6366_v50  ;;  %v1919_v30 = vpop.f32.mrb[25].mxu0  ;;  %v2008_v44 = vpop.f32.mrb[73].mxu1 }
 0x4d8   :  { %v2009_v34 = vadd.f32 %v2008_v44, %v6367_v21  ;;  %v1920_v38 = vadd.f32 %v1919_v30, %v5383_v47 }
 0x4d9   :  { %v3477_v1 = vmul.f32 -1.442695, %v1918_v19 }
 0x4da   :  { %v2037_v49 = vadd.f32 %v2009_v34, %v6368_v40  ;;  %v1923_v54 = vpop.f32.mrb[26].mxu0  ;;  %v2012_v7 = vpop.f32.mrb[74].mxu1  ;;  %v3481_v33 = vmul.f32 -1.442695, %v1920_v38 }
 0x4db   :  { %4388 = vpow2.f32 %v3477_v1  ;;  %v1924_v41 = vadd.f32 %v1923_v54, %v6366_v50  ;;  %v1925_v63 = vpop.f32.mrb[27].mxu0  ;;  %v2014_v53 = vpop.f32.mrb[75].mxu1 }
 0x4dc   :  { %v2015_v16 = vadd.f32 %v2014_v53, %v6367_v21  ;;  %v1926_v35 = vadd.f32 %v1925_v63, %v5383_v47 }
 0x4dd   :  { %v3478_v23 = vmul.f32 -1.442695, %v1924_v41  ;;  %v6370_v41 = vld [vmem:[#allocation42_spill] sm:$0xff] }
 0x4de   :  { %v2038_v51 = vadd.f32 %v6369_v52, %v2015_v16  ;;  %v1929_v60 = vpop.f32.mrb[28].mxu0  ;;  %v2018_v22 = vpop.f32.mrb[76].mxu1  ;;  %v3482_v1 = vmul.f32 -1.442695, %v1926_v35 }
 0x4df   :  { %4390 = vpow2.f32 %v3478_v23  ;;  %v1930_v19 = vadd.f32 %v1929_v60, %v6366_v50  ;;  %v1931_v30 = vpop.f32.mrb[29].mxu0  ;;  %v2020_v44 = vpop.f32.mrb[77].mxu1 }
 0x4e0   :  { %v2021_v34 = vadd.f32 %v2020_v44, %v6367_v21  ;;  %v1932_v54 = vadd.f32 %v1931_v30, %v5383_v47  ;;  %4392 = vpow2.f32 %v3481_v33  ;;  %v6371_v30 = vld [vmem:[#allocation41_spill] sm:$0xff] }
 0x4e1   :  { %v3479_v40 = vmul.f32 -1.442695, %v1930_v19 }
 0x4e2   :  { %v2039_v53 = vadd.f32 %v2021_v34, %v6370_v41  ;;  %v1935_v63 = vpop.f32.mrb[30].mxu0  ;;  %v2024_v38 = vpop.f32.mrb[78].mxu1  ;;  %v3483_v46 = vmul.f32 -1.442695, %v1932_v54 }
 0x4e3   :  { %4394 = vpow2.f32 %v3479_v40  ;;  %v1936_v16 = vadd.f32 %v1935_v63, %v6366_v50  ;;  %v1937_v52 = vpop.f32.mrb[31].mxu0  ;;  %v2026_v23 = vpop.f32.mrb[79].mxu1 }
 0x4e4   :  { %v2027_v60 = vadd.f32 %v2026_v23, %v6367_v21  ;;  %4396 = vpow2.f32 %v3482_v1  ;;  %v1938_v35 = vadd.f32 %v1937_v52, %v5383_v47 }
 0x4e5   :  { %v4389_v58 = vpop.eup %4388  ;;  %v3480_v44 = vmul.f32 -1.442695, %v1936_v16  ;;  %v2007_v16 = vadd.f32 %v2006_v61, %v5423_v62 }
 0x4e6   :  { %v2053_v19 = vadd.f32 1.0, %v4389_v58  ;;  %v2040_v33 = vadd.f32 %v6371_v30, %v2027_v60  ;;  %v3484_v40 = vmul.f32 -1.442695, %v1938_v35  ;;  %v2013_v35 = vadd.f32 %v2012_v7, %v5423_v62 }
 0x4e7   :  { %4398 = vpow2.f32 %v3480_v44 }
 0x4e8   :  { %4400 = vrcp.f32 %v2053_v19 }
 0x4e9   :  { %v4391_v34 = vpop.eup %4390  ;;  %4402 = vpow2.f32 %v3483_v46 }
 0x4ea   :  { %v2054_v41 = vadd.f32 1.0, %v4391_v34  ;;  %v4393_v63 = vpop.eup %4392 }
 0x4eb   :  { %v2077_v1 = vadd.f32 1.0, %v4393_v63  ;;  %v2019_v63 = vadd.f32 %v2018_v22, %v5423_v62 }
 0x4ec   :  { %4404 = vrcp.f32 %v2054_v41 }
 0x4ed   :  { %v4395_v50 = vpop.eup %4394  ;;  %4406 = vpow2.f32 %v3484_v40 }
 0x4ee   :  { %v2055_v23 = vadd.f32 1.0, %v4395_v50  ;;  %v4397_v21 = vpop.eup %4396 }
 0x4ef   :  { %v2078_v52 = vadd.f32 1.0, %v4397_v21 }
 0x4f0   :  { %4408 = vrcp.f32 %v2055_v23 }
 0x4f1   :  { %v4399_v54 = vpop.eup %4398  ;;  %4410 = vrcp.f32 %v2077_v1 }
 0x4f2   :  { %v4401_v58 = vpop.eup %4400  ;;  %v2056_v60 = vadd.f32 1.0, %v4399_v54 }
 0x4f3   :  { %v4403_v44 = vpop.eup %4402  ;;  %v2089_v19 = vmul.f32 %v4401_v58, %v2007_v16 }
 0x4f4   :  { %4412 = vrcp.f32 %v2056_v60  ;;  %v2079_v34 = vadd.f32 1.0, %v4403_v44 }
 0x4f5   :  { %v2093_v46 = vadd.f32 %v2089_v19, %v2037_v49  ;;  %4414 = vrcp.f32 %v2078_v52  ;;  %v2025_v49 = vadd.f32 %v2024_v38, %v5423_v62 }
 0x4f6   :  { %v4405_v30 = vpop.eup %4404 }
 0x4f7   :  { %v4407_v50 = vpop.eup %4406  ;;  %4416 = vtanh.f32 %v2093_v46  ;;  %v2090_v40 = vmul.f32 %v4405_v30, %v2013_v35 }
 0x4f8   :  { %4418 = vrcp.f32 %v2079_v34  ;;  %v2080_v21 = vadd.f32 1.0, %v4407_v50 }
 0x4f9   :  { %v2094_v41 = vadd.f32 %v2090_v40, %v2038_v51 }
 0x4fa   :  { %v4409_v61 = vpop.eup %4408 }
 0x4fb   :  { %4420 = vtanh.f32 %v2094_v41  ;;  %v2091_v23 = vmul.f32 %v4409_v61, %v2019_v63  ;;  %v4411_v54 = vpop.eup %4410 }
 0x4fc   :  { %4422 = vrcp.f32 %v2080_v21  ;;  %v2101_v52 = vsub.f32 1.0, %v4411_v54  ;;  %v2109_v22 = vmul.f32 %v4411_v54, %v5658_v9 }
 0x4fd   :  { %v2095_v1 = vadd.f32 %v2091_v23, %v2039_v53  ;;  %v5773_v53 = vld [vmem:[%s6242_s7] ss:$0 sm:$0xff] }
 0x4fe   :  { %v4413_v16 = vpop.eup %4412 }
 0x4ff   :  { %4424 = vtanh.f32 %v2095_v1  ;;  %v2092_v7 = vmul.f32 %v4413_v16, %v2025_v49  ;;  %v4415_v58 = vpop.eup %4414 }
 0x500   :  { %v2102_v35 = vsub.f32 1.0, %v4415_v58  ;;  %v2110_v9 = vmul.f32 %v4415_v58, %v5667_v24 }
 0x501   :  { %v4417_v60 = vpop.eup %4416  ;;  %v2096_v44 = vadd.f32 %v2092_v7, %v2040_v33  ;;  %v6372_v7 = vld [vmem:[#allocation7_spill] sm:$0xff] }
 0x502   :  { %v2105_v51 = vmul.f32 %v4417_v60, %v2101_v52  ;;  %v4419_v19 = vpop.eup %4418  ;;  %v6373_v52 = vld [vmem:[#allocation8_spill] sm:$0xff] }
 0x503   :  { %4426 = vtanh.f32 %v2096_v44  ;;  %v2103_v40 = vsub.f32 1.0, %v4419_v19  ;;  %v2111_v61 = vmul.f32 %v4419_v19, %v5679_v11 }
 0x504   :  { %v5766_v46 = vadd.f32 %v2109_v22, %v2105_v51 }
 0x505   :  { %v4421_v30 = vpop.eup %4420 }
 0x506   :  { %2182 = vmatmul.mubr.f32.vlgmr.msra.gmra.mrb[32].mxu0 %v5766_v46  ;;  %2271 = vmatmul.mubr.f32.vlgmr.msra.gmra.mrb[80].mxu1 %v5766_v46  ;;  %v3193_v38 = vmul.f32 %v5773_v53, %v5766_v46  ;;  %v2106_v33 = vmul.f32 %v4421_v30, %v2102_v35  ;;  %v4423_v34 = vpop.eup %4422 }
 0x507   :  { %2187 = vmatprep.mubr.f32.mxu0 %v6340_v45  ;;  %2276 = vmatprep.mubr.f32.mxu1 %v6340_v45  ;;  %v2104_v23 = vsub.f32 1.0, %v4423_v34  ;;  %v2112_v49 = vmul.f32 %v4423_v34, %v5691_v13 }
 0x508   :  { %3237 = vadd.xlane.f32.xlu1 %v3193_v38  ;;  %v5780_v50 = vadd.f32 %v2110_v9, %v2106_v33  ;;  %3934 = vmatpush1.bf16.msra.mxu0 %v4855_v5  ;;  %v6374_v9 = vld [vmem:[#allocation52_spill] sm:$0xff] }
 0x509   :  { %v4425_v41 = vpop.eup %4424  ;;  %3966 = vmatpush1.bf16.msra.mxu1 %v5043_v12  ;;  %3936 = vmatprep.subr.bf16.mxu0 %v4858_v6 }
 0x50a   :  { %2188 = vmatmul.mubr.f32.gmra.mrb[34].mxu0 %v5780_v50  ;;  %2277 = vmatmul.mubr.f32.gmra.mrb[82].mxu1 %v5780_v50  ;;  %v3194_v24 = vmul.f32 %v5773_v53, %v5780_v50  ;;  %v2107_v63 = vmul.f32 %v4425_v41, %v2103_v40 }
 0x50b   :  { %2193 = vmatprep.mubr.f32.mxu0 %v6340_v45  ;;  %2282 = vmatprep.mubr.f32.mxu1 %v6340_v45 }
 0x50c   :  { %3239 = vadd.xlane.f32.xlu0 %v3194_v24  ;;  %v5792_v21 = vadd.f32 %v2111_v61, %v2107_v63  ;;  %3968 = vmatprep.subr.bf16.mxu1 %v5048_v17  ;;  %v6375_v24 = vld [vmem:[#allocation60_spill] sm:$0xff] }
 0x50d   :  { %v4427_v54 = vpop.eup %4426  ;;  %3938 = vmatpush1.bf16.msra.mxu0 %v4867_v14  ;;  %3970 = vmatpush1.bf16.msra.mxu1 %v5059_v31 }
 0x50e   :  { %2194 = vmatmul.mubr.f32.gmra.mrb[36].mxu0 %v5792_v21  ;;  %2283 = vmatmul.mubr.f32.gmra.mrb[84].mxu1 %v5792_v21  ;;  %v3195_v11 = vmul.f32 %v5773_v53, %v5792_v21  ;;  %v2108_v1 = vmul.f32 %v4427_v54, %v2104_v23  ;;  %v6376_v54 = vld [vmem:[#allocation44_spill] sm:$0xff] }
 0x50f   :  { %2199 = vmatprep.mubr.f32.mxu0 %v6340_v45  ;;  %2288 = vmatprep.mubr.f32.mxu1 %v6340_v45 }
 0x510   :  { %3241 = vadd.xlane.f32.xlu1 %v3195_v11  ;;  %v5804_v16 = vadd.f32 %v2112_v49, %v2108_v1  ;;  %3940 = vmatprep.subr.bf16.mxu0 %v4872_v15 }
 0x511   :  { %3972 = vmatprep.subr.bf16.mxu1 %v5065_v43  ;;  %3942 = vmatpush1.bf16.msra.mxu0 %v4884_v25 }
 0x512   :  { %2200 = vmatmul.mubr.f32.gmra.mrb[38].mxu0 %v5804_v16  ;;  %2289 = vmatmul.mubr.f32.gmra.mrb[86].mxu1 %v5804_v16  ;;  %v3196_v13 = vmul.f32 %v5773_v53, %v5804_v16 }
 0x513   :  { %3974 = vmatpush1.bf16.msra.mxu1 %v5076_v0  ;;  %3944 = vmatprep.subr.bf16.mxu0 %v4887_v26 }
 0x514   :  { %3243 = vadd.xlane.f32.xlu0 %v3196_v13  ;;  %3976 = vmatprep.subr.bf16.mxu1 %v5082_v10 }
 0x515   :  { %3946 = vmatpush1.bf16.msra.mxu0 %v4898_v36  ;;  %2447 = vmatprep.mubr.f32.mxu0 %v6340_v45 }
 0x516   :  { %3948 = vmatprep.subr.bf16.mxu0 %v4906_v39  ;;  %2536 = vmatprep.mubr.f32.mxu1 %v6340_v45 }
 0x517   :  { %3978 = vmatpush1.bf16.msra.mxu1 %v5093_v28 }
 0x518   :  { %3980 = vmatprep.subr.bf16.mxu1 %v5097_v29 }
 0x519   :  { %3950 = vmatpush1.bf16.msra.mxu0 %v4920_v48 }
 0x51a   :  { %3952 = vmatprep.subr.bf16.mxu0 %v4930_v57 }
 0x51b   :  { %3982 = vmatpush1.bf16.msra.mxu1 %v5107_v59 }
 0x51c   :  { %3984 = vmatprep.subr.bf16.mxu1 %v5111_v37 }
 0x51d   :  { %3954 = vmatpush1.bf16.msra.mxu0 %v4941_v3 }
 0x51e   :  { %3956 = vmatprep.subr.bf16.mxu0 %v4950_v8 }
 0x51f   :  { %3986 = vmatpush1.bf16.msra.mxu1 %v5121_v27 }
 0x520   :  { %3988 = vmatprep.subr.bf16.mxu1 %v5125_v4 }
 0x521   :  { %3958 = vmatpush1.bf16.msra.mxu0 %v6341_v32 }
 0x522   :  { %3960 = vmatprep.subr.bf16.mxu0 %v6342_v18 }
 0x523   :  { %3990 = vmatpush1.bf16.msra.mxu1 %v6343_v55 }
 0x524   :  { %3992 = vmatprep.subr.bf16.mxu1 %v6344_v20 }
 0x525   :  { %3962 = vmatpush1.bf16.msra.mxu0 %v6345_v2 }
 0x526   :  { %3996 = vmatprep.subr.bf16.mxu0 %v6346_v56 }
 0x527   :  { %3994 = vmatpush1.bf16.msra.mxu1 %v6363_v42 }
 0x528   :  { %4028 = vmatprep.subr.bf16.mxu1 %v6372_v7 }
 0x595   :  { %v3238_v58 = vpop.xlane.xlu1 %3237 }
 0x596   :  { %v3289_v60 = vadd.f32 %v6373_v52, %v3238_v58 }
 0x598   :  { %3322 = vst.msk [vmem:[%s6244_s9 + $0x60] sm:$0xff] %vm3309_vm0, %v3289_v60 }
 0x599   :  { %v3240_v44 = vpop.xlane.xlu0 %3239 }
 0x59a   :  { %v3290_v51 = vadd.f32 %v6373_v52, %v3240_v44 }
 0x59c   :  { %3323 = vst.msk [vmem:[%s6244_s9 + $0x68] sm:$0xff] %vm3309_vm0, %v3290_v51 }
 0x59d   :  { %v3242_v22 = vpop.xlane.xlu1 %3241 }
 0x59e   :  { %v3291_v19 = vadd.f32 %v6373_v52, %v3242_v22 }
 0x5a0   :  { %3324 = vst.msk [vmem:[%s6244_s9 + $0x70] sm:$0xff] %vm3309_vm0, %v3291_v19  ;;  %v6377_v19 = vld [vmem:[#allocation43_spill] sm:$0xff] }
 0x5a1   :  { %v3244_v35 = vpop.xlane.xlu0 %3243 }
 0x5a2   :  { %v3292_v30 = vadd.f32 %v6373_v52, %v3244_v35 }
 0x5a4   :  { %3325 = vst.msk [vmem:[%s6244_s9 + $0x78] sm:$0xff] %vm3309_vm0, %v3292_v30 }
 0x5d9   :  { %v2183_v38 = vpop.f32.mrb[32].mxu0  ;;  %v2272_v33 = vpop.f32.mrb[80].mxu1 }
 0x5da   :  { %v2184_v34 = vadd.f32 %v2183_v38, %v6374_v9  ;;  %v2185_v40 = vpop.f32.mrb[33].mxu0  ;;  %v2274_v41 = vpop.f32.mrb[81].mxu1 }
 0x5db   :  { %v2275_v63 = vadd.f32 %v2274_v41, %v6375_v24  ;;  %v2186_v23 = vadd.f32 %v2185_v40, %v5383_v47 }
 0x5dc   :  { %v3485_v61 = vmul.f32 -1.442695, %v2184_v34 }
 0x5dd   :  { %v2303_v11 = vadd.f32 %v2275_v63, %v6376_v54  ;;  %v2189_v1 = vpop.f32.mrb[34].mxu0  ;;  %v2278_v49 = vpop.f32.mrb[82].mxu1  ;;  %v3489_v22 = vmul.f32 -1.442695, %v2186_v23 }
 0x5de   :  { %4428 = vpow2.f32 %v3485_v61  ;;  %v2190_v13 = vadd.f32 %v2189_v1, %v6374_v9  ;;  %v2191_v58 = vpop.f32.mrb[35].mxu0  ;;  %v2280_v52 = vpop.f32.mrb[83].mxu1 }
 0x5df   :  { %v2281_v60 = vadd.f32 %v2280_v52, %v6375_v24  ;;  %v2192_v51 = vadd.f32 %v2191_v58, %v5383_v47 }
 0x5e0   :  { %v3486_v44 = vmul.f32 -1.442695, %v2190_v13  ;;  %v6378_v13 = vld [vmem:[#allocation46_spill] sm:$0xff] }
 0x5e1   :  { %v2304_v35 = vadd.f32 %v6377_v19, %v2281_v60  ;;  %v2195_v30 = vpop.f32.mrb[36].mxu0  ;;  %v2284_v38 = vpop.f32.mrb[84].mxu1  ;;  %v3490_v61 = vmul.f32 -1.442695, %v2192_v51 }
 0x5e2   :  { %4430 = vpow2.f32 %v3486_v44  ;;  %v2196_v34 = vadd.f32 %v2195_v30, %v6374_v9  ;;  %v2197_v40 = vpop.f32.mrb[37].mxu0  ;;  %v2286_v41 = vpop.f32.mrb[85].mxu1 }
 0x5e3   :  { %v2287_v63 = vadd.f32 %v2286_v41, %v6375_v24  ;;  %v2198_v1 = vadd.f32 %v2197_v40, %v5383_v47  ;;  %4432 = vpow2.f32 %v3489_v22  ;;  %v6379_v40 = vld [vmem:[#allocation45_spill] sm:$0xff] }
 0x5e4   :  { %v3487_v54 = vmul.f32 -1.442695, %v2196_v34 }
 0x5e5   :  { %v2305_v52 = vadd.f32 %v2287_v63, %v6378_v13  ;;  %v2201_v58 = vpop.f32.mrb[38].mxu0  ;;  %v2290_v23 = vpop.f32.mrb[86].mxu1  ;;  %v3491_v42 = vmul.f32 -1.442695, %v2198_v1 }
 0x5e6   :  { %4434 = vpow2.f32 %v3487_v54  ;;  %v2202_v60 = vadd.f32 %v2201_v58, %v6374_v9  ;;  %v2203_v19 = vpop.f32.mrb[39].mxu0  ;;  %v2292_v44 = vpop.f32.mrb[87].mxu1 }
 0x5e7   :  { %v2293_v30 = vadd.f32 %v2292_v44, %v6375_v24  ;;  %4436 = vpow2.f32 %v3490_v61  ;;  %v2204_v51 = vadd.f32 %v2203_v19, %v5383_v47 }
 0x5e8   :  { %v4429_v7 = vpop.eup %4428  ;;  %v3488_v41 = vmul.f32 -1.442695, %v2202_v60  ;;  %v2273_v60 = vadd.f32 %v2272_v33, %v5423_v62 }
 0x5e9   :  { %v2319_v34 = vadd.f32 1.0, %v4429_v7  ;;  %v2306_v22 = vadd.f32 %v6379_v40, %v2293_v30  ;;  %v3492_v54 = vmul.f32 -1.442695, %v2204_v51  ;;  %v2279_v51 = vadd.f32 %v2278_v49, %v5423_v62 }
 0x5ea   :  { %4438 = vpow2.f32 %v3488_v41 }
 0x5eb   :  { %4440 = vrcp.f32 %v2319_v34 }
 0x5ec   :  { %v4431_v63 = vpop.eup %4430  ;;  %4442 = vpow2.f32 %v3491_v42 }
 0x5ed   :  { %v2320_v13 = vadd.f32 1.0, %v4431_v63  ;;  %v4433_v58 = vpop.eup %4432 }
 0x5ee   :  { %v2343_v61 = vadd.f32 1.0, %v4433_v58  ;;  %v2285_v58 = vadd.f32 %v2284_v38, %v5423_v62 }
 0x5ef   :  { %4444 = vrcp.f32 %v2320_v13 }
 0x5f0   :  { %v4435_v9 = vpop.eup %4434  ;;  %4446 = vpow2.f32 %v3492_v54 }
 0x5f1   :  { %v2321_v44 = vadd.f32 1.0, %v4435_v9  ;;  %v4437_v24 = vpop.eup %4436 }
 0x5f2   :  { %v2344_v19 = vadd.f32 1.0, %v4437_v24 }
 0x5f3   :  { %4448 = vrcp.f32 %v2321_v44 }
 0x5f4   :  { %v4439_v1 = vpop.eup %4438  ;;  %4450 = vrcp.f32 %v2343_v61 }
 0x5f5   :  { %v4441_v7 = vpop.eup %4440  ;;  %v2322_v30 = vadd.f32 1.0, %v4439_v1 }
 0x5f6   :  { %v4443_v41 = vpop.eup %4442  ;;  %v2355_v34 = vmul.f32 %v4441_v7, %v2273_v60 }
 0x5f7   :  { %4452 = vrcp.f32 %v2322_v30  ;;  %v2345_v63 = vadd.f32 1.0, %v4443_v41 }
 0x5f8   :  { %v2359_v42 = vadd.f32 %v2355_v34, %v2303_v11  ;;  %4454 = vrcp.f32 %v2344_v19  ;;  %v2291_v11 = vadd.f32 %v2290_v23, %v5423_v62 }
 0x5f9   :  { %v4445_v40 = vpop.eup %4444 }
 0x5fa   :  { %v4447_v9 = vpop.eup %4446  ;;  %4456 = vtanh.f32 %v2359_v42  ;;  %v2356_v54 = vmul.f32 %v4445_v40, %v2279_v51 }
 0x5fb   :  { %4458 = vrcp.f32 %v2345_v63  ;;  %v2346_v24 = vadd.f32 1.0, %v4447_v9 }
 0x5fc   :  { %v2360_v13 = vadd.f32 %v2356_v54, %v2304_v35 }
 0x5fd   :  { %v4449_v33 = vpop.eup %4448 }
 0x5fe   :  { %4460 = vtanh.f32 %v2360_v13  ;;  %v2357_v44 = vmul.f32 %v4449_v33, %v2285_v58  ;;  %v4451_v1 = vpop.eup %4450 }
 0x5ff   :  { %4462 = vrcp.f32 %v2346_v24  ;;  %v2367_v19 = vsub.f32 1.0, %v4451_v1  ;;  %v2375_v38 = vmul.f32 %v4451_v1, %v5766_v46 }
 0x600   :  { %v2361_v61 = vadd.f32 %v2357_v44, %v2305_v52 }
 0x601   :  { %v4453_v60 = vpop.eup %4452 }
 0x602   :  { %4464 = vtanh.f32 %v2361_v61  ;;  %v2358_v49 = vmul.f32 %v4453_v60, %v2291_v11  ;;  %v4455_v7 = vpop.eup %4454  ;;  %v6380_v60 = vld [vmem:[#allocation13_spill] sm:$0xff] }
 0x603   :  { %v2368_v51 = vsub.f32 1.0, %v4455_v7  ;;  %v2376_v63 = vmul.f32 %v4455_v7, %v5780_v50 }
 0x604   :  { %v4457_v30 = vpop.eup %4456  ;;  %v2362_v41 = vadd.f32 %v2358_v49, %v2306_v22  ;;  %v6381_v49 = vld [vmem:[#allocation7_spill] sm:$0xff] }
 0x605   :  { %v2371_v35 = vmul.f32 %v4457_v30, %v2367_v19  ;;  %v4459_v34 = vpop.eup %4458  ;;  %v5946_v19 = vld [vmem:[#allocation2] ss:$0 sm:$0xff] }
 0x606   :  { %4466 = vtanh.f32 %v2362_v41  ;;  %v2369_v9 = vsub.f32 1.0, %v4459_v34  ;;  %v2377_v58 = vmul.f32 %v4459_v34, %v5792_v21  ;;  %6382 = vst [vmem:[#allocation9_spill] sm:$0xff] %v5946_v19 }
 0x607   :  { %v5879_v42 = vadd.f32 %v2375_v38, %v2371_v35 }
 0x608   :  { %v4461_v40 = vpop.eup %4460 }
 0x609   :  { %2448 = vmatmul.mubr.f32.vlgmr.msra.gmra.mrb[40].mxu0 %v5879_v42  ;;  %2537 = vmatmul.mubr.f32.vlgmr.msra.gmra.mrb[88].mxu1 %v5879_v42  ;;  %v3197_v52 = vmul.f32 %v5773_v53, %v5879_v42  ;;  %v2372_v23 = vmul.f32 %v4461_v40, %v2368_v51  ;;  %v4463_v46 = vpop.eup %4462 }
 0x60a   :  { %2453 = vmatprep.mubr.f32.mxu0 %v6340_v45  ;;  %2542 = vmatprep.mubr.f32.mxu1 %v6340_v45  ;;  %v2370_v24 = vsub.f32 1.0, %v4463_v46  ;;  %v2378_v61 = vmul.f32 %v4463_v46, %v5804_v16 }
 0x60b   :  { %3245 = vadd.xlane.f32.xlu1 %v3197_v52  ;;  %v5888_v22 = vadd.f32 %v2376_v63, %v2372_v23  ;;  %3998 = vmatpush1.bf16.msra.mxu0 %v4855_v5  ;;  %v6383_v23 = vld [vmem:[#allocation52_spill] sm:$0xff] }
 0x60c   :  { %v4465_v54 = vpop.eup %4464  ;;  %4030 = vmatpush1.bf16.msra.mxu1 %v5043_v12  ;;  %4000 = vmatprep.subr.bf16.mxu0 %v4858_v6 }
 0x60d   :  { %2454 = vmatmul.mubr.f32.gmra.mrb[42].mxu0 %v5888_v22  ;;  %2543 = vmatmul.mubr.f32.gmra.mrb[90].mxu1 %v5888_v22  ;;  %v3198_v50 = vmul.f32 %v5773_v53, %v5888_v22  ;;  %v2373_v13 = vmul.f32 %v4465_v54, %v2369_v9  ;;  %v6384_v54 = vld [vmem:[#allocation60_spill] sm:$0xff] }
 0x60e   :  { %2459 = vmatprep.mubr.f32.mxu0 %v6340_v45  ;;  %2548 = vmatprep.mubr.f32.mxu1 %v6340_v45 }
 0x60f   :  { %3247 = vadd.xlane.f32.xlu0 %v3198_v50  ;;  %v5900_v33 = vadd.f32 %v2377_v58, %v2373_v13  ;;  %4032 = vmatprep.subr.bf16.mxu1 %v5048_v17 }
 0x610   :  { %v4467_v44 = vpop.eup %4466  ;;  %4002 = vmatpush1.bf16.msra.mxu0 %v4867_v14  ;;  %4034 = vmatpush1.bf16.msra.mxu1 %v5059_v31 }
 0x611   :  { %2460 = vmatmul.mubr.f32.gmra.mrb[44].mxu0 %v5900_v33  ;;  %2549 = vmatmul.mubr.f32.gmra.mrb[92].mxu1 %v5900_v33  ;;  %v3199_v21 = vmul.f32 %v5773_v53, %v5900_v33  ;;  %v2374_v1 = vmul.f32 %v4467_v44, %v2370_v24  ;;  %v6385_v24 = vld [vmem:[#allocation48_spill] sm:$0xff] }
 0x612   :  { %2465 = vmatprep.mubr.f32.mxu0 %v6340_v45  ;;  %2554 = vmatprep.mubr.f32.mxu1 %v6340_v45 }
 0x613   :  { %3249 = vadd.xlane.f32.xlu1 %v3199_v21  ;;  %v5912_v11 = vadd.f32 %v2378_v61, %v2374_v1  ;;  %4004 = vmatprep.subr.bf16.mxu0 %v4872_v15 }
 0x614   :  { %4036 = vmatprep.subr.bf16.mxu1 %v5065_v43  ;;  %4006 = vmatpush1.bf16.msra.mxu0 %v4884_v25 }
 0x615   :  { %2466 = vmatmul.mubr.f32.gmra.mrb[46].mxu0 %v5912_v11  ;;  %2555 = vmatmul.mubr.f32.gmra.mrb[94].mxu1 %v5912_v11  ;;  %v3200_v16 = vmul.f32 %v5773_v53, %v5912_v11 }
 0x616   :  { %4038 = vmatpush1.bf16.msra.mxu1 %v5076_v0  ;;  %4008 = vmatprep.subr.bf16.mxu0 %v4887_v26 }
 0x617   :  { %3251 = vadd.xlane.f32.xlu0 %v3200_v16  ;;  %4040 = vmatprep.subr.bf16.mxu1 %v5082_v10 }
 0x618   :  { %4010 = vmatpush1.bf16.msra.mxu0 %v4898_v36  ;;  %2713 = vmatprep.mubr.f32.mxu0 %v6340_v45 }
 0x619   :  { %4012 = vmatprep.subr.bf16.mxu0 %v4906_v39  ;;  %2802 = vmatprep.mubr.f32.mxu1 %v6340_v45 }
 0x61a   :  { %4042 = vmatpush1.bf16.msra.mxu1 %v5093_v28 }
 0x61b   :  { %4044 = vmatprep.subr.bf16.mxu1 %v5097_v29 }
 0x61c   :  { %4014 = vmatpush1.bf16.msra.mxu0 %v4920_v48 }
 0x61d   :  { %4016 = vmatprep.subr.bf16.mxu0 %v4930_v57 }
 0x61e   :  { %4046 = vmatpush1.bf16.msra.mxu1 %v5107_v59 }
 0x61f   :  { %4048 = vmatprep.subr.bf16.mxu1 %v5111_v37 }
 0x620   :  { %4018 = vmatpush1.bf16.msra.mxu0 %v4941_v3 }
 0x621   :  { %4020 = vmatprep.subr.bf16.mxu0 %v4950_v8 }
 0x622   :  { %4050 = vmatpush1.bf16.msra.mxu1 %v5121_v27 }
 0x623   :  { %4052 = vmatprep.subr.bf16.mxu1 %v5125_v4 }
 0x624   :  { %4022 = vmatpush1.bf16.msra.mxu0 %v6341_v32 }
 0x625   :  { %4024 = vmatprep.subr.bf16.mxu0 %v6342_v18 }
 0x626   :  { %4054 = vmatpush1.bf16.msra.mxu1 %v6343_v55 }
 0x627   :  { %4056 = vmatprep.subr.bf16.mxu1 %v6344_v20 }
 0x628   :  { %4026 = vmatpush1.bf16.msra.mxu0 %v6345_v2 }
 0x629   :  { %4060 = vmatprep.subr.bf16.mxu0 %v6346_v56 }
 0x62a   :  { %4058 = vmatpush1.bf16.msra.mxu1 %v6380_v60 }
 0x62b   :  { %4092 = vmatprep.subr.bf16.mxu1 %v6381_v49 }
 0x698   :  { %v3246_v7 = vpop.xlane.xlu1 %3245 }
 0x699   :  { %v3293_v30 = vadd.f32 %v5946_v19, %v3246_v7 }
 0x69b   :  { %3326 = vst.msk [vmem:[%s6244_s9 + $0x80] sm:$0xff] %vm3309_vm0, %v3293_v30 }
 0x69c   :  { %v3248_v41 = vpop.xlane.xlu0 %3247 }
 0x69d   :  { %v3294_v35 = vadd.f32 %v5946_v19, %v3248_v41 }
 0x69f   :  { %3327 = vst.msk [vmem:[%s6244_s9 + $0x88] sm:$0xff] %vm3309_vm0, %v3294_v35 }
 0x6a0   :  { %v3250_v56 = vpop.xlane.xlu1 %3249 }
 0x6a1   :  { %v3295_v38 = vadd.f32 %v5946_v19, %v3250_v56  ;;  %v6386_v56 = vld [vmem:[#allocation47_spill] sm:$0xff] }
 0x6a3   :  { %3328 = vst.msk [vmem:[%s6244_s9 + $0x90] sm:$0xff] %vm3309_vm0, %v3295_v38 }
 0x6a4   :  { %v3252_v34 = vpop.xlane.xlu0 %3251 }
 0x6a5   :  { %v3296_v51 = vadd.f32 %v5946_v19, %v3252_v34 }
 0x6a7   :  { %3329 = vst.msk [vmem:[%s6244_s9 + $0x98] sm:$0xff] %vm3309_vm0, %v3296_v51 }
 0x6dc   :  { %v2449_v40 = vpop.f32.mrb[40].mxu0  ;;  %v2538_v52 = vpop.f32.mrb[88].mxu1 }
 0x6dd   :  { %v2450_v63 = vadd.f32 %v2449_v40, %v6383_v23  ;;  %v2451_v46 = vpop.f32.mrb[41].mxu0  ;;  %v2540_v9 = vpop.f32.mrb[89].mxu1 }
 0x6de   :  { %v2541_v50 = vadd.f32 %v2540_v9, %v6384_v54  ;;  %v2452_v58 = vadd.f32 %v2451_v46, %v5383_v47 }
 0x6df   :  { %v3493_v13 = vmul.f32 -1.442695, %v2450_v63 }
 0x6e0   :  { %v2569_v44 = vadd.f32 %v2541_v50, %v6385_v24  ;;  %v2455_v21 = vpop.f32.mrb[42].mxu0  ;;  %v2544_v1 = vpop.f32.mrb[90].mxu1  ;;  %v3497_v35 = vmul.f32 -1.442695, %v2452_v58 }
 0x6e1   :  { %4468 = vpow2.f32 %v3493_v13  ;;  %v2456_v61 = vadd.f32 %v2455_v21, %v6383_v23  ;;  %v2457_v16 = vpop.f32.mrb[43].mxu0  ;;  %v2546_v49 = vpop.f32.mrb[91].mxu1  ;;  %v6387_v21 = vld [vmem:[#allocation50_spill] sm:$0xff] }
 0x6e2   :  { %v2547_v7 = vadd.f32 %v2546_v49, %v6384_v54  ;;  %v2458_v41 = vadd.f32 %v2457_v16, %v5383_v47 }
 0x6e3   :  { %v3494_v30 = vmul.f32 -1.442695, %v2456_v61 }
 0x6e4   :  { %v2570_v38 = vadd.f32 %v6386_v56, %v2547_v7  ;;  %v2461_v34 = vpop.f32.mrb[44].mxu0  ;;  %v2550_v51 = vpop.f32.mrb[92].mxu1  ;;  %v3498_v50 = vmul.f32 -1.442695, %v2458_v41 }
 0x6e5   :  { %4470 = vpow2.f32 %v3494_v30  ;;  %v2462_v40 = vadd.f32 %v2461_v34, %v6383_v23  ;;  %v2463_v63 = vpop.f32.mrb[45].mxu0  ;;  %v2552_v46 = vpop.f32.mrb[93].mxu1 }
 0x6e6   :  { %v2553_v9 = vadd.f32 %v2552_v46, %v6384_v54  ;;  %v2464_v24 = vadd.f32 %v2463_v63, %v5383_v47  ;;  %4472 = vpow2.f32 %v3497_v35  ;;  %v6388_v63 = vld [vmem:[#allocation49_spill] sm:$0xff] }
 0x6e7   :  { %v3495_v13 = vmul.f32 -1.442695, %v2462_v40 }
 0x6e8   :  { %v2571_v61 = vadd.f32 %v2553_v9, %v6387_v21  ;;  %v2467_v16 = vpop.f32.mrb[46].mxu0  ;;  %v2556_v58 = vpop.f32.mrb[94].mxu1  ;;  %v3499_v19 = vmul.f32 -1.442695, %v2464_v24 }
 0x6e9   :  { %4474 = vpow2.f32 %v3495_v13  ;;  %v2468_v49 = vadd.f32 %v2467_v16, %v6383_v23  ;;  %v2469_v7 = vpop.f32.mrb[47].mxu0  ;;  %v2558_v30 = vpop.f32.mrb[95].mxu1 }
 0x6ea   :  { %v2559_v56 = vadd.f32 %v2558_v30, %v6384_v54  ;;  %4476 = vpow2.f32 %v3498_v50  ;;  %v2470_v41 = vadd.f32 %v2469_v7, %v5383_v47 }
 0x6eb   :  { %v4469_v34 = vpop.eup %4468  ;;  %v3496_v46 = vmul.f32 -1.442695, %v2468_v49  ;;  %v2539_v49 = vadd.f32 %v2538_v52, %v5423_v62 }
 0x6ec   :  { %v2585_v40 = vadd.f32 1.0, %v4469_v34  ;;  %v2572_v35 = vadd.f32 %v6388_v63, %v2559_v56  ;;  %v3500_v13 = vmul.f32 -1.442695, %v2470_v41  ;;  %v2545_v41 = vadd.f32 %v2544_v1, %v5423_v62 }
 0x6ed   :  { %4478 = vpow2.f32 %v3496_v46 }
 0x6ee   :  { %4480 = vrcp.f32 %v2585_v40 }
 0x6ef   :  { %v4471_v9 = vpop.eup %4470  ;;  %4482 = vpow2.f32 %v3499_v19 }
 0x6f0   :  { %v2586_v21 = vadd.f32 1.0, %v4471_v9  ;;  %v4473_v16 = vpop.eup %4472 }
 0x6f1   :  { %v2609_v50 = vadd.f32 1.0, %v4473_v16  ;;  %v2551_v16 = vadd.f32 %v2550_v51, %v5423_v62 }
 0x6f2   :  { %4484 = vrcp.f32 %v2586_v21 }
 0x6f3   :  { %v4475_v23 = vpop.eup %4474  ;;  %4486 = vpow2.f32 %v3500_v13 }
 0x6f4   :  { %v2587_v30 = vadd.f32 1.0, %v4475_v23  ;;  %v4477_v54 = vpop.eup %4476 }
 0x6f5   :  { %v2610_v34 = vadd.f32 1.0, %v4477_v54 }
 0x6f6   :  { %4488 = vrcp.f32 %v2587_v30 }
 0x6f7   :  { %v4479_v24 = vpop.eup %4478  ;;  %4490 = vrcp.f32 %v2609_v50 }
 0x6f8   :  { %v4481_v7 = vpop.eup %4480  ;;  %v2588_v56 = vadd.f32 1.0, %v4479_v24 }
 0x6f9   :  { %v4483_v46 = vpop.eup %4482  ;;  %v2621_v40 = vmul.f32 %v4481_v7, %v2539_v49 }
 0x6fa   :  { %4492 = vrcp.f32 %v2588_v56  ;;  %v2611_v9 = vadd.f32 1.0, %v4483_v46 }
 0x6fb   :  { %v2625_v19 = vadd.f32 %v2621_v40, %v2569_v44  ;;  %4494 = vrcp.f32 %v2610_v34  ;;  %v2557_v44 = vadd.f32 %v2556_v58, %v5423_v62 }
 0x6fc   :  { %v4485_v63 = vpop.eup %4484 }
 0x6fd   :  { %v4487_v23 = vpop.eup %4486  ;;  %4496 = vtanh.f32 %v2625_v19  ;;  %v2622_v13 = vmul.f32 %v4485_v63, %v2545_v41 }
 0x6fe   :  { %4498 = vrcp.f32 %v2611_v9  ;;  %v2612_v54 = vadd.f32 1.0, %v4487_v23 }
 0x6ff   :  { %v2626_v21 = vadd.f32 %v2622_v13, %v2570_v38 }
 0x700   :  { %v4489_v52 = vpop.eup %4488 }
 0x701   :  { %4500 = vtanh.f32 %v2626_v21  ;;  %v2623_v30 = vmul.f32 %v4489_v52, %v2551_v16  ;;  %v4491_v24 = vpop.eup %4490 }
 0x702   :  { %4502 = vrcp.f32 %v2612_v54  ;;  %v2633_v34 = vsub.f32 1.0, %v4491_v24  ;;  %v2641_v51 = vmul.f32 %v4491_v24, %v5879_v42 }
 0x703   :  { %v2627_v50 = vadd.f32 %v2623_v30, %v2571_v61  ;;  %v6396_v30 = vld [vmem:[#allocation53_spill] sm:$0xff] }
 0x704   :  { %v4493_v49 = vpop.eup %4492 }
 0x705   :  { %4504 = vtanh.f32 %v2627_v50  ;;  %v2624_v1 = vmul.f32 %v4493_v49, %v2557_v44  ;;  %v4495_v7 = vpop.eup %4494 }
 0x706   :  { %v2634_v41 = vsub.f32 1.0, %v4495_v7  ;;  %v2642_v9 = vmul.f32 %v4495_v7, %v5888_v22 }
 0x707   :  { %v4497_v56 = vpop.eup %4496  ;;  %v2628_v46 = vadd.f32 %v2624_v1, %v2572_v35 }
 0x708   :  { %v2637_v38 = vmul.f32 %v4497_v56, %v2633_v34  ;;  %v4499_v40 = vpop.eup %4498 }
 0x709   :  { %4506 = vtanh.f32 %v2628_v46  ;;  %v2635_v23 = vsub.f32 1.0, %v4499_v40  ;;  %v2643_v16 = vmul.f32 %v4499_v40, %v5900_v33  ;;  %v6397_v46 = vld [vmem:[#allocation19_spill] sm:$0xff]  ;;  %v6398_v40 = vld [vmem:[#allocation20_spill] sm:$0xff] }
 0x70a   :  { %v5989_v19 = vadd.f32 %v2641_v51, %v2637_v38 }
 0x70b   :  { %v4501_v63 = vpop.eup %4500 }
 0x70c   :  { %2714 = vmatmul.mubr.f32.vlgmr.msra.gmra.mrb[48].mxu0 %v5989_v19  ;;  %2803 = vmatmul.mubr.f32.vlgmr.msra.gmra.mrb[96].mxu1 %v5989_v19  ;;  %v3201_v61 = vmul.f32 %v5773_v53, %v5989_v19  ;;  %v2638_v58 = vmul.f32 %v4501_v63, %v2634_v41  ;;  %v4503_v42 = vpop.eup %4502  ;;  %v4191_v41 = vadd.f32 %v5383_v47, %v6398_v40 }
 0x70d   :  { %2719 = vmatprep.mubr.f32.mxu0 %v6340_v45  ;;  %2808 = vmatprep.mubr.f32.mxu1 %v6340_v45  ;;  %v2644_v54 = vmul.f32 %v4503_v42, %v5912_v11  ;;  %v6395_v11 = vld [vmem:[#allocation18_spill] sm:$0xff] }
 0x70e   :  { %3253 = vadd.xlane.f32.xlu1 %v3201_v61  ;;  %v5998_v35 = vadd.f32 %v2642_v9, %v2638_v58  ;;  %4062 = vmatpush1.bf16.msra.mxu0 %v4855_v5  ;;  %v6399_v61 = vld [vmem:[#allocation51_spill] sm:$0xff] }
 0x70f   :  { %v4505_v13 = vpop.eup %4504  ;;  %4094 = vmatpush1.bf16.msra.mxu1 %v5043_v12  ;;  %4064 = vmatprep.subr.bf16.mxu0 %v4858_v6  ;;  %v2636_v12 = vsub.f32 1.0, %v4503_v42 }
 0x710   :  { %2720 = vmatmul.mubr.f32.gmra.mrb[50].mxu0 %v5998_v35  ;;  %2809 = vmatmul.mubr.f32.gmra.mrb[98].mxu1 %v5998_v35  ;;  %v3202_v22 = vmul.f32 %v5773_v53, %v5998_v35  ;;  %v2639_v21 = vmul.f32 %v4505_v13, %v2635_v23 }
 0x711   :  { %2725 = vmatprep.mubr.f32.mxu0 %v6340_v45  ;;  %2814 = vmatprep.mubr.f32.mxu1 %v6340_v45 }
 0x712   :  { %3255 = vadd.xlane.f32.xlu0 %v3202_v22  ;;  %v6010_v5 = vadd.f32 %v2643_v16, %v2639_v21  ;;  %4096 = vmatprep.subr.bf16.mxu1 %v5048_v17 }
 0x713   :  { %v4507_v6 = vpop.eup %4506  ;;  %4066 = vmatpush1.bf16.msra.mxu0 %v4867_v14  ;;  %4098 = vmatpush1.bf16.msra.mxu1 %v5059_v31  ;;  %v6390_v31 = vld [vmem:[#allocation15_spill] sm:$0xff] }
 0x714   :  { %2726 = vmatmul.mubr.f32.gmra.mrb[52].mxu0 %v6010_v5  ;;  %2815 = vmatmul.mubr.f32.gmra.mrb[100].mxu1 %v6010_v5  ;;  %v3203_v33 = vmul.f32 %v5773_v53, %v6010_v5  ;;  %v2640_v52 = vmul.f32 %v4507_v6, %v2636_v12  ;;  %v6400_v12 = vld [vmem:[#allocation21_spill] sm:$0xff] }
 0x715   :  { %2731 = vmatprep.mubr.f32.mxu0 %v6340_v45  ;;  %2820 = vmatprep.mubr.f32.mxu1 %v6340_v45 }
 0x716   :  { %3257 = vadd.xlane.f32.xlu1 %v3203_v33  ;;  %v6022_v17 = vadd.f32 %v2644_v54, %v2640_v52  ;;  %4068 = vmatprep.subr.bf16.mxu0 %v4872_v15  ;;  %v6401_v54 = vld [vmem:[#allocation22_spill] sm:$0xff] }
 0x717   :  { %4100 = vmatprep.subr.bf16.mxu1 %v5065_v43  ;;  %4070 = vmatpush1.bf16.msra.mxu0 %v4884_v25  ;;  %v6389_v25 = vld [vmem:[#allocation9_spill] sm:$0xff]  ;;  %v6391_v43 = vld [vmem:[#allocation52_spill] sm:$0xff] }
 0x718   :  { %2732 = vmatmul.mubr.f32.gmra.mrb[54].mxu0 %v6022_v17  ;;  %2821 = vmatmul.mubr.f32.gmra.mrb[102].mxu1 %v6022_v17  ;;  %v3204_v14 = vmul.f32 %v5773_v53, %v6022_v17  ;;  %v4189_v38 = vadd.f32 %v6391_v43, %v6397_v46  ;;  %v4193_v6 = vadd.f32 %v6391_v43, %v6400_v12 }
 0x719   :  { %4102 = vmatpush1.bf16.msra.mxu1 %v5076_v0  ;;  %4072 = vmatprep.subr.bf16.mxu0 %v4887_v26  ;;  %v4181_v0 = vadd.f32 %v6391_v43, %v6390_v31 }
 0x71a   :  { %3259 = vadd.xlane.f32.xlu0 %v3204_v14  ;;  %4104 = vmatprep.subr.bf16.mxu1 %v5082_v10  ;;  %v6392_v10 = vld [vmem:[#allocation16_spill] sm:$0xff]  ;;  %v4195_v14 = vadd.f32 %v5383_v47, %v6401_v54 }
 0x71b   :  { %4074 = vmatpush1.bf16.msra.mxu0 %v4898_v36  ;;  %2979 = vmatprep.mubr.f32.mxu0 %v6340_v45 }
 0x71c   :  { %4076 = vmatprep.subr.bf16.mxu0 %v4906_v39  ;;  %3068 = vmatprep.mubr.f32.mxu1 %v6340_v45 }
 0x71d   :  { %4106 = vmatpush1.bf16.msra.mxu1 %v5093_v28  ;;  %v4183_v28 = vadd.f32 %v5383_v47, %v6392_v10 }
 0x71e   :  { %4108 = vmatprep.subr.bf16.mxu1 %v5097_v29 }
 0x71f   :  { %4078 = vmatpush1.bf16.msra.mxu0 %v4920_v48 }
 0x720   :  { %4080 = vmatprep.subr.bf16.mxu0 %v4930_v57 }
 0x721   :  { %4110 = vmatpush1.bf16.msra.mxu1 %v5107_v59 }
 0x722   :  { %4112 = vmatprep.subr.bf16.mxu1 %v5111_v37 }
 0x723   :  { %4082 = vmatpush1.bf16.msra.mxu0 %v4941_v3 }
 0x724   :  { %4084 = vmatprep.subr.bf16.mxu0 %v4950_v8 }
 0x725   :  { %4114 = vmatpush1.bf16.msra.mxu1 %v5121_v27 }
 0x726   :  { %4116 = vmatprep.subr.bf16.mxu1 %v5125_v4 }
 0x727   :  { %4086 = vmatpush1.bf16.msra.mxu0 %v6341_v32 }
 0x728   :  { %4088 = vmatprep.subr.bf16.mxu0 %v6342_v18  ;;  %v6393_v18 = vld [vmem:[#allocation60_spill] sm:$0xff] }
 0x729   :  { %4118 = vmatpush1.bf16.msra.mxu1 %v6343_v55 }
 0x72a   :  { %4120 = vmatprep.subr.bf16.mxu1 %v6344_v20  ;;  %v6394_v20 = vld [vmem:[#allocation17_spill] sm:$0xff] }
 0x72b   :  { %4090 = vmatpush1.bf16.msra.mxu0 %v6345_v2  ;;  %v4185_v2 = vadd.f32 %v6391_v43, %v6394_v20 }
 0x72d   :  { %4122 = vmatpush1.bf16.msra.mxu1 %v6380_v60  ;;  %v4187_v60 = vadd.f32 %v5383_v47, %v6395_v11 }
 0x79b   :  { %v3254_v15 = vpop.xlane.xlu1 %3253 }
 0x79c   :  { %v3297_v26 = vadd.f32 %v6389_v25, %v3254_v15  ;;  %v6402_v15 = vld [vmem:[#allocation55_spill] sm:$0xff] }
 0x79e   :  { %3330 = vst.msk [vmem:[%s6244_s9 + $0xa0] sm:$0xff] %vm3309_vm0, %v3297_v26 }
 0x79f   :  { %v3256_v36 = vpop.xlane.xlu0 %3255 }
 0x7a0   :  { %v3298_v39 = vadd.f32 %v6389_v25, %v3256_v36 }
 0x7a2   :  { %3331 = vst.msk [vmem:[%s6244_s9 + $0xa8] sm:$0xff] %vm3309_vm0, %v3298_v39 }
 0x7a3   :  { %v3258_v48 = vpop.xlane.xlu1 %3257 }
 0x7a4   :  { %v3299_v57 = vadd.f32 %v6389_v25, %v3258_v48 }
 0x7a6   :  { %3332 = vst.msk [vmem:[%s6244_s9 + $0xb0] sm:$0xff] %vm3309_vm0, %v3299_v57 }
 0x7a7   :  { %v3260_v3 = vpop.xlane.xlu0 %3259 }
 0x7a8   :  { %v3300_v8 = vadd.f32 %v6389_v25, %v3260_v3 }
 0x7aa   :  { %3333 = vst.msk [vmem:[%s6244_s9 + $0xb8] sm:$0xff] %vm3309_vm0, %v3300_v8 }
 0x7df   :  { %v2715_v29 = vpop.f32.mrb[48].mxu0  ;;  %v6078_v59 = vpop.f32.mrb[96].mxu1 }
 0x7e0   :  { %v4182_v37 = vadd.f32 %v4181_v0, %v2715_v29  ;;  %v2717_v27 = vpop.f32.mrb[49].mxu0  ;;  %v2806_v4 = vpop.f32.mrb[97].mxu1 }
 0x7e1   :  { %v4184_v32 = vadd.f32 %v4183_v28, %v2717_v27  ;;  %v2807_v55 = vadd.f32 %v2806_v4, %v6393_v18 }
 0x7e2   :  { %v3501_v53 = vmul.f32 -1.442695, %v4182_v37  ;;  %v6403_v37 = vld [vmem:[#allocation54_spill] sm:$0xff] }
 0x7e3   :  { %v6086_v24 = vadd.f32 %v2807_v55, %v6396_v30  ;;  %v2721_v50 = vpop.f32.mrb[50].mxu0  ;;  %v6088_v44 = vpop.f32.mrb[98].mxu1  ;;  %v3505_v63 = vmul.f32 -1.442695, %v4184_v32 }
 0x7e4   :  { %4508 = vpow2.f32 %v3501_v53  ;;  %v4186_v49 = vadd.f32 %v4185_v2, %v2721_v50  ;;  %v2723_v1 = vpop.f32.mrb[51].mxu0  ;;  %v2812_v7 = vpop.f32.mrb[99].mxu1  ;;  %v2805_v50 = vadd.f32 %v6078_v59, %v5423_v62 }
 0x7e5   :  { %v4188_v34 = vadd.f32 %v4187_v60, %v2723_v1  ;;  %v2813_v56 = vadd.f32 %v2812_v7, %v6393_v18 }
 0x7e6   :  { %v3502_v51 = vmul.f32 -1.442695, %v4186_v49 }
 0x7e7   :  { %v2836_v58 = vadd.f32 %v6399_v61, %v2813_v56  ;;  %v2727_v9 = vpop.f32.mrb[52].mxu0  ;;  %v2816_v42 = vpop.f32.mrb[100].mxu1  ;;  %v3506_v33 = vmul.f32 -1.442695, %v4188_v34 }
 0x7e8   :  { %4510 = vpow2.f32 %v3502_v51  ;;  %v4190_v23 = vadd.f32 %v4189_v38, %v2727_v9  ;;  %v2729_v13 = vpop.f32.mrb[53].mxu0  ;;  %v2818_v22 = vpop.f32.mrb[101].mxu1  ;;  %v2811_v38 = vadd.f32 %v6088_v44, %v5423_v62  ;;  %v2817_v59 = vadd.f32 %v2816_v42, %v5423_v62 }
 0x7e9   :  { %v4192_v21 = vadd.f32 %v4191_v41, %v2729_v13  ;;  %v2819_v16 = vadd.f32 %v2818_v22, %v6393_v18  ;;  %4512 = vpow2.f32 %v3505_v63 }
 0x7ea   :  { %v3503_v52 = vmul.f32 -1.442695, %v4190_v23 }
 0x7eb   :  { %v2837_v26 = vadd.f32 %v2819_v16, %v6402_v15  ;;  %v2733_v36 = vpop.f32.mrb[54].mxu0  ;;  %v2822_v39 = vpop.f32.mrb[102].mxu1  ;;  %v3507_v10 = vmul.f32 -1.442695, %v4192_v21 }
 0x7ec   :  { %4514 = vpow2.f32 %v3503_v52  ;;  %v4194_v48 = vadd.f32 %v4193_v6, %v2733_v36  ;;  %v2735_v57 = vpop.f32.mrb[55].mxu0  ;;  %v2824_v3 = vpop.f32.mrb[103].mxu1 }
 0x7ed   :  { %v4196_v8 = vadd.f32 %v4195_v14, %v2735_v57  ;;  %v2825_v31 = vadd.f32 %v2824_v3, %v6393_v18  ;;  %4516 = vpow2.f32 %v3506_v33 }
 0x7ee   :  { %v4509_v0 = vpop.eup %4508  ;;  %v3504_v28 = vmul.f32 -1.442695, %v4194_v48 }
 0x7ef   :  { %v2851_v29 = vadd.f32 1.0, %v4509_v0  ;;  %v2838_v27 = vadd.f32 %v6403_v37, %v2825_v31  ;;  %v3508_v32 = vmul.f32 -1.442695, %v4196_v8 }
 0x7f0   :  { %4518 = vpow2.f32 %v3504_v28 }
 0x7f1   :  { %4520 = vrcp.f32 %v2851_v29 }
 0x7f2   :  { %v4511_v4 = vpop.eup %4510  ;;  %4522 = vpow2.f32 %v3507_v10 }
 0x7f3   :  { %v2852_v55 = vadd.f32 1.0, %v4511_v4  ;;  %v4513_v20 = vpop.eup %4512 }
 0x7f4   :  { %v2875_v60 = vadd.f32 1.0, %v4513_v20 }
 0x7f5   :  { %4524 = vrcp.f32 %v2852_v55 }
 0x7f6   :  { %v4515_v2 = vpop.eup %4514  ;;  %4526 = vpow2.f32 %v3508_v32 }
 0x7f7   :  { %v2853_v53 = vadd.f32 1.0, %v4515_v2  ;;  %v4517_v11 = vpop.eup %4516 }
 0x7f8   :  { %v2876_v1 = vadd.f32 1.0, %v4517_v11 }
 0x7f9   :  { %4528 = vrcp.f32 %v2853_v53 }
 0x7fa   :  { %v4519_v30 = vpop.eup %4518  ;;  %4530 = vrcp.f32 %v2875_v60 }
 0x7fb   :  { %v4521_v49 = vpop.eup %4520  ;;  %v2854_v7 = vadd.f32 1.0, %v4519_v30 }
 0x7fc   :  { %v4523_v34 = vpop.eup %4522  ;;  %v2887_v56 = vmul.f32 %v4521_v49, %v2805_v50  ;;  %v6404_v50 = vld [vmem:[#allocation23_spill] sm:$0xff] }
 0x7fd   :  { %4532 = vrcp.f32 %v2854_v7  ;;  %v2877_v40 = vadd.f32 1.0, %v4523_v34  ;;  %v4197_v49 = vadd.f32 %v6391_v43, %v6404_v50 }
 0x7fe   :  { %v2891_v46 = vadd.f32 %v2887_v56, %v6086_v24  ;;  %4534 = vrcp.f32 %v2876_v1  ;;  %v2823_v24 = vadd.f32 %v2822_v39, %v5423_v62  ;;  %v6405_v1 = vld [vmem:[#allocation24_spill] sm:$0xff] }
 0x7ff   :  { %v4525_v51 = vpop.eup %4524  ;;  %v4199_v7 = vadd.f32 %v5383_v47, %v6405_v1 }
 0x800   :  { %v4527_v41 = vpop.eup %4526  ;;  %4536 = vtanh.f32 %v2891_v46  ;;  %v2888_v63 = vmul.f32 %v4525_v51, %v2811_v38 }
 0x801   :  { %4538 = vrcp.f32 %v2877_v40  ;;  %v2878_v23 = vadd.f32 1.0, %v4527_v41 }
 0x802   :  { %v2892_v61 = vadd.f32 %v2888_v63, %v2836_v58  ;;  %v6406_v63 = vld [vmem:[#allocation25_spill] sm:$0xff] }
 0x803   :  { %v4529_v9 = vpop.eup %4528 }
 0x804   :  { %4540 = vtanh.f32 %v2892_v61  ;;  %v2889_v13 = vmul.f32 %v4529_v9, %v2817_v59  ;;  %v4531_v22 = vpop.eup %4530  ;;  %v4201_v61 = vadd.f32 %v6391_v43, %v6406_v63  ;;  %v6407_v9 = vld [vmem:[#allocation26_spill] sm:$0xff] }
 0x805   :  { %4542 = vrcp.f32 %v2878_v23  ;;  %v2899_v6 = vsub.f32 1.0, %v4531_v22  ;;  %v2907_v42 = vmul.f32 %v4531_v22, %v5989_v19  ;;  %v4203_v23 = vadd.f32 %v5383_v47, %v6407_v9 }
 0x806   :  { %v2893_v21 = vadd.f32 %v2889_v13, %v2837_v26  ;;  %v6119_v26 = vld [vmem:[%s6242_s7] ss:$0 sm:$0xff] }
 0x807   :  { %v4533_v16 = vpop.eup %4532  ;;  %v6408_v13 = vld [vmem:[#allocation57_spill] sm:$0xff] }
 0x808   :  { %4544 = vtanh.f32 %v2893_v21  ;;  %v2890_v44 = vmul.f32 %v4533_v16, %v2823_v24  ;;  %v4535_v12 = vpop.eup %4534 }
 0x809   :  { %v2900_v15 = vsub.f32 1.0, %v4535_v12  ;;  %v2908_v19 = vmul.f32 %v4535_v12, %v5998_v35 }
 0x80a   :  { %v4537_v33 = vpop.eup %4536  ;;  %v2894_v52 = vadd.f32 %v2890_v44, %v2838_v27 }
 0x80b   :  { %v2903_v58 = vmul.f32 %v4537_v33, %v2899_v6  ;;  %v4539_v54 = vpop.eup %4538 }
 0x80c   :  { %4546 = vtanh.f32 %v2894_v52  ;;  %v2901_v8 = vsub.f32 1.0, %v4539_v54  ;;  %v2909_v35 = vmul.f32 %v4539_v54, %v6010_v5  ;;  %v6409_v52 = vld [vmem:[#allocation27_spill] sm:$0xff]  ;;  %v6410_v54 = vld [vmem:[#allocation28_spill] sm:$0xff] }
 0x80d   :  { %v6112_v14 = vadd.f32 %v2907_v42, %v2903_v58  ;;  %v4205_v58 = vadd.f32 %v6391_v43, %v6409_v52 }
 0x80e   :  { %v4541_v36 = vpop.eup %4540 }
 0x80f   :  { %2980 = vmatmul.mubr.f32.vlgmr.msra.gmra.mrb[56].mxu0 %v6112_v14  ;;  %3069 = vmatmul.mubr.f32.vlgmr.msra.gmra.mrb[104].mxu1 %v6112_v14  ;;  %v3205_v39 = vmul.f32 %v6119_v26, %v6112_v14  ;;  %v2904_v48 = vmul.f32 %v4541_v36, %v2900_v15  ;;  %v4543_v57 = vpop.eup %4542  ;;  %v4207_v15 = vadd.f32 %v5383_v47, %v6410_v54 }
 0x810   :  { %2985 = vmatprep.mubr.f32.mxu0 %v6340_v45  ;;  %3074 = vmatprep.mubr.f32.mxu1 %v6340_v45  ;;  %v2902_v29 = vsub.f32 1.0, %v4543_v57  ;;  %v2910_v32 = vmul.f32 %v4543_v57, %v6022_v17 }
 0x811   :  { %3261 = vadd.xlane.f32.xlu1 %v3205_v39  ;;  %v6126_v3 = vadd.f32 %v2908_v19, %v2904_v48  ;;  %v6411_v39 = vld [vmem:[#allocation56_spill] sm:$0xff] }
 0x812   :  { %v4545_v31 = vpop.eup %4544 }
 0x813   :  { %2986 = vmatmul.mubr.f32.gmra.mrb[58].mxu0 %v6126_v3  ;;  %3075 = vmatmul.mubr.f32.gmra.mrb[106].mxu1 %v6126_v3  ;;  %v3206_v0 = vmul.f32 %v6119_v26, %v6126_v3  ;;  %v2905_v10 = vmul.f32 %v4545_v31, %v2901_v8 }
 0x814   :  { %2991 = vmatprep.mubr.f32.mxu0 %v6340_v45  ;;  %3080 = vmatprep.mubr.f32.mxu1 %v6340_v45 }
 0x815   :  { %3263 = vadd.xlane.f32.xlu0 %v3206_v0  ;;  %v6135_v28 = vadd.f32 %v2909_v35, %v2905_v10 }
 0x816   :  { %v4547_v37 = vpop.eup %4546 }
 0x817   :  { %2992 = vmatmul.mubr.f32.gmra.mrb[60].mxu0 %v6135_v28  ;;  %3081 = vmatmul.mubr.f32.gmra.mrb[108].mxu1 %v6135_v28  ;;  %v3207_v27 = vmul.f32 %v6119_v26, %v6135_v28  ;;  %v2906_v4 = vmul.f32 %v4547_v37, %v2902_v29  ;;  %v6412_v29 = vld [vmem:[#allocation29_spill] sm:$0xff] }
 0x818   :  { %2997 = vmatprep.mubr.f32.mxu0 %v6340_v45  ;;  %3086 = vmatprep.mubr.f32.mxu1 %v6340_v45  ;;  %v4209_v37 = vadd.f32 %v6391_v43, %v6412_v29 }
 0x819   :  { %3265 = vadd.xlane.f32.xlu1 %v3207_v27  ;;  %v6144_v5 = vadd.f32 %v2910_v32, %v2906_v4  ;;  %v6413_v32 = vld [vmem:[#allocation30_spill] sm:$0xff] }
 0x81b   :  { %2998 = vmatmul.mubr.f32.gmra.mrb[62].mxu0 %v6144_v5  ;;  %3087 = vmatmul.mubr.f32.gmra.mrb[110].mxu1 %v6144_v5  ;;  %v3208_v55 = vmul.f32 %v6119_v26, %v6144_v5 }
 0x81d   :  { %3267 = vadd.xlane.f32.xlu0 %v3208_v55  ;;  %v4211_v55 = vadd.f32 %v5383_v47, %v6413_v32 }
 0x89e   :  { %v3262_v20 = vpop.xlane.xlu1 %3261 }
 0x89f   :  { %v3301_v2 = vadd.f32 %v6389_v25, %v3262_v20  ;;  %v6414_v20 = vld [vmem:[#allocation59_spill] sm:$0xff] }
 0x8a1   :  { %3334 = vst.msk [vmem:[%s6244_s9 + $0xc0] sm:$0xff] %vm3309_vm0, %v3301_v2 }
 0x8a2   :  { %v3264_v45 = vpop.xlane.xlu0 %3263 }
 0x8a3   :  { %v3302_v17 = vadd.f32 %v6389_v25, %v3264_v45 }
 0x8a5   :  { %3335 = vst.msk [vmem:[%s6244_s9 + $0xc8] sm:$0xff] %vm3309_vm0, %v3302_v17 }
 0x8a6   :  { %v3266_v53 = vpop.xlane.xlu1 %3265 }
 0x8a7   :  { %v3303_v11 = vadd.f32 %v6389_v25, %v3266_v53 }
 0x8a9   :  { %3336 = vst.msk [vmem:[%s6244_s9 + $0xd0] sm:$0xff] %vm3309_vm0, %v3303_v11 }
 0x8aa   :  { %v3268_v60 = vpop.xlane.xlu0 %3267 }
 0x8ab   :  { %v3304_v30 = vadd.f32 %v6389_v25, %v3268_v60 }
 0x8ad   :  { %3337 = vst.msk [vmem:[%s6244_s9 + $0xd8] sm:$0xff] %vm3309_vm0, %v3304_v30 }
 0x8e2   :  { %v2981_v34 = vpop.f32.mrb[56].mxu0  ;;  %v6174_v56 = vpop.f32.mrb[104].mxu1 }
 0x8e3   :  { %v4198_v46 = vadd.f32 %v4197_v49, %v2981_v34  ;;  %v2983_v38 = vpop.f32.mrb[57].mxu0  ;;  %v3072_v51 = vpop.f32.mrb[105].mxu1  ;;  %v6415_v34 = vld [vmem:[#allocation58_spill] sm:$0xff]  ;;  %v3071_v9 = vadd.f32 %v6174_v56, %v5423_v62 }
 0x8e4   :  { %v4200_v40 = vadd.f32 %v4199_v7, %v2983_v38  ;;  %v3073_v41 = vadd.f32 %v3072_v51, %v6393_v18 }
 0x8e5   :  { %v3509_v59 = vmul.f32 -1.442695, %v4198_v46 }
 0x8e6   :  { %v6182_v22 = vadd.f32 %v3073_v41, %v6408_v13  ;;  %v2987_v21 = vpop.f32.mrb[58].mxu0  ;;  %v6184_v24 = vpop.f32.mrb[106].mxu1  ;;  %v3513_v36 = vmul.f32 -1.442695, %v4200_v40 }
 0x8e7   :  { %4548 = vpow2.f32 %v3509_v59  ;;  %v4202_v16 = vadd.f32 %v4201_v61, %v2987_v21  ;;  %v2989_v44 = vpop.f32.mrb[59].mxu0  ;;  %v3078_v12 = vpop.f32.mrb[107].mxu1 }
 0x8e8   :  { %v4204_v6 = vadd.f32 %v4203_v23, %v2989_v44  ;;  %v3079_v33 = vadd.f32 %v3078_v12, %v6393_v18 }
 0x8e9   :  { %v3510_v42 = vmul.f32 -1.442695, %v4202_v16 }
 0x8ea   :  { %v3102_v48 = vadd.f32 %v6411_v39, %v3079_v33  ;;  %v2993_v19 = vpop.f32.mrb[60].mxu0  ;;  %v3082_v57 = vpop.f32.mrb[108].mxu1  ;;  %v3514_v27 = vmul.f32 -1.442695, %v4204_v6  ;;  %v3077_v6 = vadd.f32 %v6184_v24, %v5423_v62 }
 0x8eb   :  { %4550 = vpow2.f32 %v3510_v42  ;;  %v4206_v8 = vadd.f32 %v4205_v58, %v2993_v19  ;;  %v2995_v31 = vpop.f32.mrb[61].mxu0  ;;  %v3084_v0 = vpop.f32.mrb[109].mxu1  ;;  %v3083_v56 = vadd.f32 %v3082_v57, %v5423_v62 }
 0x8ec   :  { %v4208_v10 = vadd.f32 %v4207_v15, %v2995_v31  ;;  %v3085_v35 = vadd.f32 %v3084_v0, %v6393_v18  ;;  %4552 = vpow2.f32 %v3513_v36 }
 0x8ed   :  { %v3511_v4 = vmul.f32 -1.442695, %v4206_v8 }
 0x8ee   :  { %v3103_v2 = vadd.f32 %v3085_v35, %v6414_v20  ;;  %v2999_v45 = vpop.f32.mrb[62].mxu0  ;;  %v3088_v17 = vpop.f32.mrb[110].mxu1  ;;  %v3515_v43 = vmul.f32 -1.442695, %v4208_v10 }
 0x8ef   :  { %4554 = vpow2.f32 %v3511_v4  ;;  %v4210_v53 = vadd.f32 %v4209_v37, %v2999_v45  ;;  %v3001_v11 = vpop.f32.mrb[63].mxu0  ;;  %v3090_v60 = vpop.f32.mrb[111].mxu1 }
 0x8f0   :  { %v4212_v30 = vadd.f32 %v4211_v55, %v3001_v11  ;;  %v3091_v50 = vadd.f32 %v3090_v60, %v6393_v18  ;;  %4556 = vpow2.f32 %v3514_v27 }
 0x8f1   :  { %v4549_v49 = vpop.eup %4548  ;;  %v3512_v1 = vmul.f32 -1.442695, %v4210_v53 }
 0x8f2   :  { %v3117_v7 = vadd.f32 1.0, %v4549_v49  ;;  %v3104_v46 = vadd.f32 %v6415_v34, %v3091_v50  ;;  %v3516_v38 = vmul.f32 -1.442695, %v4212_v30 }
 0x8f3   :  { %4558 = vpow2.f32 %v3512_v1 }
 0x8f4   :  { %4560 = vrcp.f32 %v3117_v7 }
 0x8f5   :  { %v4551_v47 = vpop.eup %4550  ;;  %4562 = vpow2.f32 %v3515_v43 }
 0x8f6   :  { %v3118_v51 = vadd.f32 1.0, %v4551_v47  ;;  %v4553_v40 = vpop.eup %4552 }
 0x8f7   :  { %v3141_v18 = vadd.f32 1.0, %v4553_v40 }
 0x8f8   :  { %4564 = vrcp.f32 %v3118_v51 }
 0x8f9   :  { %v4555_v41 = vpop.eup %4554  ;;  %4566 = vpow2.f32 %v3516_v38 }
 0x8fa   :  { %v3119_v63 = vadd.f32 1.0, %v4555_v41  ;;  %v4557_v61 = vpop.eup %4556 }
 0x8fb   :  { %v3142_v13 = vadd.f32 1.0, %v4557_v61 }
 0x8fc   :  { %4568 = vrcp.f32 %v3119_v63 }
 0x8fd   :  { %v4559_v59 = vpop.eup %4558  ;;  %4570 = vrcp.f32 %v3141_v18 }
 0x8fe   :  { %v4561_v23 = vpop.eup %4560  ;;  %v3120_v21 = vadd.f32 1.0, %v4559_v59 }
 0x8ff   :  { %v4563_v16 = vpop.eup %4562  ;;  %v3153_v44 = vmul.f32 %v4561_v23, %v3071_v9 }
 0x900   :  { %4572 = vrcp.f32 %v3120_v21  ;;  %v3143_v52 = vadd.f32 1.0, %v4563_v16 }
 0x901   :  { %v3157_v12 = vadd.f32 %v3153_v44, %v6182_v22  ;;  %4574 = vrcp.f32 %v3142_v13  ;;  %v3089_v22 = vadd.f32 %v3088_v17, %v5423_v62 }
 0x902   :  { %v4565_v33 = vpop.eup %4564 }
 0x903   :  { %v4567_v58 = vpop.eup %4566  ;;  %4576 = vtanh.f32 %v3157_v12  ;;  %v3154_v42 = vmul.f32 %v4565_v33, %v3077_v6 }
 0x904   :  { %4578 = vrcp.f32 %v3143_v52  ;;  %v3144_v36 = vadd.f32 1.0, %v4567_v58 }
 0x905   :  { %v3158_v54 = vadd.f32 %v3154_v42, %v3102_v48 }
 0x906   :  { %v4569_v15 = vpop.eup %4568 }
 0x907   :  { %4580 = vtanh.f32 %v3158_v54  ;;  %v3155_v39 = vmul.f32 %v4569_v15, %v3083_v56  ;;  %v4571_v19 = vpop.eup %4570 }
 0x908   :  { %4582 = vrcp.f32 %v3144_v36  ;;  %v3165_v10 = vsub.f32 1.0, %v4571_v19  ;;  %v3173_v57 = vmul.f32 %v4571_v19, %v6112_v14 }
 0x909   :  { %v3159_v8 = vadd.f32 %v3155_v39, %v3103_v2 }
 0x90a   :  { %v4573_v31 = vpop.eup %4572 }
 0x90b   :  { %4584 = vtanh.f32 %v3159_v8  ;;  %v3156_v24 = vmul.f32 %v4573_v31, %v3089_v22  ;;  %v4575_v0 = vpop.eup %4574 }
 0x90c   :  { %v3166_v4 = vsub.f32 1.0, %v4575_v0  ;;  %v3174_v62 = vmul.f32 %v4575_v0, %v6126_v3 }
 0x90d   :  { %v4577_v35 = vpop.eup %4576  ;;  %v3160_v29 = vadd.f32 %v3156_v24, %v3104_v46 }
 0x90e   :  { %v3169_v48 = vmul.f32 %v4577_v35, %v3165_v10  ;;  %v4579_v37 = vpop.eup %4578 }
 0x90f   :  { %4586 = vtanh.f32 %v3160_v29  ;;  %v3167_v17 = vsub.f32 1.0, %v4579_v37  ;;  %v3175_v14 = vmul.f32 %v4579_v37, %v6135_v28 }
 0x910   :  { %v3177_v27 = vadd.f32 %v3173_v57, %v3169_v48 }
 0x911   :  { %v4581_v32 = vpop.eup %4580 }
 0x912   :  { %v3209_v55 = vmul.f32 %v6119_v26, %v3177_v27  ;;  %v3170_v20 = vmul.f32 %v4581_v32, %v3166_v4  ;;  %v4583_v2 = vpop.eup %4582 }
 0x913   :  { %v3168_v50 = vsub.f32 1.0, %v4583_v2  ;;  %v3176_v7 = vmul.f32 %v4583_v2, %v6144_v5 }
 0x914   :  { %3269 = vadd.xlane.f32.xlu1 %v3209_v55  ;;  %v3178_v45 = vadd.f32 %v3174_v62, %v3170_v20 }
 0x915   :  { %v4585_v53 = vpop.eup %4584 }
 0x916   :  { %v3210_v11 = vmul.f32 %v6119_v26, %v3178_v45  ;;  %v3171_v60 = vmul.f32 %v4585_v53, %v3167_v17 }
 0x918   :  { %3271 = vadd.xlane.f32.xlu0 %v3210_v11  ;;  %v3179_v30 = vadd.f32 %v3175_v14, %v3171_v60 }
 0x919   :  { %v4587_v49 = vpop.eup %4586 }
 0x91a   :  { %v3211_v43 = vmul.f32 %v6119_v26, %v3179_v30  ;;  %v3172_v1 = vmul.f32 %v4587_v49, %v3168_v50 }
 0x91c   :  { %3273 = vadd.xlane.f32.xlu1 %v3211_v43  ;;  %v3180_v3 = vadd.f32 %v3176_v7, %v3172_v1 }
 0x91e   :  { %v3212_v34 = vmul.f32 %v6119_v26, %v3180_v3 }
 0x920   :  { %3275 = vadd.xlane.f32.xlu0 %v3212_v34 }
 0x9a1   :  { %v3270_v46 = vpop.xlane.xlu1 %3269 }
 0x9a2   :  { %v3305_v47 = vadd.f32 %v6389_v25, %v3270_v46 }
 0x9a4   :  { %3338 = vst.msk [vmem:[%s6244_s9 + $0xe0] sm:$0xff] %vm3309_vm0, %v3305_v47 }
 0x9a5   :  { %v3272_v28 = vpop.xlane.xlu0 %3271 }
 0x9a6   :  { %v3306_v38 = vadd.f32 %v6389_v25, %v3272_v28 }
 0x9a8   :  { %3339 = vst.msk [vmem:[%s6244_s9 + $0xe8] sm:$0xff] %vm3309_vm0, %v3306_v38 }
 0x9a9   :  { %v3274_v5 = vpop.xlane.xlu1 %3273 }
 0x9aa   :  { %v3307_v26 = vadd.f32 %v6389_v25, %v3274_v5 }
 0x9ac   :  { %3340 = vst.msk [vmem:[%s6244_s9 + $0xf0] sm:$0xff] %vm3309_vm0, %v3307_v26 }
 0x9ad   :  { %v3276_v51 = vpop.xlane.xlu0 %3275 }
 0x9ae   :  { %v3308_v40 = vadd.f32 %v6389_v25, %v3276_v51 }
 0x9b0   :  { %3341 = vst.msk [vmem:[%s6244_s9 + $0xf8] sm:$0xff] %vm3309_vm0, %v3308_v40 }
 0x9b1   :  { %3346 = vsyncpa [#allocation4], 1 }

</bundles_post_ra>
